<compile_context>
chip_gen: v5e
topology: v5e:2x2
jax: 0.10.0
libtpu: 0.0.40
codegen_flags: <defaults>
</compile_context>

<pallas_src>
import functools

import numpy as np
import jax
import jax.numpy as jnp
from jax import lax
from jax.experimental import pallas as pl
from jax.experimental.pallas import tpu as pltpu


def _vqa_head_kernel(q_ref, i_ref, w1_ref, nrm_ref, w2_ref, b2_ref, o_ref,
                     *, n_sub, sub_rows):
    # Stacked per-feature params: row 0 = b1, row 1 = LN gamma, row 2 = LN beta.
    b1 = nrm_ref[0:1, :]
    gamma = nrm_ref[1:2, :]
    beta = nrm_ref[2:3, :]
    b2 = b2_ref[...]

    # Static (unrolled) sub-chunk loop: the LayerNorm/ReLU (VPU/XLU) of one
    # chunk can be scheduled under the other chunk's MXU matmuls.
    for c in range(n_sub):
        r0 = c * sub_rows
        # i_f = dropout(tanh(resnet_features)); dropout -> identity at inference.
        i_f = jnp.tanh(i_ref[r0:r0 + sub_rows, :])
        # uni = i_f * q_f  (f32 on the VPU; cast to bf16 only at the MXU input).
        uni = (i_f * q_ref[r0:r0 + sub_rows, :]).astype(w1_ref.dtype)

        # linear: uni @ W1 + b1   (dim_i -> dim_h), bf16 MXU, f32 accumulate.
        h = jnp.dot(uni, w1_ref[...], preferred_element_type=jnp.float32) + b1

        # LayerNorm over dim_h (eps = 1e-5, biased variance, as nn.LayerNorm).
        # Two-pass (mean, then centered variance) for numerical safety.
        mean = jnp.mean(h, axis=-1, keepdims=True)
        cen = h - mean
        var = jnp.mean(cen * cen, axis=-1, keepdims=True)
        hn = cen * lax.rsqrt(var + 1e-5)
        hn = hn * gamma + beta

        # drop(0.2) -> identity at inference; relu; bf16 for the MXU.
        r = jnp.maximum(hn, 0.0).astype(w2_ref.dtype)

        # out_linear: r @ W2 + b2   (dim_h -> nt_pad), f32 accumulate.
        out = jnp.dot(r, w2_ref[...], preferred_element_type=jnp.float32) + b2
        o_ref[r0:r0 + sub_rows, :] = out.astype(o_ref.dtype)


def prepare_vqa_head_params(w1, b1, gamma, beta, w2, b2,
                            *, weight_dtype=jnp.bfloat16):
    """One-time (model-init) parameter prep, hoisted out of the forward path:
    bf16 weight cast, lane-padding of the output projection, and stacking of
    the per-feature vectors into one sublane-aligned resident tile."""
    dim_i, dim_h = w1.shape
    num_target = w2.shape[1]
    nt_pad = ((num_target + 127) // 128) * 128

    b1 = jnp.reshape(b1, (dim_h,)).astype(jnp.float32)
    gamma = jnp.reshape(gamma, (dim_h,)).astype(jnp.float32)
    beta = jnp.reshape(beta, (dim_h,)).astype(jnp.float32)
    b2 = jnp.reshape(b2, (1, num_target)).astype(jnp.float32)
    if nt_pad != num_target:
        w2 = jnp.pad(w2, ((0, 0), (0, nt_pad - num_target)))
        b2 = jnp.pad(b2, ((0, 0), (0, nt_pad - num_target)))

    # Rows 0..2 carry b1 / gamma / beta; rows 3..7 pad to a full sublane tile.
    norm = jnp.zeros((8, dim_h), jnp.float32)
    norm = norm.at[0, :].set(b1).at[1, :].set(gamma).at[2, :].set(beta)

    return {
        "w1": w1.astype(weight_dtype),   # (dim_i, dim_h), (in, out) layout
        "norm": norm,                    # (8, dim_h) stacked b1/gamma/beta
        "w2": w2.astype(weight_dtype),   # (dim_h, nt_pad), lane-padded
        "b2": b2,                        # (1, nt_pad)
        "num_target": num_target,
    }


def _default_tile_b(B):
    if B <= 16:
        return B
    if B >= 512:
        return 256            # feeds the 256-wide MXU M dimension on v6e/v7x
    # >= 2 grid steps so both v7x TensorCores get work; sublane-aligned.
    half = -(-B // 2)
    return max(8, ((half + 7) // 8) * 8)


def vqa_head(q_f, i_raw, params, *, tile_b=None,
             out_dtype=jnp.float32, slice_output=True):
    """Fusion-head forward. `params` comes from prepare_vqa_head_params().
    For large-B serving prefer out_dtype=jnp.bfloat16 and slice_output=False
    (keep lane-padded logits, mask downstream) to cut output HBM traffic."""
    B, dim_i = q_f.shape
    w1, norm, w2, b2 = params["w1"], params["norm"], params["w2"], params["b2"]
    num_target = params["num_target"]
    dim_h = w1.shape[1]
    nt_pad = w2.shape[1]

    if tile_b is None:
        tile_b = _default_tile_b(B)
    tile_b = min(tile_b, B)
    num_blocks = -(-B // tile_b)
    B_pad = num_blocks * tile_b
    if B_pad != B:
        pad = ((0, B_pad - B), (0, 0))
        q_f = jnp.pad(q_f, pad)
        i_raw = jnp.pad(i_raw, pad)

    # Split each batch tile into 2 row chunks (>= 8 sublanes each) so VPU/XLU
    # LayerNorm work of one chunk overlaps the other's MXU matmul.
    n_sub = 2 if (tile_b % 16 == 0) else 1
    sub_rows = tile_b // n_sub

    kernel = functools.partial(_vqa_head_kernel, n_sub=n_sub, sub_rows=sub_rows)

    cost = pl.CostEstimate(
        flops=2 * B_pad * (dim_i * dim_h + dim_h * nt_pad),
        transcendentals=B_pad * dim_i,                      # tanh
        bytes_accessed=(2 * B_pad * dim_i * 4               # q_f, i_raw
                        + int(w1.size) * w1.dtype.itemsize
                        + int(w2.size) * w2.dtype.itemsize
                        + int(norm.size) * 4 + int(b2.size) * 4
                        + B_pad * nt_pad * np.dtype(out_dtype).itemsize),
    )

    act_spec = pl.BlockSpec((tile_b, dim_i), lambda b: (b, 0))
    out_spec = pl.BlockSpec((tile_b, nt_pad), lambda b: (b, 0))

    def run(single_buffer_weights):
        if single_buffer_weights:
            # Constant block index -> one VMEM buffer is enough; the second
            # pipeline buffer is pure VMEM waste (~8 MiB at real shapes).
            wspec = lambda shape: pl.BlockSpec(
                shape, lambda b: (0, 0), pipeline_mode=pl.Buffered(1))
        else:
            wspec = lambda shape: pl.BlockSpec(shape, lambda b: (0, 0))
        return pl.pallas_call(
            kernel,
            out_shape=jax.ShapeDtypeStruct((B_pad, nt_pad), out_dtype),
            grid=(num_blocks,),
            in_specs=[
                act_spec,                  # q_f   (BERT pooler_output), batch-tiled
                act_spec,                  # i_raw (resnet50 fc output, pre-tanh)
                wspec((dim_i, dim_h)),     # W1 (bf16, (in, out) layout)
                wspec((8, dim_h)),         # stacked b1 / LN gamma / LN beta
                wspec((dim_h, nt_pad)),    # W2 (bf16, lane-padded)
                wspec((1, nt_pad)),        # b2 (lane-padded)
            ],
            out_specs=out_spec,
            compiler_params=pltpu.CompilerParams(
                dimension_semantics=("parallel",),
                # > v5e's 16 MiB default scoped budget, < v7x's 64 MiB physical.
                vmem_limit_bytes=40 * 1024 * 1024,
            ),
            cost_estimate=cost,
        )(q_f, i_raw, w1, norm, w2, b2)

    try:
        out_pad = run(single_buffer_weights=True)
    except Exception:
        # Fallback for Pallas versions that reject Buffered(1) single-buffering.
        out_pad = run(single_buffer_weights=False)

    if slice_output:
        return out_pad[:B, :num_target]
    return out_pad[:B]


if __name__ == "__main__":
    # Small shapes consistent with the forward (real model: dim_i=768,
    # dim_h=1024, num_target = answer-vocab size). num_target=200 exercises
    # the non-128-multiple lane-padding path; B=32 gives a 2-step batch grid
    # (both v7x cores busy) with 2 row sub-chunks per step.
    B = 32
    dim_i = 256
    dim_h = 512
    num_target = 200

    key = jax.random.PRNGKey(0)
    k_q, k_i, k_w1, k_b1, k_w2, k_b2 = jax.random.split(key, 6)

    # Synthetic backbone features (stand-ins for BERT pooler_output /
    # resnet50 fc output).
    q_f = jax.random.normal(k_q, (B, dim_i), dtype=jnp.float32)
    i_raw = jax.random.normal(k_i, (B, dim_i), dtype=jnp.float32)

    # PyTorch nn.Linear stores weight as (out, in) and computes x @ W.T + b;
    # we keep the transposed (in, out) layout directly.
    w1 = jax.random.normal(k_w1, (dim_i, dim_h), dtype=jnp.float32) * 0.02
    b1 = jax.random.normal(k_b1, (dim_h,), dtype=jnp.float32) * 0.02
    gamma = jnp.ones((dim_h,), dtype=jnp.float32)       # nn.LayerNorm defaults
    beta = jnp.zeros((dim_h,), dtype=jnp.float32)
    w2 = jax.random.normal(k_w2, (dim_h, num_target), dtype=jnp.float32) * 0.02
    b2 = jax.random.normal(k_b2, (num_target,), dtype=jnp.float32) * 0.02

    # One-time parameter prep (init-time, not per forward call).
    params = prepare_vqa_head_params(w1, b1, gamma, beta, w2, b2)

    out = vqa_head(q_f, i_raw, params)
    out = jax.block_until_ready(out)
    assert out.shape == (B, num_target)

    # Pure-JAX reference (matching the kernel's bf16-weight MXU path).
    uni = jnp.tanh(i_raw) * q_f
    h = jnp.dot(uni.astype(jnp.bfloat16), w1.astype(jnp.bfloat16),
                preferred_element_type=jnp.float32) + b1[None, :]
    mu = h.mean(-1, keepdims=True)
    var = ((h - mu) ** 2).mean(-1, keepdims=True)
    hn = (h - mu) / jnp.sqrt(var + 1e-5) * gamma[None, :] + beta[None, :]
    r = jnp.maximum(hn, 0.0)
    ref = jnp.dot(r.astype(jnp.bfloat16), w2.astype(jnp.bfloat16),
                  preferred_element_type=jnp.float32) + b2[None, :]
    assert jnp.allclose(out, ref, atol=2e-3, rtol=2e-3), "mismatch vs JAX reference"

    print("KERNEL_OK")
</pallas_src>

<mosaic_0001>
module attributes {stable_mosaic.version = 11 : i64} {
  func.func @_vqa_head_kernel(%arg0: i32, %arg1: memref<16x256xf32, #tpu.memory_space<vmem>>, %arg2: memref<16x256xf32, #tpu.memory_space<vmem>>, %arg3: memref<256x512xbf16, #tpu.memory_space<vmem>>, %arg4: memref<8x512xf32, #tpu.memory_space<vmem>>, %arg5: memref<512x256xbf16, #tpu.memory_space<vmem>>, %arg6: memref<1x256xf32, #tpu.memory_space<vmem>>, %arg7: memref<16x256xf32, #tpu.memory_space<vmem>>) attributes {dimension_semantics = [#tpu.dimension_semantics<parallel>], iteration_bounds = array<i64: 2>, scalar_prefetch = 0 : i64, scratch_operands = 0 : i64, tpu.core_type = #tpu.core_type<tc>, window_params = [{transform_indices = @transform_0, window_bounds = array<i64: 16, 256>}, {transform_indices = @transform_1, window_bounds = array<i64: 16, 256>}, {pipeline_mode = #tpu.pipeline_mode<synchronous>, transform_indices = @transform_2, window_bounds = array<i64: 256, 512>}, {pipeline_mode = #tpu.pipeline_mode<synchronous>, transform_indices = @transform_3, window_bounds = array<i64: 8, 512>}, {pipeline_mode = #tpu.pipeline_mode<synchronous>, transform_indices = @transform_4, window_bounds = array<i64: 512, 256>}, {pipeline_mode = #tpu.pipeline_mode<synchronous>, transform_indices = @transform_5, window_bounds = array<i64: 1, 256>}, {transform_indices = @transform_6, window_bounds = array<i64: 16, 256>}]} {
    %c0 = arith.constant 0 : index
    %c0_0 = arith.constant 0 : index
    %0 = vector.load %arg4[%c0, %c0_0] : memref<8x512xf32, #tpu.memory_space<vmem>>, vector<1x512xf32>
    %c1 = arith.constant 1 : index
    %c0_1 = arith.constant 0 : index
    %1 = vector.load %arg4[%c1, %c0_1] : memref<8x512xf32, #tpu.memory_space<vmem>>, vector<1x512xf32>
    %c2 = arith.constant 2 : index
    %c0_2 = arith.constant 0 : index
    %2 = vector.load %arg4[%c2, %c0_2] : memref<8x512xf32, #tpu.memory_space<vmem>>, vector<1x512xf32>
    %c0_3 = arith.constant 0 : index
    %c0_4 = arith.constant 0 : index
    %3 = vector.load %arg6[%c0_3, %c0_4] : memref<1x256xf32, #tpu.memory_space<vmem>>, vector<1x256xf32>
    %c0_5 = arith.constant 0 : index
    %c0_6 = arith.constant 0 : index
    %4 = vector.load %arg2[%c0_5, %c0_6] : memref<16x256xf32, #tpu.memory_space<vmem>>, vector<8x256xf32>
    %5 = math.tanh %4 : vector<8x256xf32>
    %c0_7 = arith.constant 0 : index
    %c0_8 = arith.constant 0 : index
    %6 = vector.load %arg1[%c0_7, %c0_8] : memref<16x256xf32, #tpu.memory_space<vmem>>, vector<8x256xf32>
    %7 = arith.mulf %5, %6 : vector<8x256xf32>
    %8 = arith.truncf %7 : vector<8x256xf32> to vector<8x256xbf16>
    %c0_9 = arith.constant 0 : index
    %c0_10 = arith.constant 0 : index
    %9 = vector.load %arg3[%c0_9, %c0_10] : memref<256x512xbf16, #tpu.memory_space<vmem>>, vector<256x512xbf16>
    %cst = arith.constant dense<0.000000e+00> : vector<8x512xf32>
    %10 = tpu.matmul %8, %9, %cst {dimension_numbers = #tpu.dot_dimension_numbers<[1], [0], [0], [1], [0, 0, 1, 1], [], []>} : vector<8x256xbf16>, vector<256x512xbf16>, vector<8x512xf32> -> vector<8x512xf32>
    %11 = vector.broadcast %0 : vector<1x512xf32> to vector<8x512xf32>
    %12 = arith.addf %10, %11 : vector<8x512xf32>
    %cst_11 = arith.constant dense<0.000000e+00> : vector<8xf32>
    %13 = vector.multi_reduction <add>, %12, %cst_11 [1] : vector<8x512xf32> to vector<8xf32>
    %14 = vector.shape_cast %13 : vector<8xf32> to vector<8x1xf32>
    %cst_12 = arith.constant 5.120000e+02 : f32
    %15 = vector.broadcast %cst_12 : f32 to vector<8x1xf32>
    %16 = arith.divf %14, %15 : vector<8x1xf32>
    %17 = vector.broadcast %16 : vector<8x1xf32> to vector<8x512xf32>
    %18 = arith.subf %12, %17 : vector<8x512xf32>
    %19 = arith.mulf %18, %18 : vector<8x512xf32>
    %cst_13 = arith.constant dense<0.000000e+00> : vector<8xf32>
    %20 = vector.multi_reduction <add>, %19, %cst_13 [1] : vector<8x512xf32> to vector<8xf32>
    %21 = vector.shape_cast %20 : vector<8xf32> to vector<8x1xf32>
    %cst_14 = arith.constant 5.120000e+02 : f32
    %22 = vector.broadcast %cst_14 : f32 to vector<8x1xf32>
    %23 = arith.divf %21, %22 : vector<8x1xf32>
    %cst_15 = arith.constant 9.99999974E-6 : f32
    %24 = vector.broadcast %cst_15 : f32 to vector<8x1xf32>
    %25 = arith.addf %23, %24 : vector<8x1xf32>
    %26 = math.rsqrt %25 : vector<8x1xf32>
    %27 = vector.broadcast %26 : vector<8x1xf32> to vector<8x512xf32>
    %28 = arith.mulf %18, %27 : vector<8x512xf32>
    %29 = vector.broadcast %1 : vector<1x512xf32> to vector<8x512xf32>
    %30 = arith.mulf %28, %29 : vector<8x512xf32>
    %31 = vector.broadcast %2 : vector<1x512xf32> to vector<8x512xf32>
    %32 = arith.addf %30, %31 : vector<8x512xf32>
    %cst_16 = arith.constant 0.000000e+00 : f32
    %33 = vector.broadcast %cst_16 : f32 to vector<8x512xf32>
    %34 = arith.maximumf %32, %33 : vector<8x512xf32>
    %35 = arith.truncf %34 : vector<8x512xf32> to vector<8x512xbf16>
    %c0_17 = arith.constant 0 : index
    %c0_18 = arith.constant 0 : index
    %36 = vector.load %arg5[%c0_17, %c0_18] : memref<512x256xbf16, #tpu.memory_space<vmem>>, vector<512x256xbf16>
    %cst_19 = arith.constant dense<0.000000e+00> : vector<8x256xf32>
    %37 = tpu.matmul %35, %36, %cst_19 {dimension_numbers = #tpu.dot_dimension_numbers<[1], [0], [0], [1], [0, 0, 1, 1], [], []>} : vector<8x512xbf16>, vector<512x256xbf16>, vector<8x256xf32> -> vector<8x256xf32>
    %38 = vector.broadcast %3 : vector<1x256xf32> to vector<8x256xf32>
    %39 = arith.addf %37, %38 : vector<8x256xf32>
    %c0_20 = arith.constant 0 : index
    %c0_21 = arith.constant 0 : index
    %40 = vector.load %arg7[%c0_20, %c0_21] : memref<16x256xf32, #tpu.memory_space<vmem>>, vector<8x256xf32>
    tpu.vector_store %arg7[%c0_20, %c0_21], %39 {strides = array<i32>} : memref<16x256xf32, #tpu.memory_space<vmem>>, vector<8x256xf32>,
    %c8 = arith.constant 8 : index
    %c0_22 = arith.constant 0 : index
    %41 = vector.load %arg2[%c8, %c0_22] : memref<16x256xf32, #tpu.memory_space<vmem>>, vector<8x256xf32>
    %42 = math.tanh %41 : vector<8x256xf32>
    %c8_23 = arith.constant 8 : index
    %c0_24 = arith.constant 0 : index
    %43 = vector.load %arg1[%c8_23, %c0_24] : memref<16x256xf32, #tpu.memory_space<vmem>>, vector<8x256xf32>
    %44 = arith.mulf %42, %43 : vector<8x256xf32>
    %45 = arith.truncf %44 : vector<8x256xf32> to vector<8x256xbf16>
    %c0_25 = arith.constant 0 : index
    %c0_26 = arith.constant 0 : index
    %46 = vector.load %arg3[%c0_25, %c0_26] : memref<256x512xbf16, #tpu.memory_space<vmem>>, vector<256x512xbf16>
    %cst_27 = arith.constant dense<0.000000e+00> : vector<8x512xf32>
    %47 = tpu.matmul %45, %46, %cst_27 {dimension_numbers = #tpu.dot_dimension_numbers<[1], [0], [0], [1], [0, 0, 1, 1], [], []>} : vector<8x256xbf16>, vector<256x512xbf16>, vector<8x512xf32> -> vector<8x512xf32>
    %48 = vector.broadcast %0 : vector<1x512xf32> to vector<8x512xf32>
    %49 = arith.addf %47, %48 : vector<8x512xf32>
    %cst_28 = arith.constant dense<0.000000e+00> : vector<8xf32>
    %50 = vector.multi_reduction <add>, %49, %cst_28 [1] : vector<8x512xf32> to vector<8xf32>
    %51 = vector.shape_cast %50 : vector<8xf32> to vector<8x1xf32>
    %cst_29 = arith.constant 5.120000e+02 : f32
    %52 = vector.broadcast %cst_29 : f32 to vector<8x1xf32>
    %53 = arith.divf %51, %52 : vector<8x1xf32>
    %54 = vector.broadcast %53 : vector<8x1xf32> to vector<8x512xf32>
    %55 = arith.subf %49, %54 : vector<8x512xf32>
    %56 = arith.mulf %55, %55 : vector<8x512xf32>
    %cst_30 = arith.constant dense<0.000000e+00> : vector<8xf32>
    %57 = vector.multi_reduction <add>, %56, %cst_30 [1] : vector<8x512xf32> to vector<8xf32>
    %58 = vector.shape_cast %57 : vector<8xf32> to vector<8x1xf32>
    %cst_31 = arith.constant 5.120000e+02 : f32
    %59 = vector.broadcast %cst_31 : f32 to vector<8x1xf32>
    %60 = arith.divf %58, %59 : vector<8x1xf32>
    %cst_32 = arith.constant 9.99999974E-6 : f32
    %61 = vector.broadcast %cst_32 : f32 to vector<8x1xf32>
    %62 = arith.addf %60, %61 : vector<8x1xf32>
    %63 = math.rsqrt %62 : vector<8x1xf32>
    %64 = vector.broadcast %63 : vector<8x1xf32> to vector<8x512xf32>
    %65 = arith.mulf %55, %64 : vector<8x512xf32>
    %66 = vector.broadcast %1 : vector<1x512xf32> to vector<8x512xf32>
    %67 = arith.mulf %65, %66 : vector<8x512xf32>
    %68 = vector.broadcast %2 : vector<1x512xf32> to vector<8x512xf32>
    %69 = arith.addf %67, %68 : vector<8x512xf32>
    %cst_33 = arith.constant 0.000000e+00 : f32
    %70 = vector.broadcast %cst_33 : f32 to vector<8x512xf32>
    %71 = arith.maximumf %69, %70 : vector<8x512xf32>
    %72 = arith.truncf %71 : vector<8x512xf32> to vector<8x512xbf16>
    %c0_34 = arith.constant 0 : index
    %c0_35 = arith.constant 0 : index
    %73 = vector.load %arg5[%c0_34, %c0_35] : memref<512x256xbf16, #tpu.memory_space<vmem>>, vector<512x256xbf16>
    %cst_36 = arith.constant dense<0.000000e+00> : vector<8x256xf32>
    %74 = tpu.matmul %72, %73, %cst_36 {dimension_numbers = #tpu.dot_dimension_numbers<[1], [0], [0], [1], [0, 0, 1, 1], [], []>} : vector<8x512xbf16>, vector<512x256xbf16>, vector<8x256xf32> -> vector<8x256xf32>
    %75 = vector.broadcast %3 : vector<1x256xf32> to vector<8x256xf32>
    %76 = arith.addf %74, %75 : vector<8x256xf32>
    %c8_37 = arith.constant 8 : index
    %c0_38 = arith.constant 0 : index
    %77 = vector.load %arg7[%c8_37, %c0_38] : memref<16x256xf32, #tpu.memory_space<vmem>>, vector<8x256xf32>
    tpu.vector_store %arg7[%c8_37, %c0_38], %76 {strides = array<i32>} : memref<16x256xf32, #tpu.memory_space<vmem>>, vector<8x256xf32>,
    return
  }
  func.func @transform_0(%arg0: i32) -> (i32, i32) {
    %c0_i32 = arith.constant 0 : i32
    %c0_i32_0 = arith.constant 0 : i32
    return %arg0, %c0_i32 : i32, i32
  }
  func.func @transform_1(%arg0: i32) -> (i32, i32) {
    %c0_i32 = arith.constant 0 : i32
    %c0_i32_0 = arith.constant 0 : i32
    return %arg0, %c0_i32 : i32, i32
  }
  func.func @transform_2(%arg0: i32) -> (i32, i32) {
    %c0_i32 = arith.constant 0 : i32
    %c0_i32_0 = arith.constant 0 : i32
    %c0_i32_1 = arith.constant 0 : i32
    return %c0_i32, %c0_i32_0 : i32, i32
  }
  func.func @transform_3(%arg0: i32) -> (i32, i32) {
    %c0_i32 = arith.constant 0 : i32
    %c0_i32_0 = arith.constant 0 : i32
    %c0_i32_1 = arith.constant 0 : i32
    return %c0_i32, %c0_i32_0 : i32, i32
  }
  func.func @transform_4(%arg0: i32) -> (i32, i32) {
    %c0_i32 = arith.constant 0 : i32
    %c0_i32_0 = arith.constant 0 : i32
    %c0_i32_1 = arith.constant 0 : i32
    return %c0_i32, %c0_i32_0 : i32, i32
  }
  func.func @transform_5(%arg0: i32) -> (i32, i32) {
    %c0_i32 = arith.constant 0 : i32
    %c0_i32_0 = arith.constant 0 : i32
    %c0_i32_1 = arith.constant 0 : i32
    return %c0_i32, %c0_i32_0 : i32, i32
  }
  func.func @transform_6(%arg0: i32) -> (i32, i32) {
    %c0_i32 = arith.constant 0 : i32
    %c0_i32_0 = arith.constant 0 : i32
    return %arg0, %c0_i32 : i32, i32
  }
}

module attributes {stable_mosaic.version = 11 : i64} {
  func.func @_vqa_head_kernel(%arg0: i32, %arg1: memref<16x256xf32, #tpu.memory_space<vmem>>, %arg2: memref<16x256xf32, #tpu.memory_space<vmem>>, %arg3: memref<256x512xbf16, #tpu.memory_space<vmem>>, %arg4: memref<8x512xf32, #tpu.memory_space<vmem>>, %arg5: memref<512x256xbf16, #tpu.memory_space<vmem>>, %arg6: memref<1x256xf32, #tpu.memory_space<vmem>>, %arg7: memref<16x256xf32, #tpu.memory_space<vmem>>) attributes {dimension_semantics = [#tpu.dimension_semantics<parallel>], iteration_bounds = array<i64: 2>, scalar_prefetch = 0 : i64, scratch_operands = 0 : i64, tpu.core_type = #tpu.core_type<tc>, window_params = [{transform_indices = @transform_0, window_bounds = array<i64: 16, 256>}, {transform_indices = @transform_1, window_bounds = array<i64: 16, 256>}, {pipeline_mode = #tpu.pipeline_mode<synchronous>, transform_indices = @transform_2, window_bounds = array<i64: 256, 512>}, {pipeline_mode = #tpu.pipeline_mode<synchronous>, transform_indices = @transform_3, window_bounds = array<i64: 8, 512>}, {pipeline_mode = #tpu.pipeline_mode<synchronous>, transform_indices = @transform_4, window_bounds = array<i64: 512, 256>}, {pipeline_mode = #tpu.pipeline_mode<synchronous>, transform_indices = @transform_5, window_bounds = array<i64: 1, 256>}, {transform_indices = @transform_6, window_bounds = array<i64: 16, 256>}]} {
    %c0 = arith.constant 0 : index
    %c0_0 = arith.constant 0 : index
    %0 = vector.load %arg4[%c0, %c0_0] : memref<8x512xf32, #tpu.memory_space<vmem>>, vector<1x512xf32>
    %c1 = arith.constant 1 : index
    %c0_1 = arith.constant 0 : index
    %1 = vector.load %arg4[%c1, %c0_1] : memref<8x512xf32, #tpu.memory_space<vmem>>, vector<1x512xf32>
    %c2 = arith.constant 2 : index
    %c0_2 = arith.constant 0 : index
    %2 = vector.load %arg4[%c2, %c0_2] : memref<8x512xf32, #tpu.memory_space<vmem>>, vector<1x512xf32>
    %c0_3 = arith.constant 0 : index
    %c0_4 = arith.constant 0 : index
    %3 = vector.load %arg6[%c0_3, %c0_4] : memref<1x256xf32, #tpu.memory_space<vmem>>, vector<1x256xf32>
    %c0_5 = arith.constant 0 : index
    %c0_6 = arith.constant 0 : index
    %4 = vector.load %arg2[%c0_5, %c0_6] : memref<16x256xf32, #tpu.memory_space<vmem>>, vector<8x256xf32>
    %5 = math.tanh %4 : vector<8x256xf32>
    %c0_7 = arith.constant 0 : index
    %c0_8 = arith.constant 0 : index
    %6 = vector.load %arg1[%c0_7, %c0_8] : memref<16x256xf32, #tpu.memory_space<vmem>>, vector<8x256xf32>
    %7 = arith.mulf %5, %6 : vector<8x256xf32>
    %8 = arith.truncf %7 : vector<8x256xf32> to vector<8x256xbf16>
    %c0_9 = arith.constant 0 : index
    %c0_10 = arith.constant 0 : index
    %9 = vector.load %arg3[%c0_9, %c0_10] : memref<256x512xbf16, #tpu.memory_space<vmem>>, vector<256x512xbf16>
    %cst = arith.constant dense<0.000000e+00> : vector<8x512xf32>
    %10 = tpu.matmul %8, %9, %cst {dimension_numbers = #tpu.dot_dimension_numbers<[1], [0], [0], [1], [0, 0, 1, 1], [], []>} : vector<8x256xbf16>, vector<256x512xbf16>, vector<8x512xf32> -> vector<8x512xf32>
    %11 = vector.broadcast %0 : vector<1x512xf32> to vector<8x512xf32>
    %12 = arith.addf %10, %11 : vector<8x512xf32>
    %cst_11 = arith.constant dense<0.000000e+00> : vector<8xf32>
    %13 = vector.multi_reduction <add>, %12, %cst_11 [1] : vector<8x512xf32> to vector<8xf32>
    %14 = vector.shape_cast %13 : vector<8xf32> to vector<8x1xf32>
    %cst_12 = arith.constant 5.120000e+02 : f32
    %15 = vector.broadcast %cst_12 : f32 to vector<8x1xf32>
    %16 = arith.divf %14, %15 : vector<8x1xf32>
    %17 = vector.broadcast %16 : vector<8x1xf32> to vector<8x512xf32>
    %18 = arith.subf %12, %17 : vector<8x512xf32>
    %19 = arith.mulf %18, %18 : vector<8x512xf32>
    %cst_13 = arith.constant dense<0.000000e+00> : vector<8xf32>
    %20 = vector.multi_reduction <add>, %19, %cst_13 [1] : vector<8x512xf32> to vector<8xf32>
    %21 = vector.shape_cast %20 : vector<8xf32> to vector<8x1xf32>
    %cst_14 = arith.constant 5.120000e+02 : f32
    %22 = vector.broadcast %cst_14 : f32 to vector<8x1xf32>
    %23 = arith.divf %21, %22 : vector<8x1xf32>
    %cst_15 = arith.constant 9.99999974E-6 : f32
    %24 = vector.broadcast %cst_15 : f32 to vector<8x1xf32>
    %25 = arith.addf %23, %24 : vector<8x1xf32>
    %26 = math.rsqrt %25 : vector<8x1xf32>
    %27 = vector.broadcast %26 : vector<8x1xf32> to vector<8x512xf32>
    %28 = arith.mulf %18, %27 : vector<8x512xf32>
    %29 = vector.broadcast %1 : vector<1x512xf32> to vector<8x512xf32>
    %30 = arith.mulf %28, %29 : vector<8x512xf32>
    %31 = vector.broadcast %2 : vector<1x512xf32> to vector<8x512xf32>
    %32 = arith.addf %30, %31 : vector<8x512xf32>
    %cst_16 = arith.constant 0.000000e+00 : f32
    %33 = vector.broadcast %cst_16 : f32 to vector<8x512xf32>
    %34 = arith.maximumf %32, %33 : vector<8x512xf32>
    %35 = arith.truncf %34 : vector<8x512xf32> to vector<8x512xbf16>
    %c0_17 = arith.constant 0 : index
    %c0_18 = arith.constant 0 : index
    %36 = vector.load %arg5[%c0_17, %c0_18] : memref<512x256xbf16, #tpu.memory_space<vmem>>, vector<512x256xbf16>
    %cst_19 = arith.constant dense<0.000000e+00> : vector<8x256xf32>
    %37 = tpu.matmul %35, %36, %cst_19 {dimension_numbers = #tpu.dot_dimension_numbers<[1], [0], [0], [1], [0, 0, 1, 1], [], []>} : vector<8x512xbf16>, vector<512x256xbf16>, vector<8x256xf32> -> vector<8x256xf32>
    %38 = vector.broadcast %3 : vector<1x256xf32> to vector<8x256xf32>
    %39 = arith.addf %37, %38 : vector<8x256xf32>
    %c0_20 = arith.constant 0 : index
    %c0_21 = arith.constant 0 : index
    %40 = vector.load %arg7[%c0_20, %c0_21] : memref<16x256xf32, #tpu.memory_space<vmem>>, vector<8x256xf32>
    tpu.vector_store %arg7[%c0_20, %c0_21], %39 {strides = array<i32>} : memref<16x256xf32, #tpu.memory_space<vmem>>, vector<8x256xf32>,
    %c8 = arith.constant 8 : index
    %c0_22 = arith.constant 0 : index
    %41 = vector.load %arg2[%c8, %c0_22] : memref<16x256xf32, #tpu.memory_space<vmem>>, vector<8x256xf32>
    %42 = math.tanh %41 : vector<8x256xf32>
    %c8_23 = arith.constant 8 : index
    %c0_24 = arith.constant 0 : index
    %43 = vector.load %arg1[%c8_23, %c0_24] : memref<16x256xf32, #tpu.memory_space<vmem>>, vector<8x256xf32>
    %44 = arith.mulf %42, %43 : vector<8x256xf32>
    %45 = arith.truncf %44 : vector<8x256xf32> to vector<8x256xbf16>
    %c0_25 = arith.constant 0 : index
    %c0_26 = arith.constant 0 : index
    %46 = vector.load %arg3[%c0_25, %c0_26] : memref<256x512xbf16, #tpu.memory_space<vmem>>, vector<256x512xbf16>
    %cst_27 = arith.constant dense<0.000000e+00> : vector<8x512xf32>
    %47 = tpu.matmul %45, %46, %cst_27 {dimension_numbers = #tpu.dot_dimension_numbers<[1], [0], [0], [1], [0, 0, 1, 1], [], []>} : vector<8x256xbf16>, vector<256x512xbf16>, vector<8x512xf32> -> vector<8x512xf32>
    %48 = vector.broadcast %0 : vector<1x512xf32> to vector<8x512xf32>
    %49 = arith.addf %47, %48 : vector<8x512xf32>
    %cst_28 = arith.constant dense<0.000000e+00> : vector<8xf32>
    %50 = vector.multi_reduction <add>, %49, %cst_28 [1] : vector<8x512xf32> to vector<8xf32>
    %51 = vector.shape_cast %50 : vector<8xf32> to vector<8x1xf32>
    %cst_29 = arith.constant 5.120000e+02 : f32
    %52 = vector.broadcast %cst_29 : f32 to vector<8x1xf32>
    %53 = arith.divf %51, %52 : vector<8x1xf32>
    %54 = vector.broadcast %53 : vector<8x1xf32> to vector<8x512xf32>
    %55 = arith.subf %49, %54 : vector<8x512xf32>
    %56 = arith.mulf %55, %55 : vector<8x512xf32>
    %cst_30 = arith.constant dense<0.000000e+00> : vector<8xf32>
    %57 = vector.multi_reduction <add>, %56, %cst_30 [1] : vector<8x512xf32> to vector<8xf32>
    %58 = vector.shape_cast %57 : vector<8xf32> to vector<8x1xf32>
    %cst_31 = arith.constant 5.120000e+02 : f32
    %59 = vector.broadcast %cst_31 : f32 to vector<8x1xf32>
    %60 = arith.divf %58, %59 : vector<8x1xf32>
    %cst_32 = arith.constant 9.99999974E-6 : f32
    %61 = vector.broadcast %cst_32 : f32 to vector<8x1xf32>
    %62 = arith.addf %60, %61 : vector<8x1xf32>
    %63 = math.rsqrt %62 : vector<8x1xf32>
    %64 = vector.broadcast %63 : vector<8x1xf32> to vector<8x512xf32>
    %65 = arith.mulf %55, %64 : vector<8x512xf32>
    %66 = vector.broadcast %1 : vector<1x512xf32> to vector<8x512xf32>
    %67 = arith.mulf %65, %66 : vector<8x512xf32>
    %68 = vector.broadcast %2 : vector<1x512xf32> to vector<8x512xf32>
    %69 = arith.addf %67, %68 : vector<8x512xf32>
    %cst_33 = arith.constant 0.000000e+00 : f32
    %70 = vector.broadcast %cst_33 : f32 to vector<8x512xf32>
    %71 = arith.maximumf %69, %70 : vector<8x512xf32>
    %72 = arith.truncf %71 : vector<8x512xf32> to vector<8x512xbf16>
    %c0_34 = arith.constant 0 : index
    %c0_35 = arith.constant 0 : index
    %73 = vector.load %arg5[%c0_34, %c0_35] : memref<512x256xbf16, #tpu.memory_space<vmem>>, vector<512x256xbf16>
    %cst_36 = arith.constant dense<0.000000e+00> : vector<8x256xf32>
    %74 = tpu.matmul %72, %73, %cst_36 {dimension_numbers = #tpu.dot_dimension_numbers<[1], [0], [0], [1], [0, 0, 1, 1], [], []>} : vector<8x512xbf16>, vector<512x256xbf16>, vector<8x256xf32> -> vector<8x256xf32>
    %75 = vector.broadcast %3 : vector<1x256xf32> to vector<8x256xf32>
    %76 = arith.addf %74, %75 : vector<8x256xf32>
    %c8_37 = arith.constant 8 : index
    %c0_38 = arith.constant 0 : index
    %77 = vector.load %arg7[%c8_37, %c0_38] : memref<16x256xf32, #tpu.memory_space<vmem>>, vector<8x256xf32>
    tpu.vector_store %arg7[%c8_37, %c0_38], %76 {strides = array<i32>} : memref<16x256xf32, #tpu.memory_space<vmem>>, vector<8x256xf32>,
    return
  }
  func.func @transform_0(%arg0: i32) -> (i32, i32) {
    %c0_i32 = arith.constant 0 : i32
    %c0_i32_0 = arith.constant 0 : i32
    return %arg0, %c0_i32 : i32, i32
  }
  func.func @transform_1(%arg0: i32) -> (i32, i32) {
    %c0_i32 = arith.constant 0 : i32
    %c0_i32_0 = arith.constant 0 : i32
    return %arg0, %c0_i32 : i32, i32
  }
  func.func @transform_2(%arg0: i32) -> (i32, i32) {
    %c0_i32 = arith.constant 0 : i32
    %c0_i32_0 = arith.constant 0 : i32
    %c0_i32_1 = arith.constant 0 : i32
    return %c0_i32, %c0_i32_0 : i32, i32
  }
  func.func @transform_3(%arg0: i32) -> (i32, i32) {
    %c0_i32 = arith.constant 0 : i32
    %c0_i32_0 = arith.constant 0 : i32
    %c0_i32_1 = arith.constant 0 : i32
    return %c0_i32, %c0_i32_0 : i32, i32
  }
  func.func @transform_4(%arg0: i32) -> (i32, i32) {
    %c0_i32 = arith.constant 0 : i32
    %c0_i32_0 = arith.constant 0 : i32
    %c0_i32_1 = arith.constant 0 : i32
    return %c0_i32, %c0_i32_0 : i32, i32
  }
  func.func @transform_5(%arg0: i32) -> (i32, i32) {
    %c0_i32 = arith.constant 0 : i32
    %c0_i32_0 = arith.constant 0 : i32
    %c0_i32_1 = arith.constant 0 : i32
    return %c0_i32, %c0_i32_0 : i32, i32
  }
  func.func @transform_6(%arg0: i32) -> (i32, i32) {
    %c0_i32 = arith.constant 0 : i32
    %c0_i32_0 = arith.constant 0 : i32
    return %arg0, %c0_i32 : i32, i32
  }
}

</mosaic_0001>

<bundles_post_ra>
// kernel: tpu_custom_call.1
= control target key start
LH: loop header
LB: loop body
LE: loop exit
PB: predicated region body
PF: predicated region fallthrough
CT: control target
= control target key end

     0   :  { %s4742_s0 = inlined_call_operand.hbm [shape: f32[32,256], index: 0, kind: input, shape index: {}]   ;;  %s4743_s1 = inlined_call_operand.hbm [shape: f32[32,256], index: 1, kind: input, shape index: {}]   ;;  %s4744_s2 = inlined_call_operand.hbm [shape: bf16[256,512], index: 2, kind: input, shape index: {}]   ;;  %s4745_s3 = inlined_call_operand.hbm [shape: f32[8,512], index: 3, kind: input, shape index: {}]   ;;  %s4746_s4 = inlined_call_operand.hbm [shape: bf16[512,256], index: 4, kind: input, shape index: {}]   ;;  %s4747_s5 = inlined_call_operand.vmem [shape: f32[1,256], index: 5, kind: input, shape index: {}]   ;;  %s4748_s6 = inlined_call_operand.hbm [shape: f32[32,256], index: 6, kind: output, shape index: {}]  }
   0x1   :  { %4753 = sst [smem:[#allocation17_spill]] %s4742_s0 }
   0x2   :  { %4754 = sst [smem:[#allocation18_spill]] %s4744_s2 }
   0x3   :  { %4755 = sst [smem:[#allocation19_spill]] %s4745_s3 }
   0x4   :  { %4756 = sst [smem:[#allocation20_spill]] %s4746_s4 }
   0x5   :  { %11 = vsyncpa [#allocation3], 0 }
   0x6   :  { %13 = vsyncpa [#allocation3 + $0x1], 0 }
   0x7   :  { %14 = vsyncpa [#allocation6], 0 }
   0x8   :  { %16 = vsyncpa [#allocation6 + $0x1], 0 }
   0x9   :  { %17 = vsyncpa [#allocation9], 0 }
   0xa   :  { %18 = vsyncpa [#allocation4], 0 }
   0xb   :  { %20 = vsyncpa [#allocation4 + $0x1], 0  ;;  %s4321_s21 = smov 0   ;;  %s4323_s22 = smov 0  }
   0xc   :  { %s4325_s23 = smov 0   ;;  %s4327_s24 = smov 0  }
   0xd LB: > { %s4342_s25 = sadd.s32 4294967295, %s4274_s24   ;;  %s2630_s26 = sadd.s32 4294967294, %s4274_s24   ;;  %s4274_s24 = sphi %s4327_s24, %s4773_s24   ;;  %s4270_s23 = sphi %s4325_s23, %s4772_s23   ;;  %s4266_s22 = sphi %s4323_s22, %s4771_s22   ;;  %s4262_s21 = sphi %s4321_s21, %s4770_s21  }
   0xe   : > { %p46_p0 = scmp.ne.s32.totalorder %s4266_s22, %s4262_s21  ;;  %p47_p1 = scmp.eq.s32.totalorder %s4342_s25, 0 }
   0xf   : > { %p180_p2 = scmp.eq.s32.totalorder %s4342_s25, 1  ;;  %p186_p3 = scmp.eq.s32.totalorder %s2630_s26, 1 }
  0x10   : > { %p4351_p4 = por %p47_p1, %p46_p0  ;;  %p2631_p5 = scmp.ge.s32.totalorder %s4274_s24, 1 }
  0x11   : > { %p4356_p6 = por %p186_p3, %p46_p0  ;;  %p193_p7 = scmp.lt.s32.totalorder %s4274_s24, 3 }
  0x12   : > { %s4759_s2 = sld [smem:[#allocation18_spill]]  ;;  %s4276_s9 = smov [#allocation7]  }
  0x13   : > { %p4364_p8 = pnand %p2631_p5, %p193_p7  ;;  %s206_s10 = sshll.u32 %s4276_s9, 4  ;;  %s207_s10 = int_to_ptr.vmem [resolvable:$true] %s206_s10 }
  0x14   : > { %s4762_s3 = sld [smem:[#allocation19_spill]]  ;;  %s4749_s15 = smov 256  }
  0x15   : > { %p3961_p9 = pneg %p4364_p8  ;;  %s4751_s16 = smov 16  }
  0x16   : > { %s4279_s17 = smov [#allocation8]   ;;  %s4763_s4 = sld [smem:[#allocation20_spill]] }
  0x17   : > { %p4372_p10 = pnand %p3961_p9, %p47_p1  ;;  %s221_s18 = sshll.u32 %s4279_s17, 4  ;;  %s222_s18 = int_to_ptr.vmem [resolvable:$true] %s221_s18 }
  0x18   : > { %s204_s7 = sshll.u32 %s4759_s2, 4  ;;  %s4280_s29 = smov [#allocation10]   ;;  %s205_s7 = int_to_ptr.hbm [resolvable:$true] %s204_s7 }
  0x19   : > { %3964 = dma.hbm_to_vmem [thread:$0]  (!%p4372_p10), %s205_s7, 8192, %s207_s10, [#allocation6], %s4749_s15, %s4749_s15, %s4751_s16  }
  0x1a   : > { %s219_s14 = sshll.u32 %s4762_s3, 4  ;;  %s232_s30 = sshll.u32 %s4280_s29, 4  ;;  %s220_s14 = int_to_ptr.hbm [resolvable:$true] %s219_s14  ;;  %s233_s30 = int_to_ptr.vmem [resolvable:$true] %s232_s30 }
  0x1b   : > { %3967 = dma.hbm_to_vmem [thread:$0]  (!%p4372_p10), %s220_s14, 512, %s222_s18, [#allocation9]  }
  0x1c   : > { %s230_s26 = sshll.u32 %s4763_s4, 4  ;;  %s4281_s7 = smov 128   ;;  %s231_s26 = int_to_ptr.hbm [resolvable:$true] %s230_s26 }
  0x1d   : > { %s4282_s9 = smov 8   ;;  %s4393_s10 = sadd.s32 1, %s4274_s24  }
  0x1e   : > { %3970 = dma.hbm_to_vmem [thread:$0]  (!%p4372_p10), %s231_s26, 8192, %s233_s30, [#allocation9], %s4281_s7, %s4281_s7, %s4282_s9  }
  0x1f   : > { %s30_s12 = ssub.s32 %s4274_s24, %s4393_s10  ;;  %s33_s13 = sadd.s32 1, %s4270_s23 }
  0x20   : > { %p31_p12 = scmp.eq.s32.totalorder %s30_s12, 0  ;;  %p40_p13 = scmp.ne.s32.totalorder %s4270_s23, %s4266_s22 }
  0x21   : > { %p41_p0 = scmp.eq.s32.totalorder %s4274_s24, 0  ;;  %p3985_p3 = scmp.lt.s32.totalorder %s4274_s24, 2 }
  0x22   : > { %s4403_s14 = scalar_select %p31_p12, %s4270_s23, %s33_s13  }
  0x23   : > { %p42_p5 = por %p41_p0, %p40_p13  ;;  %p4407_p7 = por %p180_p2, %p40_p13 }
  0x24   : > { %s249_s11 = sand.u32 1, %s4270_s23   ;;  %s3682_s18 = sshll.u32 %s4274_s24, 5 }
  0x25   : > { %s2636_s19 = sshll.u32 %s249_s11, 5  ;;  %s4765_s0 = sld [smem:[#allocation17_spill]] }
  0x26   : > { %s253_s7 = scalar_lea.vmem [#allocation2], %s2636_s19  ;;  %p4418_p9 = pnand %p3985_p3, %p42_p5 }
  0x27   : > { %s262_s9 = sshll.u32 %s253_s7, 4  ;;  %s282_s16 = scalar_lea.hbm %s4743_s1, %s3682_s18  ;;  %s263_s9 = int_to_ptr.vmem [resolvable:$true] %s262_s9 }
  0x28   : > { %s276_s2 = scalar_lea.vmem [#allocation5], %s2636_s19  ;;  %s283_s20 = sshll.u32 %s282_s16, 4  ;;  %s284_s20 = int_to_ptr.hbm [resolvable:$true] %s283_s20 }
  0x29   : > { %s4425_s3 = sshll.u32 %s276_s2, 4  ;;  %s250_s26 = scalar_lea.sflag [#allocation3], %s249_s11  ;;  %s286_s3 = int_to_ptr.vmem [resolvable:$true] %s4425_s3 }
  0x2a   : > { %p4140_p10 = pneg %p4418_p9 }
  0x2b   : > { %s259_s29 = scalar_lea.hbm %s4765_s0, %s3682_s18  ;;  %s4143_s13 = scalar_lea.hbm %s4765_s0, 64 }
  0x2c   : > { %s260_s30 = sshll.u32 %s259_s29, 4  ;;  %s261_s30 = int_to_ptr.hbm [resolvable:$true] %s260_s30 }
  0x2d   : > { %s4136_s29 = sshra.s32 %s261_s30, 4  ;;  %s4137_s29 = int_to_ptr.hbm [resolvable:$true] %s4136_s29 }
  0x2e   : > { %s4138_s7 = scalar_lea.hbm %s4137_s29, 32  ;;  %p4144_p0 = scmp.lt.s32.totalorder %s4137_s29, %s4765_s0 }
  0x2f   : > { %p4139_p2 = scmp.ne.s32.totalorder %s4137_s29, %s4138_s7  ;;  %p4145_p3 = scmp.lt.s32.totalorder %s4143_s13, %s4138_s7 }
  0x31   : > { %p4141_p12 = pnand %p4140_p10, %p4139_p2  ;;  %p4146_p5 = por %p4145_p3, %p4144_p0 }
  0x33   : > { %p4142_p13 = pneg %p4141_p12 }
  0x35   : > { %p4147_p11 = pnand %p4146_p5, %p4142_p13 }
  0x37   : > { %4150 = shalt.err (!%p4147_p11)
}
  0x38   : > { %s4767_s2 = smov 16   ;;  %s4768_s16 = smov 256  }
  0x39   : > { %3974 = dma.hbm_to_vmem [thread:$0]  (!%p4418_p9), %s261_s30, 512, %s263_s9, %s250_s26, %s4768_s16, %s4768_s16, %s4767_s2  }
  0x3a   : > { %s272_s4 = sand.u32 1, %s4274_s24   ;;  %s4166_s15 = sshra.s32 %s284_s20, 4  ;;  %s4167_s15 = int_to_ptr.hbm [resolvable:$true] %s4166_s15 }
  0x3b   : > { %s273_s11 = scalar_lea.sflag [#allocation6], %s272_s4  ;;  %s4168_s29 = scalar_lea.hbm %s4167_s15, 32 }
  0x3c   : > { %p4169_p2 = scmp.ne.s32.totalorder %s4167_s15, %s4168_s29  ;;  %s4173_s18 = scalar_lea.hbm %s4743_s1, 64 }
  0x3d   : > { %p4174_p13 = scmp.lt.s32.totalorder %s4167_s15, %s4743_s1  ;;  %p4175_p0 = scmp.lt.s32.totalorder %s4173_s18, %s4168_s29 }
  0x3e   : > { %p4171_p11 = pnand %p4169_p2, %p4140_p10 }
  0x3f   : > { %p4176_p3 = por %p4175_p0, %p4174_p13 }
  0x40   : > { %p4172_p12 = pneg %p4171_p11 }
  0x42   : > { %p4177_p5 = pnand %p4176_p3, %p4172_p12 }
  0x44   : > { %4180 = shalt.err (!%p4177_p5)
}
  0x45   : > { %3977 = dma.hbm_to_vmem [thread:$0]  (!%p4418_p9), %s284_s20, 512, %s286_s3, %s273_s11, %s4768_s16, %s4768_s16, %s4767_s2  }
  0x46   : > { %297 = sbr.rel (%p4364_p8) target bundleno = 1202 (0x4b2), region = 44  ;;  %s4462_s30 = sand.u32 (!%p4364_p8), 1, %s4266_s22  }
  0x47   : > { %s4465_s0 = sshll.u32 (!%p4364_p8), %s4462_s30, 5  ;;  %s300_s9 = scalar_lea.sflag (!%p4364_p8), [#allocation3], %s4462_s30 }
  0x48   : > { %s4469_s26 = scalar_lea.vmem (!%p4364_p8), [#allocation2], %s4465_s0 }
  0x4b   : > { %4241 = dma.done.wait (%p4351_p4), %s300_s9, 512  }
  0x4c   : > { %4243 = vsyncadd (%p4351_p4), %s300_s9, 4294966784  ;;  %s309_s3 = sand.u32 1, %s4342_s25   ;;  %s4477_s12 = scalar_lea.vmem [#allocation5], %s4465_s0 }
  0x4d   : > { %s310_s8 = scalar_lea.sflag [#allocation6], %s309_s3 }
  0x4e   : > { %4245 = dma.done.wait (%p4351_p4), %s310_s8, 512  }
  0x4f   : > { %4247 = vsyncadd (%p4351_p4), %s310_s8, 4294966784 }
  0x50   : > { %4249 = dma.done.wait (%p47_p1), [#allocation6], 8192  }
  0x51   : > { %4251 = vsyncadd (%p47_p1), [#allocation6], 4294959104 }
  0x52   : > { %4253 = dma.done.wait (%p47_p1), [#allocation9], 8704  }
  0x53   : > { %4255 = vsyncadd (%p47_p1), [#allocation9], 4294958592  ;;  %v2765_v0 = vld [vmem:[#allocation7 + $0xe0] sm:$0xf]  ;;  %v3715_v1 = vld [vmem:[#allocation7 + $0xec] sm:$0xf0] }
  0x54   : > { %v2893_v2 = vld [vmem:[#allocation7 + $0x1e0] sm:$0xf]  ;;  %v2766_v3 = vor.u32 %v3715_v1, %v2765_v0  ;;  %v3747_v4 = vld [vmem:[#allocation7 + $0x1ec] sm:$0xf0]  ;;  %v3713_v5 = vld [vmem:[#allocation7 + $0xe4] sm:$0xf] }
  0x55   : > { %v2767_v6 = vld [vmem:[#allocation7 + $0xf0] sm:$0xf0]  ;;  %v2894_v7 = vor.u32 %v3747_v4, %v2893_v2  ;;  %v3745_v9 = vld [vmem:[#allocation7 + $0x1e4] sm:$0xf]  ;;  %v2749_v11 = vld [vmem:[#allocation7 + $0xc0] sm:$0xf] }
  0x56   : > { %v2770_v8 = vor.u32 %v3713_v5, %v2767_v6  ;;  %v2895_v10 = vld [vmem:[#allocation7 + $0x1f0] sm:$0xf0]  ;;  %775 = vmatpush.bf16.msra.mxu0 %v2766_v3  ;;  %v3711_v13 = vld [vmem:[#allocation7 + $0xcc] sm:$0xf0]  ;;  %v2877_v14 = vld [vmem:[#allocation7 + $0x1c0] sm:$0xf] }
  0x57   : > { %v2898_v12 = vor.u32 %v3745_v9, %v2895_v10  ;;  %v3743_v15 = vld [vmem:[#allocation7 + $0x1cc] sm:$0xf0]  ;;  %788 = vmatpush.bf16.msra.mxu1 %v2894_v7  ;;  %v2750_v16 = vor.u32 %v3711_v13, %v2749_v11  ;;  %v3709_v18 = vld [vmem:[#allocation7 + $0xc4] sm:$0xf]  ;;  %v2751_v19 = vld [vmem:[#allocation7 + $0xd0] sm:$0xf0] }
  0x58   : > { %801 = vmatpush.bf16.msra.mxu2 %v2770_v8  ;;  %v2878_v17 = vor.u32 %v3743_v15, %v2877_v14  ;;  %v3741_v20 = vld [vmem:[#allocation7 + $0x1c4] sm:$0xf]  ;;  %v2754_v21 = vor.u32 %v3709_v18, %v2751_v19  ;;  %v2879_v22 = vld [vmem:[#allocation7 + $0x1d0] sm:$0xf0]  ;;  %v2733_v23 = vld [vmem:[#allocation7 + $0xa0] sm:$0xf] }
  0x59   : > { %814 = vmatpush.bf16.msra.mxu3 %v2898_v12  ;;  %v3707_v24 = vld [vmem:[#allocation7 + $0xac] sm:$0xf0]  ;;  %v2882_v25 = vor.u32 %v3741_v20, %v2879_v22  ;;  %v2861_v26 = vld [vmem:[#allocation7 + $0x1a0] sm:$0xf]  ;;  %v3705_v28 = vld [vmem:[#allocation7 + $0xa4] sm:$0xf] }
  0x5a   : > { %v3739_v27 = vld [vmem:[#allocation7 + $0x1ac] sm:$0xf0]  ;;  %776 = vmatpush.bf16.msra.mxu0 %v2750_v16  ;;  %v2734_v29 = vor.u32 %v3707_v24, %v2733_v23  ;;  %v2735_v30 = vld [vmem:[#allocation7 + $0xb0] sm:$0xf0]  ;;  %v3737_v31 = vld [vmem:[#allocation7 + $0x1a4] sm:$0xf] }
  0x5b   : > { %v2863_v32 = vld [vmem:[#allocation7 + $0x1b0] sm:$0xf0]  ;;  %789 = vmatpush.bf16.msra.mxu1 %v2878_v17  ;;  %v2862_v33 = vor.u32 %v3739_v27, %v2861_v26  ;;  %v2738_v34 = vor.u32 %v3705_v28, %v2735_v30  ;;  %v2717_v35 = vld [vmem:[#allocation7 + $0x80] sm:$0xf]  ;;  %v3703_v36 = vld [vmem:[#allocation7 + $0x8c] sm:$0xf0] }
  0x5c   : > { %802 = vmatpush.bf16.msra.mxu2 %v2754_v21  ;;  %v2845_v37 = vld [vmem:[#allocation7 + $0x180] sm:$0xf]  ;;  %v2866_v38 = vor.u32 %v3737_v31, %v2863_v32  ;;  %v3735_v39 = vld [vmem:[#allocation7 + $0x18c] sm:$0xf0]  ;;  %v3701_v40 = vld [vmem:[#allocation7 + $0x84] sm:$0xf]  ;;  %v2718_v44 = vor.u32 %v3703_v36, %v2717_v35 }
  0x5d   : > { %815 = vmatpush.bf16.msra.mxu3 %v2882_v25  ;;  %v2719_v41 = vld [vmem:[#allocation7 + $0x90] sm:$0xf0]  ;;  %v3733_v42 = vld [vmem:[#allocation7 + $0x184] sm:$0xf]  ;;  %v2846_v45 = vor.u32 %v3735_v39, %v2845_v37  ;;  %v2701_v47 = vld [vmem:[#allocation7 + $0x60] sm:$0xf] }
  0x5e   : > { %v2847_v43 = vld [vmem:[#allocation7 + $0x190] sm:$0xf0]  ;;  %777 = vmatpush.bf16.msra.mxu0 %v2734_v29  ;;  %v2722_v46 = vor.u32 %v3701_v40, %v2719_v41  ;;  %v3699_v48 = vld [vmem:[#allocation7 + $0x6c] sm:$0xf0]  ;;  %v2829_v49 = vld [vmem:[#allocation7 + $0x160] sm:$0xf] }
  0x5f   : > { %790 = vmatpush.bf16.msra.mxu1 %v2862_v33  ;;  %v2850_v50 = vor.u32 %v3733_v42, %v2847_v43  ;;  %v3731_v51 = vld [vmem:[#allocation7 + $0x16c] sm:$0xf0]  ;;  %v3697_v52 = vld [vmem:[#allocation7 + $0x64] sm:$0xf]  ;;  %v2703_v53 = vld [vmem:[#allocation7 + $0x70] sm:$0xf0]  ;;  %v2702_v56 = vor.u32 %v3699_v48, %v2701_v47 }
  0x60   : > { %803 = vmatpush.bf16.msra.mxu2 %v2738_v34  ;;  %v3729_v54 = vld [vmem:[#allocation7 + $0x164] sm:$0xf]  ;;  %v2831_v55 = vld [vmem:[#allocation7 + $0x170] sm:$0xf0]  ;;  %v2830_v57 = vor.u32 %v3731_v51, %v2829_v49  ;;  %v2706_v58 = vor.u32 %v3697_v52, %v2703_v53  ;;  %v2685_v59 = vld [vmem:[#allocation7 + $0x40] sm:$0xf] }
  0x61   : > { %816 = vmatpush.bf16.msra.mxu3 %v2866_v38  ;;  %v3695_v60 = vld [vmem:[#allocation7 + $0x4c] sm:$0xf0]  ;;  %v2813_v61 = vld [vmem:[#allocation7 + $0x140] sm:$0xf]  ;;  %v2834_v62 = vor.u32 %v3729_v54, %v2831_v55  ;;  %v3693_v0 = vld [vmem:[#allocation7 + $0x44] sm:$0xf] }
  0x62   : > { %778 = vmatpush.bf16.msra.mxu0 %v2718_v44  ;;  %v3727_v63 = vld [vmem:[#allocation7 + $0x14c] sm:$0xf0]  ;;  %v2687_v1 = vld [vmem:[#allocation7 + $0x50] sm:$0xf0]  ;;  %v3725_v2 = vld [vmem:[#allocation7 + $0x144] sm:$0xf]  ;;  %v2686_v4 = vor.u32 %v3695_v60, %v2685_v59 }
  0x63   : > { %791 = vmatpush.bf16.msra.mxu1 %v2846_v45  ;;  %v2815_v3 = vld [vmem:[#allocation7 + $0x150] sm:$0xf0]  ;;  %v2814_v5 = vor.u32 %v3727_v63, %v2813_v61  ;;  %v2690_v6 = vor.u32 %v3693_v0, %v2687_v1  ;;  %v2669_v7 = vld [vmem:[#allocation7 + $0x20] sm:$0xf]  ;;  %v3691_v8 = vld [vmem:[#allocation7 + $0x2c] sm:$0xf0] }
  0x64   : > { %804 = vmatpush.bf16.msra.mxu2 %v2722_v46  ;;  %v2797_v9 = vld [vmem:[#allocation7 + $0x120] sm:$0xf]  ;;  %v2818_v10 = vor.u32 %v3725_v2, %v2815_v3  ;;  %v3723_v11 = vld [vmem:[#allocation7 + $0x12c] sm:$0xf0]  ;;  %v3689_v12 = vld [vmem:[#allocation7 + $0x24] sm:$0xf]  ;;  %v2670_v16 = vor.u32 %v3691_v8, %v2669_v7 }
  0x65   : > { %817 = vmatpush.bf16.msra.mxu3 %v2850_v50  ;;  %v2671_v13 = vld [vmem:[#allocation7 + $0x30] sm:$0xf0]  ;;  %v3721_v14 = vld [vmem:[#allocation7 + $0x124] sm:$0xf]  ;;  %v2653_v17 = vld [vmem:[#allocation7] sm:$0xf]  ;;  %v2798_v20 = vor.u32 %v3723_v11, %v2797_v9 }
  0x66   : > { %779 = vmatpush.bf16.msra.mxu0 %v2702_v56  ;;  %v2799_v15 = vld [vmem:[#allocation7 + $0x130] sm:$0xf0]  ;;  %v3687_v18 = vld [vmem:[#allocation7 + $0xc] sm:$0xf0]  ;;  %v2781_v19 = vld [vmem:[#allocation7 + $0x100] sm:$0xf]  ;;  %v2674_v21 = vor.u32 %v3689_v12, %v2671_v13 }
  0x67   : > { %792 = vmatpush.bf16.msra.mxu1 %v2830_v57  ;;  %v3719_v22 = vld [vmem:[#allocation7 + $0x10c] sm:$0xf0]  ;;  %v3685_v23 = vld [vmem:[#allocation7 + $0x4] sm:$0xf]  ;;  %v2655_v24 = vld [vmem:[#allocation7 + $0x10] sm:$0xf0]  ;;  %v2802_v25 = vor.u32 %v3721_v14, %v2799_v15  ;;  %v2654_v32 = vor.u32 %v3687_v18, %v2653_v17 }
  0x68   : > { %805 = vmatpush.bf16.msra.mxu2 %v2706_v58  ;;  %v3717_v26 = vld [vmem:[#allocation7 + $0x104] sm:$0xf]  ;;  %v2783_v27 = vld [vmem:[#allocation7 + $0x110] sm:$0xf0]  ;;  %v2773_v28 = vld [vmem:[#allocation7 + $0xe8] sm:$0xf]  ;;  %v2782_v36 = vor.u32 %v3719_v22, %v2781_v19  ;;  %v2658_v37 = vor.u32 %v3685_v23, %v2655_v24 }
  0x69   : > { %818 = vmatpush.bf16.msra.mxu3 %v2834_v62  ;;  %v3716_v29 = vld [vmem:[#allocation7 + $0xf4] sm:$0xf0]  ;;  %v2901_v30 = vld [vmem:[#allocation7 + $0x1e8] sm:$0xf]  ;;  %v372_v31 = vld [vmem:[%s4477_s12] sm:$0xff]  ;;  %v2786_v40 = vor.u32 %v3717_v26, %v2783_v27  ;;  %s4637_s2 = scalar_lea.vmem [#allocation11], %s4465_s0 }
  0x6a   : > { %780 = vmatpush.bf16.msra.mxu0 %v2686_v4  ;;  %v3748_v33 = vld [vmem:[#allocation7 + $0x1f4] sm:$0xf0]  ;;  %v3714_v34 = vld [vmem:[#allocation7 + $0xec] sm:$0xf]  ;;  %v2775_v35 = vld [vmem:[#allocation7 + $0xf8] sm:$0xf0]  ;;  %4032 = vtanh.f32 %v372_v31  ;;  %v2774_v41 = vor.u32 %v3716_v29, %v2773_v28 }
  0x6b   : > { %793 = vmatpush.bf16.msra.mxu1 %v2814_v5  ;;  %v3746_v38 = vld [vmem:[#allocation7 + $0x1ec] sm:$0xf]  ;;  %v2903_v39 = vld [vmem:[#allocation7 + $0x1f8] sm:$0xf0]  ;;  %v2757_v42 = vld [vmem:[#allocation7 + $0xc8] sm:$0xf]  ;;  %v2902_v44 = vor.u32 %v3748_v33, %v2901_v30  ;;  %v2778_v45 = vor.u32 %v3714_v34, %v2775_v35 }
  0x6c   : > { %806 = vmatpush.bf16.msra.mxu2 %v2690_v6  ;;  %v3712_v43 = vld [vmem:[#allocation7 + $0xd4] sm:$0xf0]  ;;  %v2885_v46 = vld [vmem:[#allocation7 + $0x1c8] sm:$0xf]  ;;  %v2906_v49 = vor.u32 %v3746_v38, %v2903_v39  ;;  %v3710_v50 = vld [vmem:[#allocation7 + $0xcc] sm:$0xf] }
  0x6d   : > { %819 = vmatpush.bf16.msra.mxu3 %v2818_v10  ;;  %v3744_v47 = vld [vmem:[#allocation7 + $0x1d4] sm:$0xf0]  ;;  %v373_v48 = vld [vmem:[%s4477_s12 + $0x8] sm:$0xff]  ;;  %v2759_v51 = vld [vmem:[#allocation7 + $0xd8] sm:$0xf0]  ;;  %v2758_v56 = vor.u32 %v3712_v43, %v2757_v42  ;;  %s3942_s16 = sshll.u32 %s4342_s25, 5 }
  0x6e   : > { %781 = vmatpush.bf16.msra.mxu0 %v2670_v16  ;;  %v376_v52 = vld [vmem:[%s4469_s26] sm:$0xff]  ;;  %4034 = vtanh.f32 %v373_v48  ;;  %v3742_v53 = vld [vmem:[#allocation7 + $0x1cc] sm:$0xf]  ;;  %v2887_v54 = vld [vmem:[#allocation7 + $0x1d8] sm:$0xf0]  ;;  %v2886_v58 = vor.u32 %v3744_v47, %v2885_v46  ;;  %v2762_v59 = vor.u32 %v3710_v50, %v2759_v51  ;;  %s2502_s15 = scalar_lea.hbm %s4748_s6, %s3942_s16  ;;  %s2503_s29 = sshll.u32 %s4637_s2, 4  ;;  %s2504_s29 = int_to_ptr.vmem [resolvable:$true] %s2503_s29 }
  0x6f   : > { %794 = vmatpush.bf16.msra.mxu1 %v2798_v20  ;;  %v2741_v57 = vld [vmem:[#allocation7 + $0xa8] sm:$0xf]  ;;  %v3708_v61 = vld [vmem:[#allocation7 + $0xb4] sm:$0xf0]  ;;  %v2890_v0 = vor.u32 %v3742_v53, %v2887_v54  ;;  %v3706_v1 = vld [vmem:[#allocation7 + $0xac] sm:$0xf] }
  0x70   : > { %807 = vmatpush.bf16.msra.mxu2 %v2674_v21  ;;  %v4033_v55 = vpop.eup %4032  ;;  %v2869_v62 = vld [vmem:[#allocation7 + $0x1a8] sm:$0xf]  ;;  %v3740_v63 = vld [vmem:[#allocation7 + $0x1b4] sm:$0xf0]  ;;  %v2743_v2 = vld [vmem:[#allocation7 + $0xb8] sm:$0xf0]  ;;  %v2742_v8 = vor.u32 %v3708_v61, %v2741_v57 }
  0x71   : > { %820 = vmatpush.bf16.msra.mxu3 %v2802_v25  ;;  %v378_v60 = vmul.f32 %v4033_v55, %v376_v52  ;;  %v377_v3 = vld [vmem:[%s4469_s26 + $0x8] sm:$0xff]  ;;  %v2871_v6 = vld [vmem:[#allocation7 + $0x1b8] sm:$0xf0]  ;;  %v2870_v9 = vor.u32 %v3740_v63, %v2869_v62  ;;  %v2746_v10 = vor.u32 %v3706_v1, %v2743_v2  ;;  %v3704_v13 = vld [vmem:[#allocation7 + $0x94] sm:$0xf0]  ;;  %s2505_s7 = sshll.u32 %s2502_s15, 4  ;;  %s2506_s7 = int_to_ptr.hbm [resolvable:$true] %s2505_s7 }
  0x72   : > { %782 = vmatpush.bf16.msra.mxu0 %v2654_v32  ;;  %v3738_v5 = vld [vmem:[#allocation7 + $0x1ac] sm:$0xf]  ;;  %v2725_v12 = vld [vmem:[#allocation7 + $0x88] sm:$0xf]  ;;  %v3736_v16 = vld [vmem:[#allocation7 + $0x194] sm:$0xf0] }
  0x73   : > { %795 = vmatpush.bf16.msra.mxu1 %v2782_v36  ;;  %v4495_v4 = vpack.c.bf16 %v378_v60, %v378_v60  ;;  %v2853_v14 = vld [vmem:[#allocation7 + $0x188] sm:$0xf]  ;;  %v2874_v15 = vor.u32 %v3738_v5, %v2871_v6  ;;  %v3702_v17 = vld [vmem:[#allocation7 + $0x8c] sm:$0xf]  ;;  %v2727_v18 = vld [vmem:[#allocation7 + $0x98] sm:$0xf0]  ;;  %v2726_v22 = vor.u32 %v3704_v13, %v2725_v12 }
  0x74   : > { %808 = vmatpush.bf16.msra.mxu2 %v2658_v37  ;;  %v4035_v7 = vpop.eup %4034  ;;  %v3734_v20 = vld [vmem:[#allocation7 + $0x18c] sm:$0xf]  ;;  %v2855_v21 = vld [vmem:[#allocation7 + $0x198] sm:$0xf0]  ;;  %v2854_v23 = vor.u32 %v3736_v16, %v2853_v14  ;;  %v2730_v24 = vor.u32 %v3702_v17, %v2727_v18  ;;  %v2709_v25 = vld [vmem:[#allocation7 + $0x68] sm:$0xf] }
  0x75   : > { %821 = vmatpush.bf16.msra.mxu3 %v2786_v40  ;;  %v379_v11 = vmul.f32 %v4035_v7, %v377_v3  ;;  %783 = vmatmul.bf16.vlgmr.msra.gmra.mxu0 %v4495_v4  ;;  %v3700_v26 = vld [vmem:[#allocation7 + $0x74] sm:$0xf0]  ;;  %v2837_v27 = vld [vmem:[#allocation7 + $0x168] sm:$0xf]  ;;  %v2858_v28 = vor.u32 %v3734_v20, %v2855_v21  ;;  %v3698_v30 = vld [vmem:[#allocation7 + $0x6c] sm:$0xf] }
  0x76   : > { %827 = vmatpush.bf16.msrb.mxu0 %v2774_v41  ;;  %v3732_v29 = vld [vmem:[#allocation7 + $0x174] sm:$0xf0]  ;;  %v2711_v31 = vld [vmem:[#allocation7 + $0x78] sm:$0xf0]  ;;  %v3730_v32 = vld [vmem:[#allocation7 + $0x16c] sm:$0xf]  ;;  %v2710_v34 = vor.u32 %v3700_v26, %v2709_v25 }
  0x77   : > { %840 = vmatpush.bf16.msrb.mxu1 %v2902_v44  ;;  %809 = vmatmul.bf16.vlgmr.msra.gmra.mxu2 %v4495_v4  ;;  %v4498_v19 = vpack.c.bf16 %v379_v11, %v379_v11  ;;  %v2839_v33 = vld [vmem:[#allocation7 + $0x178] sm:$0xf0]  ;;  %v2838_v35 = vor.u32 %v3732_v29, %v2837_v27  ;;  %v2714_v36 = vor.u32 %v3698_v30, %v2711_v31  ;;  %v2693_v37 = vld [vmem:[#allocation7 + $0x48] sm:$0xf]  ;;  %v3696_v38 = vld [vmem:[#allocation7 + $0x54] sm:$0xf0] }
  0x78   : > { %853 = vmatpush.bf16.msrb.mxu2 %v2778_v45  ;;  %v2821_v39 = vld [vmem:[#allocation7 + $0x148] sm:$0xf]  ;;  %v2842_v40 = vor.u32 %v3730_v32, %v2839_v33  ;;  %v3728_v41 = vld [vmem:[#allocation7 + $0x154] sm:$0xf0]  ;;  %v3694_v42 = vld [vmem:[#allocation7 + $0x4c] sm:$0xf]  ;;  %v2694_v46 = vor.u32 %v3696_v38, %v2693_v37 }
  0x79   : > { %866 = vmatpush.bf16.msrb.mxu3 %v2906_v49  ;;  %796 = vmatmul.bf16.vlgmr.msra.gmra.mxu1 %v4498_v19  ;;  %v2695_v43 = vld [vmem:[#allocation7 + $0x58] sm:$0xf0]  ;;  %v3726_v44 = vld [vmem:[#allocation7 + $0x14c] sm:$0xf]  ;;  %v2822_v47 = vor.u32 %v3728_v41, %v2821_v39  ;;  %v2677_v49 = vld [vmem:[#allocation7 + $0x28] sm:$0xf] }
  0x7a   : > { %828 = vmatpush.bf16.msrb.mxu0 %v2758_v56  ;;  %822 = vmatmul.bf16.vlgmr.msra.gmra.mxu3 %v4498_v19  ;;  %v2823_v45 = vld [vmem:[#allocation7 + $0x158] sm:$0xf0]  ;;  %v2698_v48 = vor.u32 %v3694_v42, %v2695_v43  ;;  %v3692_v50 = vld [vmem:[#allocation7 + $0x34] sm:$0xf0]  ;;  %v2805_v51 = vld [vmem:[#allocation7 + $0x128] sm:$0xf] }
  0x7b   : > { %841 = vmatpush.bf16.msrb.mxu1 %v2886_v58  ;;  %v2826_v52 = vor.u32 %v3726_v44, %v2823_v45  ;;  %v3724_v53 = vld [vmem:[#allocation7 + $0x134] sm:$0xf0]  ;;  %v3690_v54 = vld [vmem:[#allocation7 + $0x2c] sm:$0xf]  ;;  %v2679_v55 = vld [vmem:[#allocation7 + $0x38] sm:$0xf0]  ;;  %v2678_v58 = vor.u32 %v3692_v50, %v2677_v49 }
  0x7c   : > { %854 = vmatpush.bf16.msrb.mxu2 %v2762_v59  ;;  %v3722_v56 = vld [vmem:[#allocation7 + $0x12c] sm:$0xf]  ;;  %v2807_v57 = vld [vmem:[#allocation7 + $0x138] sm:$0xf0]  ;;  %v2806_v59 = vor.u32 %v3724_v53, %v2805_v51  ;;  %v2682_v60 = vor.u32 %v3690_v54, %v2679_v55  ;;  %v2661_v61 = vld [vmem:[#allocation7 + $0x8] sm:$0xf] }
  0x7d   : > { %867 = vmatpush.bf16.msrb.mxu3 %v2890_v0  ;;  %v3688_v62 = vld [vmem:[#allocation7 + $0x14] sm:$0xf0]  ;;  %v2789_v63 = vld [vmem:[#allocation7 + $0x108] sm:$0xf]  ;;  %v2810_v0 = vor.u32 %v3722_v56, %v2807_v57  ;;  %v3686_v2 = vld [vmem:[#allocation7 + $0xc] sm:$0xf] }
  0x7e   : > { %829 = vmatpush.bf16.msrb.mxu0 %v2742_v8  ;;  %v3720_v1 = vld [vmem:[#allocation7 + $0x114] sm:$0xf0]  ;;  %v2663_v3 = vld [vmem:[#allocation7 + $0x18] sm:$0xf0]  ;;  %v3718_v5 = vld [vmem:[#allocation7 + $0x10c] sm:$0xf]  ;;  %v2662_v7 = vor.u32 %v3688_v62, %v2661_v61 }
  0x7f   : > { %842 = vmatpush.bf16.msrb.mxu1 %v2870_v9  ;;  %v2791_v6 = vld [vmem:[#allocation7 + $0x118] sm:$0xf0]  ;;  %v2790_v8 = vor.u32 %v3720_v1, %v2789_v63  ;;  %v2666_v9 = vor.u32 %v3686_v2, %v2663_v3  ;;  %v4507_v18 = vld [vmem:[#allocation8] ss:$8 sm:$0xf]  ;;  %v4283_v42 = vmov 512.0  }
  0x80   : > { %855 = vmatpush.bf16.msrb.mxu2 %v2746_v10  ;;  %v2794_v10 = vor.u32 %v3718_v5, %v2791_v6  ;;  %v447_v21 = vperm.slane %v4507_v18, 0  ;;  %v450_v29 = vperm.slane %v4507_v18, 3  ;;  %4036 = vrcp.f32 %v4283_v42  ;;  %v3780_v50 = vld [vmem:[#allocation10 + $0xf4] sm:$0xf0]  ;;  %v3093_v51 = vld [vmem:[#allocation10 + $0x170] sm:$0xf] }
  0x81   : > { %868 = vmatpush.bf16.msrb.mxu3 %v2874_v15  ;;  %v3157_v55 = vld [vmem:[#allocation10 + $0x1f0] sm:$0xf]  ;;  %v3812_v56 = vld [vmem:[#allocation10 + $0x1f4] sm:$0xf0]  ;;  %v2957_v57 = vld [vmem:[#allocation10 + $0x60] sm:$0xf] }
  0x82   : > { %830 = vmatpush.bf16.msrb.mxu0 %v2726_v22  ;;  %v448_v22 = vperm.slane %v4507_v18, 1  ;;  %v3778_v61 = vld [vmem:[#allocation10 + $0xe4] sm:$0xf0]  ;;  %v3149_v2 = vld [vmem:[#allocation10 + $0x1e0] sm:$0xf]  ;;  %s2490_s25 = scalar_lea.sflag [#allocation4], %s4462_s30 }
  0x83   : > { %843 = vmatpush.bf16.msrb.mxu1 %v2854_v23  ;;  %v449_v23 = vperm.slane %v4507_v18, 2  ;;  %v3794_v1 = vld [vmem:[#allocation10 + $0x164] sm:$0xf0]  ;;  %v2949_v6 = vld [vmem:[#allocation10 + $0x50] sm:$0xf]  ;;  %s4210_s13 = sshra.s32 %s2506_s7, 4  ;;  %s4211_s13 = int_to_ptr.hbm [resolvable:$true] %s4210_s13 }
  0x84   : > { %856 = vmatpush.bf16.msrb.mxu2 %v2730_v24  ;;  %v3810_v5 = vld [vmem:[#allocation10 + $0x1e4] sm:$0xf0]  ;;  %v3669_v18 = vld [vmem:[#allocation10 + $0x1f0] sm:$0xf]  ;;  %s4212_s18 = scalar_lea.hbm %s4211_s13, 32  ;;  %s4216_s9 = scalar_lea.hbm %s4748_s6, 64 }
  0x85   : > { %869 = vmatpush.bf16.msrb.mxu3 %v2858_v28  ;;  %p4213_p1 = scmp.ne.s32.totalorder %s4211_s13, %s4212_s18  ;;  %p4217_p9 = scmp.lt.s32.totalorder %s4211_s13, %s4748_s6 }
  0x86   : > { %831 = vmatpush.bf16.msrb.mxu0 %v2710_v34  ;;  %v4533_v43 = vpop.eup %4036  ;;  %p4218_p10 = scmp.lt.s32.totalorder %s4216_s9, %s4212_s18 }
  0x87   : > { %844 = vmatpush.bf16.msrb.mxu1 %v2838_v35  ;;  %v885_v44 = vmul.f32 512.0, %v4533_v43  ;;  %vm889_vm0 = vweird.f32 %v4533_v43  ;;  %p4214_p4 = pnand %p4213_p1, %p4407_p7 }
  0x88   : > { %857 = vmatpush.bf16.msrb.mxu2 %v2714_v36  ;;  %p4219_p2 = por %p4218_p10, %p4217_p9 }
  0x89   : > { %870 = vmatpush.bf16.msrb.mxu3 %v2842_v40  ;;  %v886_v45 = vsub.f32 1.0, %v885_v44  ;;  %p4215_p8 = pneg %p4214_p4 }
  0x8a   : > { %832 = vmatpush.bf16.msrb.mxu0 %v2694_v46  ;;  %v2965_v46 = vld [vmem:[#allocation10 + $0x70] sm:$0xf] }
  0x8b   : > { %845 = vmatpush.bf16.msrb.mxu1 %v2822_v47  ;;  %v3764_v47 = vld [vmem:[#allocation10 + $0x74] sm:$0xf0]  ;;  %p4220_p11 = pnand %p4219_p2, %p4215_p8 }
  0x8c   : > { %858 = vmatpush.bf16.msrb.mxu2 %v2698_v48  ;;  %v3029_v48 = vld [vmem:[#allocation10 + $0xf0] sm:$0xf]  ;;  %v2966_v49 = vor.u32 %v3764_v47, %v2965_v46  ;;  %v3788_v47 = vld [vmem:[#allocation10 + $0x134] sm:$0xf0] }
  0x8d   : > { %871 = vmatpush.bf16.msrb.mxu3 %v2826_v52  ;;  %v3796_v52 = vld [vmem:[#allocation10 + $0x174] sm:$0xf0]  ;;  %v3030_v53 = vor.u32 %v3780_v50, %v3029_v48  ;;  %v3061_v46 = vld [vmem:[#allocation10 + $0x130] sm:$0xf] }
  0x8e   : > { %833 = vmatpush.bf16.msrb.mxu0 %v2678_v58  ;;  %v3094_v54 = vor.u32 %v3796_v52, %v3093_v51  ;;  %v3158_v58 = vor.u32 %v3812_v56, %v3157_v55  ;;  %v3125_v48 = vld [vmem:[#allocation10 + $0x1b0] sm:$0xf]  ;;  %v3062_v52 = vor.u32 %v3788_v47, %v3061_v46  ;;  %v2967_v46 = vld [vmem:[#allocation10 + $0x78] sm:$0xf0]  ;;  %v3779_v47 = vld [vmem:[#allocation10 + $0xf4] sm:$0xf] }
  0x8f   : > { %846 = vmatpush.bf16.msrb.mxu1 %v2806_v59  ;;  %v3762_v59 = vld [vmem:[#allocation10 + $0x64] sm:$0xf0] }
  0x90   : > { %859 = vmatpush.bf16.msrb.mxu2 %v2682_v60  ;;  %v3021_v60 = vld [vmem:[#allocation10 + $0xe0] sm:$0xf]  ;;  %v2958_v62 = vor.u32 %v3762_v59, %v2957_v57 }
  0x91   : > { %872 = vmatpush.bf16.msrb.mxu3 %v2810_v0  ;;  %v3022_v63 = vor.u32 %v3778_v61, %v3021_v60  ;;  %v3085_v0 = vld [vmem:[#allocation10 + $0x160] sm:$0xf]  ;;  %v3786_v60 = vld [vmem:[#allocation10 + $0x124] sm:$0xf0] }
  0x92   : > { %834 = vmatpush.bf16.msrb.mxu0 %v2662_v7  ;;  %v3086_v3 = vor.u32 %v3794_v1, %v3085_v0  ;;  %v3760_v7 = vld [vmem:[#allocation10 + $0x54] sm:$0xf0]  ;;  %v2989_v57 = vld [vmem:[#allocation10 + $0xa0] sm:$0xf] }
  0x93   : > { %847 = vmatpush.bf16.msrb.mxu1 %v2790_v8  ;;  %v3150_v8 = vor.u32 %v3810_v5, %v3149_v2  ;;  %v3053_v59 = vld [vmem:[#allocation10 + $0x120] sm:$0xf]  ;;  %v3752_v5 = vld [vmem:[#allocation10 + $0x14] sm:$0xf0] }
  0x94   : > { %860 = vmatpush.bf16.msrb.mxu2 %v2666_v9  ;;  %v3013_v9 = vld [vmem:[#allocation10 + $0xd0] sm:$0xf]  ;;  %v3117_v61 = vld [vmem:[#allocation10 + $0x1a0] sm:$0xf] }
  0x95   : > { %873 = vmatpush.bf16.msrb.mxu3 %v2794_v10  ;;  %835 = vmatmul.bf16.vlgmr.msrb.gmra.mxu0 %v4495_v4  ;;  %v3776_v10 = vld [vmem:[#allocation10 + $0xd4] sm:$0xf0] }
  0x96   : > { %848 = vmatmul.bf16.vlgmr.msrb.gmra.mxu1 %v4498_v19  ;;  %1344 = vmatpush.bf16.msra.mxu0 %v2966_v49  ;;  %v3804_v49 = vld [vmem:[#allocation10 + $0x1b4] sm:$0xf0] }
  0x97   : > { %861 = vmatmul.bf16.vlgmr.msrb.gmra.mxu2 %v4495_v4  ;;  %1357 = vmatpush.bf16.msra.mxu1 %v3030_v53  ;;  %v2925_v53 = vld [vmem:[#allocation10 + $0x20] sm:$0xf]  ;;  %v3126_v56 = vor.u32 %v3804_v49, %v3125_v48  ;;  %v3031_v48 = vld [vmem:[#allocation10 + $0xf8] sm:$0xf0] }
  0x98   : > { %874 = vmatmul.bf16.vlgmr.msrb.gmra.mxu3 %v4498_v19  ;;  %1370 = vmatpush.bf16.msra.mxu2 %v3094_v54  ;;  %v3754_v54 = vld [vmem:[#allocation10 + $0x24] sm:$0xf0] }
  0x99   : > { %1383 = vmatpush.bf16.msra.mxu3 %v3158_v58  ;;  %v3770_v58 = vld [vmem:[#allocation10 + $0xa4] sm:$0xf0]  ;;  %v2926_v0 = vor.u32 %v3754_v54, %v2925_v53  ;;  %v3811_v53 = vld [vmem:[#allocation10 + $0x1f4] sm:$0xf] }
  0x9a   : > { %1345 = vmatpush.bf16.msra.mxu0 %v2958_v62  ;;  %v3802_v62 = vld [vmem:[#allocation10 + $0x1a4] sm:$0xf0]  ;;  %v2990_v2 = vor.u32 %v3770_v58, %v2989_v57  ;;  %v3761_v57 = vld [vmem:[#allocation10 + $0x64] sm:$0xf]  ;;  %v2959_v58 = vld [vmem:[#allocation10 + $0x68] sm:$0xf0] }
  0x9b   : > { %1358 = vmatpush.bf16.msra.mxu1 %v3022_v63 }
  0x9c   : > { %1371 = vmatpush.bf16.msra.mxu2 %v3086_v3  ;;  %v2917_v3 = vld [vmem:[#allocation10 + $0x10] sm:$0xf] }
  0x9d   : > { %1384 = vmatpush.bf16.msra.mxu3 %v3150_v8  ;;  %v3768_v8 = vld [vmem:[#allocation10 + $0x94] sm:$0xf0] }
  0xf2   : > { %v784_v11 = vpop.f32.mrf.mxu0 }
  0xf3   : > { %v785_v4 = vadd.f32 %v784_v11, %v447_v21  ;;  %v3077_v11 = vld [vmem:[#allocation10 + $0x150] sm:$0xf] }
  0xf6   : > { %v797_v12 = vpop.f32.mrf.mxu1 }
  0xf7   : > { %v4518_v27 = vadd.f32 %v797_v12, %v785_v4  ;;  %v2950_v12 = vor.u32 %v3760_v7, %v2949_v6  ;;  %v3758_v4 = vld [vmem:[#allocation10 + $0x44] sm:$0xf0]  ;;  %v3118_v6 = vor.u32 %v3802_v62, %v3117_v61  ;;  %v2981_v7 = vld [vmem:[#allocation10 + $0x90] sm:$0xf]  ;;  %v3777_v61 = vld [vmem:[#allocation10 + $0xe4] sm:$0xf] }
  0xf8   : > { %v3023_v62 = vld [vmem:[#allocation10 + $0xe8] sm:$0xf0] }
  0xf9   : > { %1346 = vmatpush.bf16.msra.mxu0 %v2950_v12 }
  0xfa   : > { %v810_v13 = vpop.f32.mrf.mxu2  ;;  %v786_v14 = vpop.f32.mrf.mxu0 }
  0xfb   : > { %v811_v19 = vadd.f32 %v810_v13, %v448_v22  ;;  %v3792_v13 = vld [vmem:[#allocation10 + $0x154] sm:$0xf0]  ;;  %v3141_v14 = vld [vmem:[#allocation10 + $0x1d0] sm:$0xf] }
  0xfd   : > { %v823_v15 = vpop.f32.mrf.mxu3 }
  0xfe   : > { %v799_v16 = vpop.f32.mrf.mxu1  ;;  %v4520_v28 = vadd.f32 %v823_v15, %v811_v19  ;;  %v3808_v15 = vld [vmem:[#allocation10 + $0x1d4] sm:$0xf0]  ;;  %v3005_v19 = vld [vmem:[#allocation10 + $0xc0] sm:$0xf] }
  0xff   : > { %v3014_v16 = vor.u32 %v3776_v10, %v3013_v9  ;;  %v3045_v9 = vld [vmem:[#allocation10 + $0x110] sm:$0xf] }
 0x100   : > { %v879_v32 = vadd.f32 %v4520_v28, %v4518_v27 }
 0x101   : > { %1359 = vmatpush.bf16.msra.mxu1 %v3014_v16  ;;  %v2918_v16 = vor.u32 %v3752_v5, %v2917_v3  ;;  %v3151_v3 = vld [vmem:[#allocation10 + $0x1e8] sm:$0xf0] }
 0x102   : > { %v812_v17 = vpop.f32.mrf.mxu2 }
 0x103   : > { %v3078_v17 = vor.u32 %v3792_v13, %v3077_v11  ;;  %v3784_v13 = vld [vmem:[#allocation10 + $0x114] sm:$0xf0] }
 0x105   : > { %v825_v20 = vpop.f32.mrf.mxu3  ;;  %1372 = vmatpush.bf16.msra.mxu2 %v3078_v17 }
 0x106   : > { %v2941_v20 = vld [vmem:[#allocation10 + $0x40] sm:$0xf] }
 0x112   : > { %v836_v24 = vpop.f32.mrf.mxu0 }
 0x113   : > { %v849_v25 = vpop.f32.mrf.mxu1  ;;  %v837_v26 = vadd.f32 %v836_v24, %v449_v23  ;;  %v887_v24 = vmul.f32 %v4533_v43, %v886_v45  ;;  %v3772_v45 = vld [vmem:[#allocation10 + $0xb4] sm:$0xf0] }
 0x115   : > { %v4523_v30 = vadd.f32 %v849_v25, %v837_v26  ;;  %v3142_v25 = vor.u32 %v3808_v15, %v3141_v14  ;;  %v3774_v26 = vld [vmem:[#allocation10 + $0xc4] sm:$0xf0]  ;;  %v888_v42 = vadd.f32 %v4533_v43, %v887_v24  ;;  %v3109_v14 = vld [vmem:[#allocation10 + $0x190] sm:$0xf]  ;;  %v3800_v15 = vld [vmem:[#allocation10 + $0x194] sm:$0xf0] }
 0x117   : > { %v880_v38 = vadd.f32 %v879_v32, %v4523_v30  ;;  %v3790_v32 = vld [vmem:[#allocation10 + $0x144] sm:$0xf0]  ;;  %1385 = vmatpush.bf16.msra.mxu3 %v3142_v25  ;;  %v4540_v55 = vsel %vm889_vm0, %v4533_v43, %v888_v42  ;;  %v3054_v43 = vor.u32 %v3786_v60, %v3053_v59  ;;  %v2962_v60 = vor.u32 %v3761_v57, %v2959_v58  ;;  %v3785_v57 = vld [vmem:[#allocation10 + $0x124] sm:$0xf]  ;;  %v3055_v58 = vld [vmem:[#allocation10 + $0x128] sm:$0xf0] }
 0x118   : > { %v3798_v42 = vld [vmem:[#allocation10 + $0x184] sm:$0xf0] }
 0x11a   : > { %v862_v31 = vpop.f32.mrf.mxu2  ;;  %v838_v35 = vpop.f32.mrf.mxu0 }
 0x11b   : > { %v863_v33 = vadd.f32 %v862_v31, %v450_v29  ;;  %v875_v34 = vpop.f32.mrf.mxu3  ;;  %v851_v36 = vpop.f32.mrf.mxu1  ;;  %v3069_v31 = vld [vmem:[#allocation10 + $0x140] sm:$0xf]  ;;  %v2942_v35 = vor.u32 %v3758_v4, %v2941_v20  ;;  %v3110_v4 = vor.u32 %v3800_v15, %v3109_v14  ;;  %v3791_v14 = vld [vmem:[#allocation10 + $0x154] sm:$0xf]  ;;  %v3079_v15 = vld [vmem:[#allocation10 + $0x158] sm:$0xf0] }
 0x11c   : > { %v3006_v36 = vor.u32 %v3774_v26, %v3005_v19 }
 0x11d   : > { %v4529_v37 = vadd.f32 %v875_v34, %v863_v33  ;;  %v3133_v33 = vld [vmem:[#allocation10 + $0x1c0] sm:$0xf]  ;;  %v3806_v34 = vld [vmem:[#allocation10 + $0x1c4] sm:$0xf0]  ;;  %1347 = vmatpush.bf16.msra.mxu0 %v2942_v35 }
 0x11e   : > { %v3134_v44 = vor.u32 %v3806_v34, %v3133_v33  ;;  %1360 = vmatpush.bf16.msra.mxu1 %v3006_v36  ;;  %v2973_v33 = vld [vmem:[#allocation10 + $0x80] sm:$0xf]  ;;  %v3766_v35 = vld [vmem:[#allocation10 + $0x84] sm:$0xf0] }
 0x11f   : > { %v881_v39 = vadd.f32 %v880_v38, %v4529_v37  ;;  %v3070_v38 = vor.u32 %v3790_v32, %v3069_v31  ;;  %v2909_v31 = vld [vmem:[#allocation10] sm:$0xf]  ;;  %v3750_v32 = vld [vmem:[#allocation10 + $0x4] sm:$0xf0] }
 0x120   : > { %1386 = vmatpush.bf16.msra.mxu3 %v3134_v44  ;;  %v2910_v34 = vor.u32 %v3750_v32, %v2909_v31  ;;  %v3037_v36 = vld [vmem:[#allocation10 + $0x100] sm:$0xf]  ;;  %v3763_v44 = vld [vmem:[#allocation10 + $0x74] sm:$0xf]  ;;  %v3071_v31 = vld [vmem:[#allocation10 + $0x148] sm:$0xf0] }
 0x121   : > { %882 = vadd.xlane.f32.xlu0 %v881_v39  ;;  %v2933_v39 = vld [vmem:[#allocation10 + $0x30] sm:$0xf]  ;;  %1373 = vmatpush.bf16.msra.mxu2 %v3070_v38  ;;  %v3782_v38 = vld [vmem:[#allocation10 + $0x104] sm:$0xf0]  ;;  %v2970_v49 = vor.u32 %v3763_v44, %v2967_v46  ;;  %v3787_v44 = vld [vmem:[#allocation10 + $0x134] sm:$0xf] }
 0x122   : > { %v864_v40 = vpop.f32.mrf.mxu2 }
 0x123   : > { %v877_v41 = vpop.f32.mrf.mxu3  ;;  %v3756_v40 = vld [vmem:[#allocation10 + $0x34] sm:$0xf0] }
 0x124   : > { %v2997_v41 = vld [vmem:[#allocation10 + $0xb0] sm:$0xf]  ;;  %v2934_v50 = vor.u32 %v3756_v40, %v2933_v39  ;;  %1387 = vmatpush.bf16.msra.mxu3 %v3126_v56  ;;  %v2974_v39 = vor.u32 %v3766_v35, %v2973_v33  ;;  %v3038_v40 = vor.u32 %v3782_v38, %v3037_v36  ;;  %v3159_v56 = vld [vmem:[#allocation10 + $0x1f8] sm:$0xf0]  ;;  %v3135_v35 = vld [vmem:[#allocation10 + $0x1c8] sm:$0xf0] }
 0x125   : > { %v2998_v51 = vor.u32 %v3772_v45, %v2997_v41  ;;  %1374 = vmatpush.bf16.msra.mxu2 %v3062_v52  ;;  %v3101_v41 = vld [vmem:[#allocation10 + $0x180] sm:$0xf]  ;;  %v3095_v52 = vld [vmem:[#allocation10 + $0x178] sm:$0xf0]  ;;  %v3162_v59 = vor.u32 %v3811_v53, %v3159_v56  ;;  %v3755_v38 = vld [vmem:[#allocation10 + $0x34] sm:$0xf] }
 0x126   : > { %1348 = vmatpush.bf16.msra.mxu0 %v2934_v50  ;;  %v3102_v45 = vor.u32 %v3798_v42, %v3101_v41  ;;  %v3034_v50 = vor.u32 %v3779_v47, %v3031_v48  ;;  %v2999_v42 = vld [vmem:[#allocation10 + $0xb8] sm:$0xf0]  ;;  %v3803_v48 = vld [vmem:[#allocation10 + $0x1b4] sm:$0xf]  ;;  %v3769_v53 = vld [vmem:[#allocation10 + $0xa4] sm:$0xf] }
 0x127   : > { %1361 = vmatpush.bf16.msra.mxu1 %v2998_v51  ;;  %v3795_v51 = vld [vmem:[#allocation10 + $0x174] sm:$0xf]  ;;  %v2991_v56 = vld [vmem:[#allocation10 + $0xa8] sm:$0xf0] }
 0x128   : > { %1388 = vmatpush.bf16.msra.mxu3 %v3118_v6  ;;  %v3098_v54 = vor.u32 %v3795_v51, %v3095_v52  ;;  %v3759_v6 = vld [vmem:[#allocation10 + $0x54] sm:$0xf]  ;;  %v3753_v51 = vld [vmem:[#allocation10 + $0x24] sm:$0xf]  ;;  %v2927_v52 = vld [vmem:[#allocation10 + $0x28] sm:$0xf0] }
 0x129   : > { %1375 = vmatpush.bf16.msra.mxu2 %v3054_v43 }
 0x12a   : > { %1349 = vmatpush.bf16.msra.mxu0 %v2926_v0  ;;  %v3026_v0 = vor.u32 %v3777_v61, %v3023_v62  ;;  %v3801_v61 = vld [vmem:[#allocation10 + $0x1a4] sm:$0xf]  ;;  %v3119_v62 = vld [vmem:[#allocation10 + $0x1a8] sm:$0xf0] }
 0x12b   : > { %1362 = vmatpush.bf16.msra.mxu1 %v2990_v2  ;;  %v3809_v2 = vld [vmem:[#allocation10 + $0x1e4] sm:$0xf] }
 0x12c   : > { %1389 = vmatpush.bf16.msra.mxu3 %v3110_v4  ;;  %v3154_v43 = vor.u32 %v3809_v2, %v3151_v3  ;;  %v3757_v4 = vld [vmem:[#allocation10 + $0x44] sm:$0xf]  ;;  %v3767_v2 = vld [vmem:[#allocation10 + $0x94] sm:$0xf]  ;;  %v2983_v3 = vld [vmem:[#allocation10 + $0x98] sm:$0xf0] }
 0x12e   : > { %1350 = vmatpush.bf16.msra.mxu0 %v2918_v16 }
 0x130   : > { %1390 = vmatpush.bf16.msra.mxu3 %v3102_v45  ;;  %v3063_v45 = vld [vmem:[#allocation10 + $0x138] sm:$0xf0] }
 0x131   : > { %v3066_v47 = vor.u32 %v3787_v44, %v3063_v45 }
 0x132   : > { %1351 = vmatpush.bf16.msra.mxu0 %v2910_v34  ;;  %v3805_v34 = vld [vmem:[#allocation10 + $0x1c4] sm:$0xf] }
 0x133   : > { %v3138_v36 = vor.u32 %v3805_v34, %v3135_v35 }
 0x134   : > { %1435 = vmatpush.bf16.msrb.mxu3 %v3162_v59  ;;  %v2994_v59 = vor.u32 %v3769_v53, %v2991_v56 }
 0x136   : > { %1396 = vmatpush.bf16.msrb.mxu0 %v2970_v49  ;;  %v3127_v49 = vld [vmem:[#allocation10 + $0x1b8] sm:$0xf0] }
 0x138   : > { %1436 = vmatpush.bf16.msrb.mxu3 %v3154_v43  ;;  %v3047_v43 = vld [vmem:[#allocation10 + $0x118] sm:$0xf0] }
 0x13a   : > { %1397 = vmatpush.bf16.msrb.mxu0 %v2962_v60  ;;  %v3058_v60 = vor.u32 %v3785_v57, %v3055_v58 }
 0x194   : > { %v883_v63 = vpop.xlane.xlu0 %882 }
 0x195   : > { %v891_v1 = vmul.f32 %v4540_v55, %v883_v63  ;;  %v3793_v63 = vld [vmem:[#allocation10 + $0x164] sm:$0xf] }
 0x197   : > { %v4544_v10 = vsub.f32 %v4518_v27, %v891_v1  ;;  %v4547_v11 = vsub.f32 %v4520_v28, %v891_v1  ;;  %v4550_v12 = vsub.f32 %v4523_v30, %v891_v1  ;;  %v4553_v17 = vsub.f32 %v4529_v37, %v891_v1  ;;  %v3087_v1 = vld [vmem:[#allocation10 + $0x168] sm:$0xf0] }
 0x198   : > { %v2982_v28 = vor.u32 %v3768_v8, %v2981_v7  ;;  %v3046_v30 = vor.u32 %v3784_v13, %v3045_v9  ;;  %v3090_v5 = vor.u32 %v3793_v63, %v3087_v1  ;;  %v2951_v7 = vld [vmem:[#allocation10 + $0x58] sm:$0xf0]  ;;  %v3775_v8 = vld [vmem:[#allocation10 + $0xd4] sm:$0xf] }
 0x199   : > { %v896_v20 = vmul.f32 %v4544_v10, %v4544_v10  ;;  %v897_v27 = vmul.f32 %v4547_v11, %v4547_v11  ;;  %v898_v19 = vmul.f32 %v4550_v12, %v4550_v12  ;;  %v899_v37 = vmul.f32 %v4553_v17, %v4553_v17  ;;  %v3015_v13 = vld [vmem:[#allocation10 + $0xd8] sm:$0xf0]  ;;  %v3751_v63 = vld [vmem:[#allocation10 + $0x14] sm:$0xf] }
 0x19a   : > { %1363 = vmatpush.bf16.msra.mxu1 %v2982_v28  ;;  %1376 = vmatpush.bf16.msra.mxu2 %v3046_v30  ;;  %v2954_v9 = vor.u32 %v3759_v6, %v2951_v7  ;;  %v3018_v16 = vor.u32 %v3775_v8, %v3015_v13  ;;  %v3143_v28 = vld [vmem:[#allocation10 + $0x1d8] sm:$0xf0]  ;;  %v3799_v6 = vld [vmem:[#allocation10 + $0x194] sm:$0xf]  ;;  %v2986_v8 = vor.u32 %v3767_v2, %v2983_v3  ;;  %v3749_v13 = vld [vmem:[#allocation10 + $0x4] sm:$0xf] }
 0x19b   : > { %v900_v24 = vadd.f32 %v897_v27, %v896_v20  ;;  %v3082_v20 = vor.u32 %v3791_v14, %v3079_v15  ;;  %v3807_v27 = vld [vmem:[#allocation10 + $0x1d4] sm:$0xf]  ;;  %v2919_v1 = vld [vmem:[#allocation10 + $0x18] sm:$0xf0]  ;;  %v2911_v15 = vld [vmem:[#allocation10 + $0x8] sm:$0xf0] }
 0x19c   : > { %v3146_v30 = vor.u32 %v3807_v27, %v3143_v28  ;;  %1398 = vmatpush.bf16.msrb.mxu0 %v2954_v9  ;;  %v2922_v7 = vor.u32 %v3751_v63, %v2919_v1  ;;  %v3111_v9 = vld [vmem:[#allocation10 + $0x198] sm:$0xf0]  ;;  %v3781_v28 = vld [vmem:[#allocation10 + $0x104] sm:$0xf]  ;;  %v3843_v63 = vld [vmem:[#allocation7 + $0xec] sm:$0xf0] }
 0x19d   : > { %v901_v25 = vadd.f32 %v900_v24, %v898_v19  ;;  %v2943_v19 = vld [vmem:[#allocation10 + $0x48] sm:$0xf0]  ;;  %v3773_v24 = vld [vmem:[#allocation10 + $0xc4] sm:$0xf]  ;;  %v3114_v27 = vor.u32 %v3799_v6, %v3111_v9  ;;  %v3875_v1 = vld [vmem:[#allocation7 + $0x1ec] sm:$0xf0] }
 0x19e   : > { %1364 = vmatpush.bf16.msra.mxu1 %v2974_v39  ;;  %1377 = vmatpush.bf16.msra.mxu2 %v3038_v40  ;;  %v2935_v39 = vld [vmem:[#allocation10 + $0x38] sm:$0xf0]  ;;  %v3771_v40 = vld [vmem:[#allocation10 + $0xb4] sm:$0xf]  ;;  %v3841_v2 = vld [vmem:[#allocation7 + $0xe4] sm:$0xf] }
 0x19f   : > { %v902_v26 = vadd.f32 %v901_v25, %v899_v37  ;;  %v2946_v37 = vor.u32 %v3757_v4, %v2943_v19  ;;  %v3007_v25 = vld [vmem:[#allocation10 + $0xc8] sm:$0xf0]  ;;  %1437 = vmatpush.bf16.msrb.mxu3 %v3146_v30  ;;  %v2938_v41 = vor.u32 %v3755_v38, %v2935_v39  ;;  %v3002_v46 = vor.u32 %v3771_v40, %v2999_v42  ;;  %v3797_v4 = vld [vmem:[#allocation10 + $0x184] sm:$0xf]  ;;  %v3279_v3 = vld [vmem:[#allocation7 + $0xf0] sm:$0xf0] }
 0x1a0   : > { %v3010_v32 = vor.u32 %v3773_v24, %v3007_v25  ;;  %v3039_v30 = vld [vmem:[#allocation10 + $0x108] sm:$0xf0]  ;;  %v2914_v24 = vor.u32 %v3749_v13, %v2911_v15  ;;  %v4564_v39 = vld [vmem:[#allocation8 + $0x1] ss:$8 sm:$0xf] }
 0x1a1   : > { %903 = vadd.xlane.f32.xlu0 %v902_v26  ;;  %v3789_v26 = vld [vmem:[#allocation10 + $0x144] sm:$0xf]  ;;  %1399 = vmatpush.bf16.msrb.mxu0 %v2946_v37  ;;  %v3103_v19 = vld [vmem:[#allocation10 + $0x188] sm:$0xf0]  ;;  %v922_v44 = vperm.slane %v4564_v39, 0 }
 0x1a2   : > { %1409 = vmatpush.bf16.msrb.mxu1 %v3034_v50  ;;  %1422 = vmatpush.bf16.msrb.mxu2 %v3098_v54  ;;  %v3074_v33 = vor.u32 %v3789_v26, %v3071_v31  ;;  %v3130_v50 = vor.u32 %v3803_v48, %v3127_v49  ;;  %v2930_v54 = vor.u32 %v3753_v51, %v2927_v52  ;;  %v925_v48 = vperm.slane %v4564_v39, 3  ;;  %v3407_v9 = vld [vmem:[#allocation7 + $0x1f0] sm:$0xf0] }
 0x1a3   : > { %1438 = vmatpush.bf16.msrb.mxu3 %v3138_v36  ;;  %v3042_v26 = vor.u32 %v3781_v28, %v3039_v30  ;;  %v3261_v28 = vld [vmem:[#allocation7 + $0xc0] sm:$0xf]  ;;  %v3839_v30 = vld [vmem:[#allocation7 + $0xcc] sm:$0xf0] }
 0x1a5   : > { %1400 = vmatpush.bf16.msrb.mxu0 %v2938_v41  ;;  %v4566_v41 = vld [vmem:[#allocation8 + $0x2] ss:$8 sm:$0xf] }
 0x1a6   : > { %1410 = vmatpush.bf16.msrb.mxu1 %v3026_v0  ;;  %1423 = vmatpush.bf16.msrb.mxu2 %v3090_v5  ;;  %v3122_v0 = vor.u32 %v3801_v61, %v3119_v62  ;;  %v3783_v5 = vld [vmem:[#allocation10 + $0x114] sm:$0xf]  ;;  %v935_v45 = vperm.slane %v4566_v41, 0  ;;  %v937_v51 = vperm.slane %v4566_v41, 2  ;;  %v938_v52 = vperm.slane %v4566_v41, 3 }
 0x1a7   : > { %1439 = vmatpush.bf16.msrb.mxu3 %v3130_v50  ;;  %v3050_v14 = vor.u32 %v3783_v5, %v3047_v43  ;;  %v936_v50 = vperm.slane %v4566_v41, 1  ;;  %v3277_v62 = vld [vmem:[#allocation7 + $0xe0] sm:$0xf]  ;;  %v3873_v5 = vld [vmem:[#allocation7 + $0x1e4] sm:$0xf] }
 0x1a8   : > { %v3278_v13 = vor.u32 %v3843_v63, %v3277_v62  ;;  %v3231_v63 = vld [vmem:[#allocation7 + $0x90] sm:$0xf0] }
 0x1a9   : > { %1401 = vmatpush.bf16.msrb.mxu0 %v2930_v54 }
 0x1aa   : > { %1411 = vmatpush.bf16.msrb.mxu1 %v3018_v16  ;;  %1424 = vmatpush.bf16.msrb.mxu2 %v3082_v20  ;;  %v3765_v16 = vld [vmem:[#allocation10 + $0x84] sm:$0xf]  ;;  %v2975_v20 = vld [vmem:[#allocation10 + $0x88] sm:$0xf0] }
 0x1ab   : > { %1440 = vmatpush.bf16.msrb.mxu3 %v3122_v0  ;;  %v2978_v37 = vor.u32 %v3765_v16, %v2975_v20  ;;  %v3405_v0 = vld [vmem:[#allocation7 + $0x1e0] sm:$0xf] }
 0x1ad   : > { %1402 = vmatpush.bf16.msrb.mxu0 %v2922_v7 }
 0x1ae   : > { %1412 = vmatpush.bf16.msrb.mxu1 %v3010_v32  ;;  %1425 = vmatpush.bf16.msrb.mxu2 %v3074_v33  ;;  %v3106_v32 = vor.u32 %v3797_v4, %v3103_v19  ;;  %v3282_v4 = vor.u32 %v3841_v2, %v3279_v3  ;;  %v3410_v19 = vor.u32 %v3873_v5, %v3407_v9  ;;  %v3213_v5 = vld [vmem:[#allocation7 + $0x60] sm:$0xf]  ;;  %v3859_v9 = vld [vmem:[#allocation7 + $0x16c] sm:$0xf0] }
 0x1af   : > { %1441 = vmatpush.bf16.msrb.mxu3 %v3114_v27 }
 0x1b1   : > { %1403 = vmatpush.bf16.msrb.mxu0 %v2914_v24  ;;  %v3389_v24 = vld [vmem:[#allocation7 + $0x1c0] sm:$0xf] }
 0x1b2   : > { %1413 = vmatpush.bf16.msrb.mxu1 %v3002_v46  ;;  %1426 = vmatpush.bf16.msrb.mxu2 %v3066_v47  ;;  %v923_v46 = vperm.slane %v4564_v39, 1  ;;  %v924_v47 = vperm.slane %v4564_v39, 2 }
 0x1b3   : > { %1442 = vmatpush.bf16.msrb.mxu3 %v3106_v32  ;;  %v3391_v32 = vld [vmem:[#allocation7 + $0x1d0] sm:$0xf0] }
 0x1b6   : > { %1414 = vmatpush.bf16.msrb.mxu1 %v2994_v59  ;;  %1427 = vmatpush.bf16.msrb.mxu2 %v3058_v60 }
 0x1ba   : > { %1415 = vmatpush.bf16.msrb.mxu1 %v2986_v8  ;;  %1428 = vmatpush.bf16.msrb.mxu2 %v3050_v14  ;;  %v3406_v14 = vor.u32 %v3875_v1, %v3405_v0  ;;  %v3861_v0 = vld [vmem:[#allocation7 + $0x184] sm:$0xf]  ;;  %v3359_v1 = vld [vmem:[#allocation7 + $0x190] sm:$0xf0] }
 0x1be   : > { %1416 = vmatpush.bf16.msrb.mxu1 %v2978_v37  ;;  %1429 = vmatpush.bf16.msrb.mxu2 %v3042_v26  ;;  %v3871_v37 = vld [vmem:[#allocation7 + $0x1cc] sm:$0xf0]  ;;  %v3263_v26 = vld [vmem:[#allocation7 + $0xd0] sm:$0xf0] }
 0x214   : > { %v904_v25 = vpop.xlane.xlu0 %903 }
 0x215   : > { %v905_v31 = vmul.f32 %v904_v25, %v4540_v55  ;;  %v3837_v25 = vld [vmem:[#allocation7 + $0xc4] sm:$0xf] }
 0x217   : > { %v906_v33 = vadd.f32 1e-05, %v905_v31  ;;  %v3869_v31 = vld [vmem:[#allocation7 + $0x1c4] sm:$0xf] }
 0x219   : > { %4038 = vrsqrt.f32 %v906_v33  ;;  %vm913_vm2 = vweird.f32 %v906_v33 }
 0x21f   : > { %v4039_v34 = vpop.eup %4038 }
 0x220   : > { %v908_v35 = vmul.f32 %v4039_v34, %v906_v33  ;;  %vm914_vm1 = vweird.f32 %v4039_v34  ;;  %v3262_v33 = vor.u32 %v3839_v30, %v3261_v28  ;;  %v3857_v28 = vld [vmem:[#allocation7 + $0x164] sm:$0xf]  ;;  %v3343_v30 = vld [vmem:[#allocation7 + $0x170] sm:$0xf0] }
 0x221   : > { %vm915_vm3 = vmor %vm913_vm2, %vm914_vm1 }
 0x222   : > { %v909_v36 = vmul.f32 %v4039_v34, %v908_v35  ;;  %v3245_v35 = vld [vmem:[#allocation7 + $0xa0] sm:$0xf] }
 0x224   : > { %v910_v38 = vmul.f32 0.5, %v909_v36  ;;  %v3835_v36 = vld [vmem:[#allocation7 + $0xac] sm:$0xf0] }
 0x226   : > { %v911_v40 = vsub.f32 1.5, %v910_v38  ;;  %v3266_v38 = vor.u32 %v3837_v25, %v3263_v26  ;;  %v3823_v25 = vld [vmem:[#allocation7 + $0x4c] sm:$0xf0]  ;;  %v1451_v26 = vld [vmem:[%s4477_s12 + $0x18] sm:$0xff] }
 0x228   : > { %v912_v42 = vmul.f32 %v4039_v34, %v911_v40  ;;  %v3394_v40 = vor.u32 %v3869_v31, %v3391_v32  ;;  %v3346_v32 = vor.u32 %v3857_v28, %v3343_v30  ;;  %v3876_v28 = vld [vmem:[#allocation7 + $0x1f4] sm:$0xf0]  ;;  %v3842_v30 = vld [vmem:[#allocation7 + $0xec] sm:$0xf] }
 0x22a   : > { %v916_v49 = vsel %vm915_vm3, %v4039_v34, %v912_v42  ;;  %v3390_v34 = vor.u32 %v3871_v37, %v3389_v24  ;;  %v3373_v42 = vld [vmem:[#allocation7 + $0x1a0] sm:$0xf] }
 0x22b   : > { %v917_v53 = vmul.f32 %v916_v49, %v4544_v10  ;;  %v918_v54 = vmul.f32 %v916_v49, %v4547_v11  ;;  %v919_v56 = vmul.f32 %v916_v49, %v4550_v12  ;;  %v920_v57 = vmul.f32 %v916_v49, %v4553_v17  ;;  %v3867_v49 = vld [vmem:[#allocation7 + $0x1ac] sm:$0xf0]  ;;  %v3197_v37 = vld [vmem:[#allocation7 + $0x40] sm:$0xf] }
 0x22d   : > { %v930_v58 = vmul.f32 %v922_v44, %v917_v53  ;;  %v931_v59 = vmul.f32 %v923_v46, %v918_v54  ;;  %v932_v60 = vmul.f32 %v924_v47, %v919_v56  ;;  %v933_v61 = vmul.f32 %v925_v48, %v920_v57  ;;  %v3833_v53 = vld [vmem:[#allocation7 + $0xa4] sm:$0xf]  ;;  %v3247_v54 = vld [vmem:[#allocation7 + $0xb0] sm:$0xf0] }
 0x22e   : > { %v3865_v56 = vld [vmem:[#allocation7 + $0x1a4] sm:$0xf]  ;;  %v3375_v57 = vld [vmem:[#allocation7 + $0x1b0] sm:$0xf0]  ;;  %v3250_v62 = vor.u32 %v3833_v53, %v3247_v54  ;;  %v3181_v53 = vld [vmem:[#allocation7 + $0x20] sm:$0xf] }
 0x22f   : > { %v943_v10 = vadd.f32 %v935_v45, %v930_v58  ;;  %v944_v11 = vadd.f32 %v936_v50, %v931_v59  ;;  %v945_v12 = vadd.f32 %v937_v51, %v932_v60  ;;  %v946_v17 = vadd.f32 %v938_v52, %v933_v61  ;;  %v3229_v60 = vld [vmem:[#allocation7 + $0x80] sm:$0xf]  ;;  %v3831_v61 = vld [vmem:[#allocation7 + $0x8c] sm:$0xf0] }
 0x230   : > { %v3246_v58 = vor.u32 %v3835_v36, %v3245_v35  ;;  %v3374_v59 = vor.u32 %v3867_v49, %v3373_v42  ;;  %v3230_v2 = vor.u32 %v3831_v61, %v3229_v60  ;;  %v3821_v35 = vld [vmem:[#allocation7 + $0x44] sm:$0xf]  ;;  %v3199_v36 = vld [vmem:[#allocation7 + $0x50] sm:$0xf0]  ;;  %v3198_v42 = vor.u32 %v3823_v25, %v3197_v37  ;;  %v3819_v54 = vld [vmem:[#allocation7 + $0x2c] sm:$0xf0] }
 0x231   : > { %v947_v43 = vmax.f32 %v943_v10, 0.0  ;;  %v948_v6 = vmax.f32 %v944_v11, 0.0  ;;  %v949_v7 = vmax.f32 %v945_v12, 0.0  ;;  %v950_v8 = vmax.f32 %v946_v17, 0.0  ;;  %v3357_v11 = vld [vmem:[#allocation7 + $0x180] sm:$0xf] }
 0x232   : > { %v3378_v10 = vor.u32 %v3865_v56, %v3375_v57  ;;  %v3863_v12 = vld [vmem:[#allocation7 + $0x18c] sm:$0xf0]  ;;  %v3829_v17 = vld [vmem:[#allocation7 + $0x84] sm:$0xf]  ;;  %v3311_v61 = vld [vmem:[#allocation7 + $0x130] sm:$0xf0] }
 0x233   : > { %v4596_v15 = vpack.c.bf16 %v947_v43, %v947_v43  ;;  %v4598_v16 = vpack.c.bf16 %v948_v6, %v948_v6  ;;  %v4600_v20 = vpack.c.bf16 %v949_v7, %v949_v7  ;;  %v4602_v27 = vpack.c.bf16 %v950_v8, %v950_v8  ;;  %v3827_v43 = vld [vmem:[#allocation7 + $0x6c] sm:$0xf0]  ;;  %v3341_v8 = vld [vmem:[#allocation7 + $0x160] sm:$0xf]  ;;  %v3849_v60 = vld [vmem:[#allocation7 + $0x124] sm:$0xf] }
 0x234   : > { %v3358_v3 = vor.u32 %v3863_v12, %v3357_v11  ;;  %v3234_v6 = vor.u32 %v3829_v17, %v3231_v63  ;;  %v3362_v7 = vor.u32 %v3861_v0, %v3359_v1  ;;  %v3342_v24 = vor.u32 %v3859_v9, %v3341_v8  ;;  %v3851_v57 = vld [vmem:[#allocation7 + $0x12c] sm:$0xf0]  ;;  %v3813_v63 = vld [vmem:[#allocation7 + $0x4] sm:$0xf]  ;;  %v3167_v0 = vld [vmem:[#allocation7 + $0x10] sm:$0xf0] }
 0x235   : > { %1352 = vmatmul.bf16.vlgmr.msra.gmra.mxu0 %v4596_v15  ;;  %1365 = vmatmul.bf16.vlgmr.msra.gmra.mxu1 %v4598_v16  ;;  %v3182_v11 = vor.u32 %v3819_v54, %v3181_v53  ;;  %v3847_v17 = vld [vmem:[#allocation7 + $0x10c] sm:$0xf0]  ;;  %v3285_v8 = vld [vmem:[#allocation7 + $0xe8] sm:$0xf]  ;;  %v3844_v9 = vld [vmem:[#allocation7 + $0xf4] sm:$0xf0] }
 0x236   : > { %1378 = vmatmul.bf16.vlgmr.msra.gmra.mxu2 %v4600_v20  ;;  %1391 = vmatmul.bf16.vlgmr.msra.gmra.mxu3 %v4602_v27  ;;  %v3415_v37 = vld [vmem:[#allocation7 + $0x1f8] sm:$0xf0]  ;;  %v3838_v53 = vld [vmem:[#allocation7 + $0xcc] sm:$0xf] }
 0x237   : > { %1844 = vmatpush.bf16.msra.mxu0 %v3278_v13  ;;  %1857 = vmatpush.bf16.msra.mxu1 %v3406_v14  ;;  %v3825_v13 = vld [vmem:[#allocation7 + $0x64] sm:$0xf]  ;;  %v3215_v14 = vld [vmem:[#allocation7 + $0x70] sm:$0xf0]  ;;  %v3271_v54 = vld [vmem:[#allocation7 + $0xd8] sm:$0xf0] }
 0x238   : > { %1870 = vmatpush.bf16.msra.mxu2 %v3282_v4  ;;  %1883 = vmatpush.bf16.msra.mxu3 %v3410_v19  ;;  %v1450_v4 = vld [vmem:[%s4477_s12 + $0x10] sm:$0xff]  ;;  %v3214_v19 = vor.u32 %v3827_v43, %v3213_v5  ;;  %v3218_v31 = vor.u32 %v3825_v13, %v3215_v14  ;;  %v3845_v5 = vld [vmem:[#allocation7 + $0x104] sm:$0xf]  ;;  %v3413_v14 = vld [vmem:[#allocation7 + $0x1e8] sm:$0xf] }
 0x239   : > { %4040 = vtanh.f32 %v1450_v4  ;;  %v1454_v43 = vld [vmem:[%s4469_s26 + $0x10] sm:$0xff] }
 0x23a   : > { %4042 = vtanh.f32 %v1451_v26 }
 0x23b   : > { %1845 = vmatpush.bf16.msra.mxu0 %v3262_v33  ;;  %1858 = vmatpush.bf16.msra.mxu1 %v3390_v34  ;;  %v3325_v33 = vld [vmem:[#allocation7 + $0x140] sm:$0xf]  ;;  %v3855_v34 = vld [vmem:[#allocation7 + $0x14c] sm:$0xf0] }
 0x23c   : > { %1871 = vmatpush.bf16.msra.mxu2 %v3266_v38  ;;  %1884 = vmatpush.bf16.msra.mxu3 %v3394_v40  ;;  %v3853_v38 = vld [vmem:[#allocation7 + $0x144] sm:$0xf]  ;;  %v3327_v40 = vld [vmem:[#allocation7 + $0x150] sm:$0xf0]  ;;  %v3326_v49 = vor.u32 %v3855_v34, %v3325_v33  ;;  %v3286_v33 = vor.u32 %v3844_v9, %v3285_v8  ;;  %v3414_v34 = vor.u32 %v3876_v28, %v3413_v14  ;;  %v3830_v8 = vld [vmem:[#allocation7 + $0x8c] sm:$0xf] }
 0x23d   : > { %v3330_v56 = vor.u32 %v3853_v38, %v3327_v40  ;;  %v3239_v9 = vld [vmem:[#allocation7 + $0x98] sm:$0xf0] }
 0x23e   : > { %v3367_v14 = vld [vmem:[#allocation7 + $0x198] sm:$0xf0] }
 0x23f   : > { %1846 = vmatpush.bf16.msra.mxu0 %v3246_v58  ;;  %1859 = vmatpush.bf16.msra.mxu1 %v3374_v59  ;;  %v3817_v58 = vld [vmem:[#allocation7 + $0x24] sm:$0xf]  ;;  %v3183_v59 = vld [vmem:[#allocation7 + $0x30] sm:$0xf0] }
 0x240   : > { %1872 = vmatpush.bf16.msra.mxu2 %v3250_v62  ;;  %1885 = vmatpush.bf16.msra.mxu3 %v3378_v10  ;;  %v3815_v62 = vld [vmem:[#allocation7 + $0xc] sm:$0xf0]  ;;  %v4041_v10 = vpop.eup %4040 }
 0x241   : > { %v4043_v1 = vpop.eup %4042  ;;  %v1456_v25 = vmul.f32 %v4041_v10, %v1454_v43  ;;  %v3868_v10 = vld [vmem:[#allocation7 + $0x1b4] sm:$0xf0] }
 0x243   : > { %1847 = vmatpush.bf16.msra.mxu0 %v3230_v2  ;;  %1860 = vmatpush.bf16.msra.mxu1 %v3358_v3  ;;  %v3186_v2 = vor.u32 %v3817_v58, %v3183_v59  ;;  %v3314_v3 = vor.u32 %v3849_v60, %v3311_v61  ;;  %v3253_v60 = vld [vmem:[#allocation7 + $0xa8] sm:$0xf]  ;;  %v3836_v61 = vld [vmem:[#allocation7 + $0xb4] sm:$0xf0] }
 0x244   : > { %1873 = vmatpush.bf16.msra.mxu2 %v3234_v6  ;;  %1886 = vmatpush.bf16.msra.mxu3 %v3362_v7  ;;  %v1455_v6 = vld [vmem:[%s4469_s26 + $0x18] sm:$0xff]  ;;  %v3295_v7 = vld [vmem:[#allocation7 + $0x110] sm:$0xf0] }
 0x245   : > { %1404 = vmatmul.bf16.vlgmr.msrb.gmra.mxu0 %v4596_v15  ;;  %1417 = vmatmul.bf16.vlgmr.msrb.gmra.mxu1 %v4598_v16  ;;  %v3202_v15 = vor.u32 %v3821_v35, %v3199_v36  ;;  %v3309_v16 = vld [vmem:[#allocation7 + $0x120] sm:$0xf]  ;;  %v1457_v26 = vmul.f32 %v4043_v1, %v1455_v6  ;;  %v3269_v35 = vld [vmem:[#allocation7 + $0xc8] sm:$0xf]  ;;  %v3840_v36 = vld [vmem:[#allocation7 + $0xd4] sm:$0xf0] }
 0x246   : > { %1430 = vmatmul.bf16.vlgmr.msrb.gmra.mxu2 %v4600_v20  ;;  %1443 = vmatmul.bf16.vlgmr.msrb.gmra.mxu3 %v4602_v27  ;;  %v3165_v20 = vld [vmem:[#allocation7] sm:$0xf]  ;;  %v3310_v12 = vor.u32 %v3851_v57, %v3309_v16  ;;  %v4616_v16 = vpack.c.bf16 %v1456_v25, %v1456_v25  ;;  %v3270_v58 = vor.u32 %v3840_v36, %v3269_v35  ;;  %v3365_v6 = vld [vmem:[#allocation7 + $0x188] sm:$0xf] }
 0x247   : > { %1848 = vmatpush.bf16.msra.mxu0 %v3214_v19  ;;  %1861 = vmatpush.bf16.msra.mxu1 %v3342_v24  ;;  %v3293_v27 = vld [vmem:[#allocation7 + $0x100] sm:$0xf]  ;;  %v3166_v13 = vor.u32 %v3815_v62, %v3165_v20  ;;  %v3287_v19 = vld [vmem:[#allocation7 + $0xf8] sm:$0xf0]  ;;  %v3874_v24 = vld [vmem:[#allocation7 + $0x1ec] sm:$0xf]  ;;  %v4618_v57 = vpack.c.bf16 %v1457_v26, %v1457_v26  ;;  %v3274_v20 = vor.u32 %v3838_v53, %v3271_v54 }
 0x248   : > { %1874 = vmatpush.bf16.msra.mxu2 %v3218_v31  ;;  %1887 = vmatpush.bf16.msra.mxu3 %v3346_v32  ;;  %v3294_v4 = vor.u32 %v3847_v17, %v3293_v27  ;;  %v3170_v31 = vor.u32 %v3813_v63, %v3167_v0  ;;  %v3298_v32 = vor.u32 %v3845_v5, %v3295_v7  ;;  %v3381_v27 = vld [vmem:[#allocation7 + $0x1a8] sm:$0xf]  ;;  %v3866_v17 = vld [vmem:[#allocation7 + $0x1ac] sm:$0xf]  ;;  %v3383_v63 = vld [vmem:[#allocation7 + $0x1b8] sm:$0xf0] }
 0x249   : > { %v3290_v38 = vor.u32 %v3842_v30, %v3287_v19  ;;  %v3418_v40 = vor.u32 %v3874_v24, %v3415_v37  ;;  %v3254_v0 = vor.u32 %v3836_v61, %v3253_v60  ;;  %v3382_v1 = vor.u32 %v3868_v10, %v3381_v27  ;;  %v3864_v7 = vld [vmem:[#allocation7 + $0x194] sm:$0xf0]  ;;  %v3349_v25 = vld [vmem:[#allocation7 + $0x168] sm:$0xf] }
 0x24a   : > { %v3386_v43 = vor.u32 %v3866_v17, %v3383_v63  ;;  %v3366_v30 = vor.u32 %v3864_v7, %v3365_v6  ;;  %v3828_v19 = vld [vmem:[#allocation7 + $0x74] sm:$0xf0]  ;;  %v3242_v24 = vor.u32 %v3830_v8, %v3239_v9  ;;  %v3333_v53 = vld [vmem:[#allocation7 + $0x148] sm:$0xf]  ;;  %v3818_v17 = vld [vmem:[#allocation7 + $0x2c] sm:$0xf] }
 0x24b   : > { %1849 = vmatpush.bf16.msra.mxu0 %v3198_v42  ;;  %1862 = vmatpush.bf16.msra.mxu1 %v3326_v49  ;;  %v3397_v42 = vld [vmem:[#allocation7 + $0x1c8] sm:$0xf]  ;;  %v3872_v49 = vld [vmem:[#allocation7 + $0x1d4] sm:$0xf0]  ;;  %v3191_v63 = vld [vmem:[#allocation7 + $0x38] sm:$0xf0] }
 0x24c   : > { %1875 = vmatpush.bf16.msra.mxu2 %v3202_v15  ;;  %1888 = vmatpush.bf16.msra.mxu3 %v3330_v56  ;;  %v3870_v15 = vld [vmem:[#allocation7 + $0x1cc] sm:$0xf]  ;;  %v3399_v56 = vld [vmem:[#allocation7 + $0x1d8] sm:$0xf0]  ;;  %v3398_v59 = vor.u32 %v3872_v49, %v3397_v42  ;;  %v3860_v26 = vld [vmem:[#allocation7 + $0x174] sm:$0xf0]  ;;  %v3194_v6 = vor.u32 %v3818_v17, %v3191_v63 }
 0x24d   : > { %v3402_v62 = vor.u32 %v3870_v15, %v3399_v56  ;;  %v3350_v36 = vor.u32 %v3860_v26, %v3349_v25  ;;  %v3856_v54 = vld [vmem:[#allocation7 + $0x154] sm:$0xf0]  ;;  %v3822_v15 = vld [vmem:[#allocation7 + $0x4c] sm:$0xf]  ;;  %v3207_v56 = vld [vmem:[#allocation7 + $0x58] sm:$0xf0] }
 0x24e   : > { %v3334_v61 = vor.u32 %v3856_v54, %v3333_v53  ;;  %v3210_v27 = vor.u32 %v3822_v15, %v3207_v56  ;;  %v3301_v8 = vld [vmem:[#allocation7 + $0x108] sm:$0xf]  ;;  %v3848_v9 = vld [vmem:[#allocation7 + $0x114] sm:$0xf0]  ;;  %v4631_v25 = vld [vmem:[%s4747_s5] sm:$0x3] }
 0x24f   : > { %1850 = vmatpush.bf16.msra.mxu0 %v3182_v11  ;;  %1863 = vmatpush.bf16.msra.mxu1 %v3310_v12  ;;  %v3834_v11 = vld [vmem:[#allocation7 + $0xac] sm:$0xf]  ;;  %v3255_v12 = vld [vmem:[#allocation7 + $0xb8] sm:$0xf0]  ;;  %v1020_v26 = vperm.slane %v4631_v25, 0 }
 0x250   : > { %1876 = vmatpush.bf16.msra.mxu2 %v3186_v2  ;;  %1889 = vmatpush.bf16.msra.mxu3 %v3314_v3  ;;  %v3237_v2 = vld [vmem:[#allocation7 + $0x88] sm:$0xf]  ;;  %v3832_v3 = vld [vmem:[#allocation7 + $0x94] sm:$0xf0]  ;;  %v3258_v5 = vor.u32 %v3834_v11, %v3255_v12 }
 0x251   : > { %v3238_v28 = vor.u32 %v3832_v3, %v3237_v2  ;;  %v3317_v11 = vld [vmem:[#allocation7 + $0x128] sm:$0xf]  ;;  %v3852_v12 = vld [vmem:[#allocation7 + $0x134] sm:$0xf0] }
 0x252   : > { %v3318_v3 = vor.u32 %v3852_v12, %v3317_v11 }
 0x253   : > { %1851 = vmatpush.bf16.msra.mxu0 %v3166_v13  ;;  %1864 = vmatpush.bf16.msra.mxu1 %v3294_v4  ;;  %v3862_v13 = vld [vmem:[#allocation7 + $0x18c] sm:$0xf]  ;;  %v3221_v4 = vld [vmem:[#allocation7 + $0x68] sm:$0xf] }
 0x254   : > { %1877 = vmatpush.bf16.msra.mxu2 %v3170_v31  ;;  %1890 = vmatpush.bf16.msra.mxu3 %v3298_v32  ;;  %v3370_v37 = vor.u32 %v3862_v13, %v3367_v14  ;;  %v3826_v31 = vld [vmem:[#allocation7 + $0x6c] sm:$0xf]  ;;  %v3223_v32 = vld [vmem:[#allocation7 + $0x78] sm:$0xf0]  ;;  %v3222_v35 = vor.u32 %v3828_v19, %v3221_v4  ;;  %v3302_v19 = vor.u32 %v3848_v9, %v3301_v8 }
 0x255   : > { %v3226_v42 = vor.u32 %v3826_v31, %v3223_v32  ;;  %v3814_v13 = vld [vmem:[#allocation7 + $0xc] sm:$0xf]  ;;  %v3175_v14 = vld [vmem:[#allocation7 + $0x18] sm:$0xf0] }
 0x256   : > { %1852 = vmatmul.bf16.vlgmr.msra.gmra.mxu0 %v4616_v16  ;;  %1865 = vmatmul.bf16.vlgmr.msra.gmra.mxu1 %v4618_v57 }
 0x257   : > { %1896 = vmatpush.bf16.msrb.mxu0 %v3286_v33  ;;  %1909 = vmatpush.bf16.msrb.mxu1 %v3414_v34  ;;  %v3858_v33 = vld [vmem:[#allocation7 + $0x16c] sm:$0xf]  ;;  %v3351_v34 = vld [vmem:[#allocation7 + $0x178] sm:$0xf0] }
 0x258   : > { %1922 = vmatpush.bf16.msrb.mxu2 %v3290_v38  ;;  %1935 = vmatpush.bf16.msrb.mxu3 %v3418_v40  ;;  %v3205_v38 = vld [vmem:[#allocation7 + $0x48] sm:$0xf]  ;;  %v3824_v40 = vld [vmem:[#allocation7 + $0x54] sm:$0xf0]  ;;  %v3354_v49 = vor.u32 %v3858_v33, %v3351_v34 }
 0x259   : > { %1878 = vmatmul.bf16.vlgmr.msra.gmra.mxu2 %v4616_v16  ;;  %1891 = vmatmul.bf16.vlgmr.msra.gmra.mxu3 %v4618_v57  ;;  %v3206_v60 = vor.u32 %v3824_v40, %v3205_v38 }
 0x25b   : > { %1897 = vmatpush.bf16.msrb.mxu0 %v3270_v58  ;;  %1910 = vmatpush.bf16.msrb.mxu1 %v3398_v59  ;;  %v3854_v58 = vld [vmem:[#allocation7 + $0x14c] sm:$0xf]  ;;  %v3335_v59 = vld [vmem:[#allocation7 + $0x158] sm:$0xf0] }
 0x25c   : > { %1923 = vmatpush.bf16.msrb.mxu2 %v3274_v20  ;;  %1936 = vmatpush.bf16.msrb.mxu3 %v3402_v62  ;;  %v3189_v20 = vld [vmem:[#allocation7 + $0x28] sm:$0xf]  ;;  %v3820_v62 = vld [vmem:[#allocation7 + $0x34] sm:$0xf0]  ;;  %v3338_v10 = vor.u32 %v3854_v58, %v3335_v59 }
 0x25d   : > { %v3190_v2 = vor.u32 %v3820_v62, %v3189_v20 }
 0x25f   : > { %1898 = vmatpush.bf16.msrb.mxu0 %v3254_v0  ;;  %1911 = vmatpush.bf16.msrb.mxu1 %v3382_v1  ;;  %v3850_v0 = vld [vmem:[#allocation7 + $0x12c] sm:$0xf]  ;;  %v3319_v1 = vld [vmem:[#allocation7 + $0x138] sm:$0xf0] }
 0x260   : > { %1924 = vmatpush.bf16.msrb.mxu2 %v3258_v5  ;;  %1937 = vmatpush.bf16.msrb.mxu3 %v3386_v43  ;;  %v3173_v5 = vld [vmem:[#allocation7 + $0x8] sm:$0xf]  ;;  %v3816_v43 = vld [vmem:[#allocation7 + $0x14] sm:$0xf0]  ;;  %v3322_v7 = vor.u32 %v3850_v0, %v3319_v1 }
 0x261   : > { %v3174_v4 = vor.u32 %v3816_v43, %v3173_v5 }
 0x263   : > { %1899 = vmatpush.bf16.msrb.mxu0 %v3238_v28  ;;  %1912 = vmatpush.bf16.msrb.mxu1 %v3366_v30  ;;  %v3846_v28 = vld [vmem:[#allocation7 + $0x10c] sm:$0xf]  ;;  %v3303_v30 = vld [vmem:[#allocation7 + $0x118] sm:$0xf0] }
 0x264   : > { %1925 = vmatpush.bf16.msrb.mxu2 %v3242_v24  ;;  %1938 = vmatpush.bf16.msrb.mxu3 %v3370_v37  ;;  %v3178_v24 = vor.u32 %v3814_v13, %v3175_v14  ;;  %v3306_v37 = vor.u32 %v3846_v28, %v3303_v30 }
 0x267   : > { %1900 = vmatpush.bf16.msrb.mxu0 %v3222_v35  ;;  %1913 = vmatpush.bf16.msrb.mxu1 %v3350_v36 }
 0x268   : > { %1926 = vmatpush.bf16.msrb.mxu2 %v3226_v42  ;;  %1939 = vmatpush.bf16.msrb.mxu3 %v3354_v49 }
 0x26b   : > { %1901 = vmatpush.bf16.msrb.mxu0 %v3206_v60  ;;  %1914 = vmatpush.bf16.msrb.mxu1 %v3334_v61 }
 0x26c   : > { %1927 = vmatpush.bf16.msrb.mxu2 %v3210_v27  ;;  %1940 = vmatpush.bf16.msrb.mxu3 %v3338_v10 }
 0x26f   : > { %1902 = vmatpush.bf16.msrb.mxu0 %v3190_v2  ;;  %1915 = vmatpush.bf16.msrb.mxu1 %v3318_v3 }
 0x270   : > { %1928 = vmatpush.bf16.msrb.mxu2 %v3194_v6  ;;  %1941 = vmatpush.bf16.msrb.mxu3 %v3322_v7 }
 0x273   : > { %1903 = vmatpush.bf16.msrb.mxu0 %v3174_v4  ;;  %1916 = vmatpush.bf16.msrb.mxu1 %v3302_v19 }
 0x274   : > { %1929 = vmatpush.bf16.msrb.mxu2 %v3178_v24  ;;  %1942 = vmatpush.bf16.msrb.mxu3 %v3306_v37 }
 0x276   : > { %1904 = vmatmul.bf16.vlgmr.msrb.gmra.mxu0 %v4616_v16  ;;  %1917 = vmatmul.bf16.vlgmr.msrb.gmra.mxu1 %v4618_v57 }
 0x277   : > { %1930 = vmatmul.bf16.vlgmr.msrb.gmra.mxu2 %v4616_v16  ;;  %1943 = vmatmul.bf16.vlgmr.msrb.gmra.mxu3 %v4618_v57  ;;  %v1021_v57 = vperm.slane %v4631_v25, 1 }
 0x2b2   : > { %v1353_v31 = vpop.f32.mrf.mxu0  ;;  %v1366_v32 = vpop.f32.mrf.mxu1 }
 0x2b3   : > { %v1354_v33 = vadd.f32 %v1353_v31, %v1020_v26 }
 0x2b5   : > { %v1367_v34 = vadd.f32 %v1366_v32, %v1354_v33 }
 0x2b9   : > { %v1379_v35 = vpop.f32.mrf.mxu2  ;;  %v1392_v36 = vpop.f32.mrf.mxu3 }
 0x2ba   : > { %v1380_v38 = vadd.f32 %v1379_v35, %v1367_v34  ;;  %v1355_v40 = vpop.f32.mrf.mxu0  ;;  %v1368_v16 = vpop.f32.mrf.mxu1  ;;  %v3477_v34 = vld [vmem:[#allocation10 + $0x70] sm:$0xf]  ;;  %v3892_v35 = vld [vmem:[#allocation10 + $0x74] sm:$0xf0] }
 0x2bb   : > { %v3908_v40 = vld [vmem:[#allocation10 + $0xf4] sm:$0xf0]  ;;  %v3605_v16 = vld [vmem:[#allocation10 + $0x170] sm:$0xf] }
 0x2bc   : > { %v1393_v42 = vadd.f32 %v1392_v36, %v1380_v38  ;;  %v3541_v36 = vld [vmem:[#allocation10 + $0xf0] sm:$0xf]  ;;  %v3478_v38 = vor.u32 %v3892_v35, %v3477_v34  ;;  %v3886_v35 = vld [vmem:[#allocation10 + $0x44] sm:$0xf0] }
 0x2be   : > { %1448 = vst [vmem:[%s4637_s2] sm:$0xff] %v1393_v42  ;;  %v3924_v42 = vld [vmem:[#allocation10 + $0x174] sm:$0xf0]  ;;  %2383 = vmatpush.bf16.msra.mxu0 %v3478_v38  ;;  %v3902_v38 = vld [vmem:[#allocation10 + $0xc4] sm:$0xf0] }
 0x2c1   : > { %v1381_v49 = vpop.f32.mrf.mxu2  ;;  %v1394_v53 = vpop.f32.mrf.mxu3 }
 0x2c2   : > { %v1405_v54 = vpop.f32.mrf.mxu0  ;;  %v1418_v15 = vpop.f32.mrf.mxu1  ;;  %v3542_v49 = vor.u32 %v3908_v40, %v3541_v36  ;;  %v3606_v53 = vor.u32 %v3924_v42, %v3605_v16  ;;  %v3581_v40 = vld [vmem:[#allocation10 + $0x140] sm:$0xf]  ;;  %v3918_v16 = vld [vmem:[#allocation10 + $0x144] sm:$0xf0] }
 0x2c3   : > { %v1406_v56 = vadd.f32 %v1405_v54, %v1021_v57  ;;  %v3469_v54 = vld [vmem:[#allocation10 + $0x60] sm:$0xf] }
 0x2c4   : > { %2396 = vmatpush.bf16.msra.mxu1 %v3542_v49  ;;  %2409 = vmatpush.bf16.msra.mxu2 %v3606_v53  ;;  %v3582_v49 = vor.u32 %v3918_v16, %v3581_v40  ;;  %v3645_v53 = vld [vmem:[#allocation10 + $0x1c0] sm:$0xf]  ;;  %v3894_v16 = vld [vmem:[#allocation10 + $0x84] sm:$0xf0] }
 0x2c5   : > { %v1419_v58 = vadd.f32 %v1418_v15, %v1406_v56  ;;  %v3890_v56 = vld [vmem:[#allocation10 + $0x64] sm:$0xf0] }
 0x2c9   : > { %v1431_v59 = vpop.f32.mrf.mxu2  ;;  %v1444_v60 = vpop.f32.mrf.mxu3 }
 0x2ca   : > { %v1432_v61 = vadd.f32 %v1431_v59, %v1419_v58  ;;  %v1407_v20 = vpop.f32.mrf.mxu0  ;;  %v1420_v62 = vpop.f32.mrf.mxu1  ;;  %v3533_v58 = vld [vmem:[#allocation10 + $0xe0] sm:$0xf]  ;;  %v3906_v59 = vld [vmem:[#allocation10 + $0xe4] sm:$0xf0] }
 0x2cb   : > { %v3597_v20 = vld [vmem:[#allocation10 + $0x160] sm:$0xf]  ;;  %v3922_v62 = vld [vmem:[#allocation10 + $0x164] sm:$0xf0] }
 0x2cc   : > { %v1445_v27 = vadd.f32 %v1444_v60, %v1432_v61  ;;  %v3470_v60 = vor.u32 %v3890_v56, %v3469_v54  ;;  %v3534_v61 = vor.u32 %v3906_v59, %v3533_v58  ;;  %v3445_v54 = vld [vmem:[#allocation10 + $0x30] sm:$0xf]  ;;  %v3900_v59 = vld [vmem:[#allocation10 + $0xb4] sm:$0xf0] }
 0x2cd   : > { %v3509_v56 = vld [vmem:[#allocation10 + $0xb0] sm:$0xf] }
 0x2ce   : > { %1449 = vst [vmem:[%s4637_s2 + $0x8] sm:$0xff] %v1445_v27  ;;  %v3661_v27 = vld [vmem:[#allocation10 + $0x1e0] sm:$0xf]  ;;  %2384 = vmatpush.bf16.msra.mxu0 %v3470_v60  ;;  %2397 = vmatpush.bf16.msra.mxu1 %v3534_v61  ;;  %v3573_v60 = vld [vmem:[#allocation10 + $0x130] sm:$0xf] }
 0x2cf   : > { %v3916_v61 = vld [vmem:[#allocation10 + $0x134] sm:$0xf0] }
 0x2d1   : > { %v1433_v10 = vpop.f32.mrf.mxu2  ;;  %v1446_v11 = vpop.f32.mrf.mxu3 }
 0x2d2   : > { %v3598_v10 = vor.u32 %v3922_v62, %v3597_v20  ;;  %v3938_v11 = vld [vmem:[#allocation10 + $0x1e4] sm:$0xf0]  ;;  %v3510_v20 = vor.u32 %v3900_v59, %v3509_v56  ;;  %v3574_v62 = vor.u32 %v3916_v61, %v3573_v60  ;;  %v3907_v59 = vld [vmem:[#allocation10 + $0xf4] sm:$0xf]  ;;  %v3543_v60 = vld [vmem:[#allocation10 + $0xf8] sm:$0xf0] }
 0x2d3   : > { %v1853_v12 = vpop.f32.mrf.mxu0  ;;  %v1866_v17 = vpop.f32.mrf.mxu1 }
 0x2d4   : > { %v1854_v43 = vadd.f32 %v1853_v12, %v447_v21  ;;  %v3461_v12 = vld [vmem:[#allocation10 + $0x50] sm:$0xf]  ;;  %2410 = vmatpush.bf16.msra.mxu2 %v3598_v10  ;;  %v3932_v10 = vld [vmem:[#allocation10 + $0x1b4] sm:$0xf0] }
 0x2d6   : > { %v4650_v13 = vadd.f32 %v1866_v17, %v1854_v43  ;;  %v3888_v17 = vld [vmem:[#allocation10 + $0x54] sm:$0xf0]  ;;  %v3653_v43 = vld [vmem:[#allocation10 + $0x1d0] sm:$0xf] }
 0x2db   : > { %v1855_v1 = vpop.f32.mrf.mxu0  ;;  %v1868_v2 = vpop.f32.mrf.mxu1 }
 0x2dc   : > { %v1879_v63 = vpop.f32.mrf.mxu2  ;;  %v1892_v0 = vpop.f32.mrf.mxu3  ;;  %v3904_v1 = vld [vmem:[#allocation10 + $0xd4] sm:$0xf0]  ;;  %v3589_v2 = vld [vmem:[#allocation10 + $0x150] sm:$0xf] }
 0x2dd   : > { %v1880_v6 = vadd.f32 %v1879_v63, %v448_v22  ;;  %v3662_v63 = vor.u32 %v3938_v11, %v3661_v27  ;;  %v3637_v27 = vld [vmem:[#allocation10 + $0x1b0] sm:$0xf] }
 0x2de   : > { %v3638_v11 = vor.u32 %v3932_v10, %v3637_v27  ;;  %v3607_v27 = vld [vmem:[#allocation10 + $0x178] sm:$0xf0]  ;;  %v3939_v10 = vld [vmem:[#allocation10 + $0x1f4] sm:$0xf] }
 0x2df   : > { %v4652_v14 = vadd.f32 %v1892_v0, %v1880_v6  ;;  %v3525_v0 = vld [vmem:[#allocation10 + $0xd0] sm:$0xf]  ;;  %v3936_v6 = vld [vmem:[#allocation10 + $0x1d4] sm:$0xf0] }
 0x2e1   : > { %v1948_v19 = vadd.f32 %v4652_v14, %v4650_v13 }
 0x2e4   : > { %v1881_v3 = vpop.f32.mrf.mxu2  ;;  %v1894_v5 = vpop.f32.mrf.mxu3 }
 0x2e5   : > { %v3462_v3 = vor.u32 %v3888_v17, %v3461_v12  ;;  %v3920_v5 = vld [vmem:[#allocation10 + $0x154] sm:$0xf0]  ;;  %v3437_v12 = vld [vmem:[#allocation10 + $0x20] sm:$0xf]  ;;  %v3882_v17 = vld [vmem:[#allocation10 + $0x24] sm:$0xf0] }
 0x2e7   : > { %2385 = vmatpush.bf16.msra.mxu0 %v3462_v3  ;;  %v3914_v3 = vld [vmem:[#allocation10 + $0x124] sm:$0xf0] }
 0x2f3   : > { %v1905_v7 = vpop.f32.mrf.mxu0  ;;  %v1918_v8 = vpop.f32.mrf.mxu1 }
 0x2f4   : > { %v1906_v9 = vadd.f32 %v1905_v7, %v449_v23  ;;  %v3526_v7 = vor.u32 %v3904_v1, %v3525_v0  ;;  %v3438_v0 = vor.u32 %v3882_v17, %v3437_v12  ;;  %v3898_v1 = vld [vmem:[#allocation10 + $0xa4] sm:$0xf0]  ;;  %v3671_v12 = vld [vmem:[#allocation10 + $0x1f8] sm:$0xf0]  ;;  %v3889_v17 = vld [vmem:[#allocation10 + $0x64] sm:$0xf] }
 0x2f6   : > { %v4654_v28 = vadd.f32 %v1918_v8, %v1906_v9  ;;  %v3590_v8 = vor.u32 %v3920_v5, %v3589_v2  ;;  %v3654_v9 = vor.u32 %v3936_v6, %v3653_v43  ;;  %2398 = vmatpush.bf16.msra.mxu1 %v3526_v7  ;;  %v3565_v2 = vld [vmem:[#allocation10 + $0x120] sm:$0xf]  ;;  %v3930_v7 = vld [vmem:[#allocation10 + $0x1a4] sm:$0xf0] }
 0x2f7   : > { %v3566_v43 = vor.u32 %v3914_v3, %v3565_v2  ;;  %v3629_v6 = vld [vmem:[#allocation10 + $0x1a0] sm:$0xf]  ;;  %v3905_v2 = vld [vmem:[#allocation10 + $0xe4] sm:$0xf]  ;;  %v3535_v3 = vld [vmem:[#allocation10 + $0xe8] sm:$0xf0] }
 0x2f8   : > { %v1949_v31 = vadd.f32 %v1948_v19, %v4654_v28  ;;  %2411 = vmatpush.bf16.msra.mxu2 %v3590_v8  ;;  %v3630_v8 = vor.u32 %v3930_v7, %v3629_v6  ;;  %v3599_v6 = vld [vmem:[#allocation10 + $0x168] sm:$0xf0]  ;;  %v3937_v7 = vld [vmem:[#allocation10 + $0x1e4] sm:$0xf] }
 0x2fa   : > { %v1931_v30 = vpop.f32.mrf.mxu2  ;;  %v1944_v4 = vpop.f32.mrf.mxu3 }
 0x2fb   : > { %v1932_v21 = vadd.f32 %v1931_v30, %v450_v29  ;;  %v1907_v22 = vpop.f32.mrf.mxu0  ;;  %v1920_v24 = vpop.f32.mrf.mxu1  ;;  %v3940_v29 = vld [vmem:[#allocation10 + $0x1f4] sm:$0xf0] }
 0x2fc   : > { %v3670_v15 = vor.u32 %v3940_v29, %v3669_v18  ;;  %v3934_v18 = vld [vmem:[#allocation10 + $0x1c4] sm:$0xf0]  ;;  %2412 = vmatpush.bf16.msra.mxu2 %v3582_v49 }
 0x2fd   : > { %v1945_v37 = vadd.f32 %v1944_v4, %v1932_v21  ;;  %v3646_v29 = vor.u32 %v3934_v18, %v3645_v53  ;;  %v3910_v49 = vld [vmem:[#allocation10 + $0x104] sm:$0xf0] }
 0x2fe   : > { %2422 = vmatpush.bf16.msra.mxu3 %v3670_v15  ;;  %v3884_v15 = vld [vmem:[#allocation10 + $0x34] sm:$0xf0] }
 0x2ff   : > { %v1950_v23 = vadd.f32 %v1949_v31, %v1945_v37  ;;  %v3446_v58 = vor.u32 %v3884_v15, %v3445_v54  ;;  %v3926_v54 = vld [vmem:[#allocation10 + $0x184] sm:$0xf0]  ;;  %v3891_v15 = vld [vmem:[#allocation10 + $0x74] sm:$0xf] }
 0x300   : > { %2413 = vmatpush.bf16.msra.mxu2 %v3574_v62  ;;  %v3923_v62 = vld [vmem:[#allocation10 + $0x174] sm:$0xf] }
 0x301   : > { %1951 = vadd.xlane.f32.xlu1 %v1950_v23 }
 0x302   : > { %v1933_v32 = vpop.f32.mrf.mxu2  ;;  %v1946_v33 = vpop.f32.mrf.mxu3  ;;  %2423 = vmatpush.bf16.msra.mxu3 %v3662_v63  ;;  %v3501_v63 = vld [vmem:[#allocation10 + $0xa0] sm:$0xf] }
 0x303   : > { %v3502_v5 = vor.u32 %v3898_v1, %v3501_v63  ;;  %v3471_v63 = vld [vmem:[#allocation10 + $0x68] sm:$0xf0] }
 0x304   : > { %2414 = vmatpush.bf16.msra.mxu2 %v3566_v43  ;;  %v3474_v1 = vor.u32 %v3889_v17, %v3471_v63  ;;  %v3538_v43 = vor.u32 %v3905_v2, %v3535_v3  ;;  %v3881_v2 = vld [vmem:[#allocation10 + $0x24] sm:$0xf] }
 0x306   : > { %2424 = vmatpush.bf16.msra.mxu3 %v3654_v9  ;;  %v3429_v9 = vld [vmem:[#allocation10 + $0x10] sm:$0xf] }
 0x30a   : > { %2425 = vmatpush.bf16.msra.mxu3 %v3646_v29  ;;  %v3613_v29 = vld [vmem:[#allocation10 + $0x180] sm:$0xf] }
 0x30b   : > { %v3614_v56 = vor.u32 %v3926_v54, %v3613_v29  ;;  %v3647_v29 = vld [vmem:[#allocation10 + $0x1c8] sm:$0xf0] }
 0x30e   : > { %2426 = vmatpush.bf16.msra.mxu3 %v3638_v11  ;;  %v3610_v11 = vor.u32 %v3923_v62, %v3607_v27 }
 0x312   : > { %2427 = vmatpush.bf16.msra.mxu3 %v3630_v8  ;;  %v3663_v8 = vld [vmem:[#allocation10 + $0x1e8] sm:$0xf0] }
 0x374   : > { %v1952_v30 = vpop.xlane.xlu1 %1951 }
 0x375   : > { %v1953_v4 = vmul.f32 %v1952_v30, %v4540_v55  ;;  %v3880_v30 = vld [vmem:[#allocation10 + $0x14] sm:$0xf0] }
 0x377   : > { %v4663_v19 = vsub.f32 %v4650_v13, %v1953_v4  ;;  %v4666_v21 = vsub.f32 %v4652_v14, %v1953_v4  ;;  %v4669_v22 = vsub.f32 %v4654_v28, %v1953_v4  ;;  %v4671_v24 = vsub.f32 %v1945_v37, %v1953_v4  ;;  %v3453_v28 = vld [vmem:[#allocation10 + $0x40] sm:$0xf]  ;;  %v3493_v4 = vld [vmem:[#allocation10 + $0x90] sm:$0xf] }
 0x378   : > { %v3517_v37 = vld [vmem:[#allocation10 + $0xc0] sm:$0xf]  ;;  %v3454_v36 = vor.u32 %v3886_v35, %v3453_v28  ;;  %v3928_v28 = vld [vmem:[#allocation10 + $0x194] sm:$0xf0] }
 0x379   : > { %v1958_v31 = vmul.f32 %v4663_v19, %v4663_v19  ;;  %v1959_v23 = vmul.f32 %v4666_v21, %v4666_v21  ;;  %v1960_v32 = vmul.f32 %v4669_v22, %v4669_v22  ;;  %v1961_v13 = vmul.f32 %v4671_v24, %v4671_v24 }
 0x37a   : > { %v3518_v42 = vor.u32 %v3902_v38, %v3517_v37  ;;  %2386 = vmatpush.bf16.msra.mxu0 %v3454_v36  ;;  %v3421_v37 = vld [vmem:[#allocation10] sm:$0xf]  ;;  %v3878_v36 = vld [vmem:[#allocation10 + $0x4] sm:$0xf0] }
 0x37b   : > { %v1962_v33 = vadd.f32 %v1959_v23, %v1958_v31  ;;  %v3430_v31 = vor.u32 %v3880_v30, %v3429_v9  ;;  %v3896_v23 = vld [vmem:[#allocation10 + $0x94] sm:$0xf0]  ;;  %v3485_v38 = vld [vmem:[#allocation10 + $0x80] sm:$0xf]  ;;  %v3422_v40 = vor.u32 %v3878_v36, %v3421_v37  ;;  %v3666_v30 = vor.u32 %v3937_v7, %v3663_v8  ;;  %v3885_v37 = vld [vmem:[#allocation10 + $0x44] sm:$0xf] }
 0x37c   : > { %2399 = vmatpush.bf16.msra.mxu1 %v3518_v42  ;;  %v3549_v42 = vld [vmem:[#allocation10 + $0x100] sm:$0xf]  ;;  %v3486_v53 = vor.u32 %v3894_v16, %v3485_v38  ;;  %v3455_v38 = vld [vmem:[#allocation10 + $0x48] sm:$0xf0] }
 0x37d   : > { %v1963_v14 = vadd.f32 %v1962_v33, %v1960_v32  ;;  %v3557_v32 = vld [vmem:[#allocation10 + $0x110] sm:$0xf]  ;;  %v3912_v33 = vld [vmem:[#allocation10 + $0x114] sm:$0xf0]  ;;  %v3550_v18 = vor.u32 %v3910_v49, %v3549_v42  ;;  %v3519_v16 = vld [vmem:[#allocation10 + $0xc8] sm:$0xf0]  ;;  %v3458_v54 = vor.u32 %v3885_v37, %v3455_v38 }
 0x37e   : > { %2387 = vmatpush.bf16.msra.mxu0 %v3446_v58  ;;  %v3479_v58 = vld [vmem:[#allocation10 + $0x78] sm:$0xf0]  ;;  %v3917_v49 = vld [vmem:[#allocation10 + $0x144] sm:$0xf]  ;;  %v3503_v8 = vld [vmem:[#allocation10 + $0xa8] sm:$0xf0] }
 0x37f   : > { %v1964_v34 = vadd.f32 %v1963_v14, %v1961_v13  ;;  %v3494_v13 = vor.u32 %v3896_v23, %v3493_v4  ;;  %v3558_v14 = vor.u32 %v3912_v33, %v3557_v32  ;;  %v3482_v61 = vor.u32 %v3891_v15, %v3479_v58  ;;  %v3887_v4 = vld [vmem:[#allocation10 + $0x54] sm:$0xf]  ;;  %v3527_v32 = vld [vmem:[#allocation10 + $0xd8] sm:$0xf0] }
 0x380   : > { %2400 = vmatpush.bf16.msra.mxu1 %v3510_v20  ;;  %v3546_v20 = vor.u32 %v3907_v59, %v3543_v60  ;;  %v3903_v23 = vld [vmem:[#allocation10 + $0xd4] sm:$0xf] }
 0x381   : > { %1965 = vadd.xlane.f32.xlu1 %v1964_v34  ;;  %v3621_v34 = vld [vmem:[#allocation10 + $0x190] sm:$0xf]  ;;  %2415 = vmatpush.bf16.msra.mxu2 %v3558_v14  ;;  %v3919_v33 = vld [vmem:[#allocation10 + $0x154] sm:$0xf] }
 0x382   : > { %2388 = vmatpush.bf16.msra.mxu0 %v3438_v0  ;;  %v3622_v35 = vor.u32 %v3928_v28, %v3621_v34  ;;  %v3674_v0 = vor.u32 %v3939_v10, %v3671_v12  ;;  %v3530_v34 = vor.u32 %v3903_v23, %v3527_v32  ;;  %v3935_v28 = vld [vmem:[#allocation10 + $0x1d4] sm:$0xf]  ;;  %v3511_v10 = vld [vmem:[#allocation10 + $0xb8] sm:$0xf0]  ;;  %v3631_v23 = vld [vmem:[#allocation10 + $0x1a8] sm:$0xf0] }
 0x383   : > { %v3883_v60 = vld [vmem:[#allocation10 + $0x34] sm:$0xf]  ;;  %v3575_v12 = vld [vmem:[#allocation10 + $0x138] sm:$0xf0] }
 0x384   : > { %2401 = vmatpush.bf16.msra.mxu1 %v3502_v5  ;;  %2428 = vmatpush.bf16.msra.mxu3 %v3622_v35  ;;  %v3921_v5 = vld [vmem:[#allocation10 + $0x164] sm:$0xf]  ;;  %v3655_v35 = vld [vmem:[#allocation10 + $0x1d8] sm:$0xf0]  ;;  %v3879_v32 = vld [vmem:[#allocation10 + $0x14] sm:$0xf] }
 0x385   : > { %2416 = vmatpush.bf16.msra.mxu2 %v3550_v18  ;;  %v3602_v9 = vor.u32 %v3921_v5, %v3599_v6  ;;  %v3658_v42 = vor.u32 %v3935_v28, %v3655_v35  ;;  %v3933_v18 = vld [vmem:[#allocation10 + $0x1c4] sm:$0xf]  ;;  %v3911_v28 = vld [vmem:[#allocation10 + $0x114] sm:$0xf]  ;;  %v3559_v35 = vld [vmem:[#allocation10 + $0x118] sm:$0xf0] }
 0x386   : > { %2389 = vmatpush.bf16.msra.mxu0 %v3430_v31  ;;  %v3463_v31 = vld [vmem:[#allocation10 + $0x58] sm:$0xf0]  ;;  %v3650_v58 = vor.u32 %v3933_v18, %v3647_v29  ;;  %v3897_v6 = vld [vmem:[#allocation10 + $0xa4] sm:$0xf]  ;;  %v3927_v37 = vld [vmem:[#allocation10 + $0x194] sm:$0xf] }
 0x387   : > { %v3466_v14 = vor.u32 %v3887_v4, %v3463_v31  ;;  %v3929_v31 = vld [vmem:[#allocation10 + $0x1a4] sm:$0xf]  ;;  %v3487_v18 = vld [vmem:[#allocation10 + $0x88] sm:$0xf0] }
 0x388   : > { %2402 = vmatpush.bf16.msra.mxu1 %v3494_v13  ;;  %2429 = vmatpush.bf16.msra.mxu3 %v3614_v56  ;;  %v3591_v13 = vld [vmem:[#allocation10 + $0x158] sm:$0xf0] }
 0x389   : > { %2461 = vmatpush.bf16.msrb.mxu2 %v3610_v11  ;;  %v3594_v36 = vor.u32 %v3919_v33, %v3591_v13  ;;  %v3915_v11 = vld [vmem:[#allocation10 + $0x134] sm:$0xf]  ;;  %v3634_v33 = vor.u32 %v3929_v31, %v3631_v23  ;;  %v3431_v13 = vld [vmem:[#allocation10 + $0x18] sm:$0xf0] }
 0x38a   : > { %2390 = vmatpush.bf16.msra.mxu0 %v3422_v40  ;;  %v3901_v40 = vld [vmem:[#allocation10 + $0xc4] sm:$0xf]  ;;  %v3578_v63 = vor.u32 %v3915_v11, %v3575_v12 }
 0x38b   : > { %v3522_v15 = vor.u32 %v3901_v40, %v3519_v16  ;;  %v3623_v40 = vld [vmem:[#allocation10 + $0x198] sm:$0xf0]  ;;  %v3877_v16 = vld [vmem:[#allocation10 + $0x4] sm:$0xf] }
 0x38c   : > { %2403 = vmatpush.bf16.msra.mxu1 %v3486_v53  ;;  %2474 = vmatpush.bf16.msrb.mxu3 %v3674_v0  ;;  %v3583_v53 = vld [vmem:[#allocation10 + $0x148] sm:$0xf0]  ;;  %v3931_v0 = vld [vmem:[#allocation10 + $0x1b4] sm:$0xf]  ;;  %v3626_v29 = vor.u32 %v3927_v37, %v3623_v40 }
 0x38d   : > { %2462 = vmatpush.bf16.msrb.mxu2 %v3602_v9  ;;  %v3586_v56 = vor.u32 %v3917_v49, %v3583_v53  ;;  %v3567_v9 = vld [vmem:[#allocation10 + $0x128] sm:$0xf0]  ;;  %v3893_v53 = vld [vmem:[#allocation10 + $0x84] sm:$0xf] }
 0x38e   : > { %2435 = vmatpush.bf16.msrb.mxu0 %v3482_v61  ;;  %v3447_v61 = vld [vmem:[#allocation10 + $0x38] sm:$0xf0]  ;;  %v3423_v49 = vld [vmem:[#allocation10 + $0x8] sm:$0xf0] }
 0x38f   : > { %v3450_v27 = vor.u32 %v3883_v60, %v3447_v61  ;;  %v3426_v61 = vor.u32 %v3877_v16, %v3423_v49 }
 0x390   : > { %2448 = vmatpush.bf16.msrb.mxu1 %v3546_v20  ;;  %2475 = vmatpush.bf16.msrb.mxu3 %v3666_v30  ;;  %v3899_v20 = vld [vmem:[#allocation10 + $0xb4] sm:$0xf]  ;;  %v3506_v30 = vor.u32 %v3897_v6, %v3503_v8 }
 0x391   : > { %2463 = vmatpush.bf16.msrb.mxu2 %v3594_v36  ;;  %v3514_v17 = vor.u32 %v3899_v20, %v3511_v10  ;;  %v3434_v36 = vor.u32 %v3879_v32, %v3431_v13  ;;  %v3490_v20 = vor.u32 %v3893_v53, %v3487_v18 }
 0x392   : > { %2436 = vmatpush.bf16.msrb.mxu0 %v3474_v1  ;;  %v3639_v1 = vld [vmem:[#allocation10 + $0x1b8] sm:$0xf0] }
 0x393   : > { %v3642_v5 = vor.u32 %v3931_v0, %v3639_v1 }
 0x394   : > { %2449 = vmatpush.bf16.msrb.mxu1 %v3538_v43  ;;  %2476 = vmatpush.bf16.msrb.mxu3 %v3658_v42  ;;  %v3439_v43 = vld [vmem:[#allocation10 + $0x28] sm:$0xf0]  ;;  %v3562_v42 = vor.u32 %v3911_v28, %v3559_v35 }
 0x395   : > { %2464 = vmatpush.bf16.msrb.mxu2 %v3586_v56  ;;  %v3442_v7 = vor.u32 %v3881_v2, %v3439_v43 }
 0x396   : > { %2437 = vmatpush.bf16.msrb.mxu0 %v3466_v14  ;;  %v3895_v14 = vld [vmem:[#allocation10 + $0x94] sm:$0xf] }
 0x398   : > { %2450 = vmatpush.bf16.msrb.mxu1 %v3530_v34  ;;  %2477 = vmatpush.bf16.msrb.mxu3 %v3650_v58  ;;  %v3495_v34 = vld [vmem:[#allocation10 + $0x98] sm:$0xf0]  ;;  %v3925_v58 = vld [vmem:[#allocation10 + $0x184] sm:$0xf] }
 0x399   : > { %2465 = vmatpush.bf16.msrb.mxu2 %v3578_v63  ;;  %v3498_v38 = vor.u32 %v3895_v14, %v3495_v34 }
 0x39a   : > { %2438 = vmatpush.bf16.msrb.mxu0 %v3458_v54  ;;  %v3909_v54 = vld [vmem:[#allocation10 + $0x104] sm:$0xf] }
 0x39c   : > { %2451 = vmatpush.bf16.msrb.mxu1 %v3522_v15  ;;  %2478 = vmatpush.bf16.msrb.mxu3 %v3642_v5  ;;  %v3551_v15 = vld [vmem:[#allocation10 + $0x108] sm:$0xf0] }
 0x39e   : > { %2439 = vmatpush.bf16.msrb.mxu0 %v3450_v27 }
 0x3a0   : > { %2452 = vmatpush.bf16.msrb.mxu1 %v3514_v17  ;;  %2479 = vmatpush.bf16.msrb.mxu3 %v3634_v33 }
 0x3a2   : > { %2440 = vmatpush.bf16.msrb.mxu0 %v3442_v7 }
 0x3a4   : > { %2453 = vmatpush.bf16.msrb.mxu1 %v3506_v30  ;;  %2480 = vmatpush.bf16.msrb.mxu3 %v3626_v29 }
 0x3a6   : > { %2441 = vmatpush.bf16.msrb.mxu0 %v3434_v36 }
 0x3a8   : > { %2454 = vmatpush.bf16.msrb.mxu1 %v3498_v38 }
 0x3aa   : > { %2442 = vmatpush.bf16.msrb.mxu0 %v3426_v61 }
 0x3ac   : > { %2455 = vmatpush.bf16.msrb.mxu1 %v3490_v20 }
 0x3f4   : > { %v1966_v59 = vpop.xlane.xlu1 %1965 }
 0x3f5   : > { %v1967_v62 = vmul.f32 %v1966_v59, %v4540_v55  ;;  %v3913_v55 = vld [vmem:[#allocation10 + $0x124] sm:$0xf]  ;;  %v3615_v59 = vld [vmem:[#allocation10 + $0x188] sm:$0xf0] }
 0x3f6   : > { %v3570_v4 = vor.u32 %v3913_v55, %v3567_v9  ;;  %v3618_v10 = vor.u32 %v3925_v58, %v3615_v59 }
 0x3f7   : > { %v1968_v3 = vadd.f32 1e-05, %v1967_v62  ;;  %v3554_v62 = vor.u32 %v3909_v54, %v3551_v15 }
 0x3f8   : > { %2466 = vmatpush.bf16.msrb.mxu2 %v3570_v4  ;;  %2481 = vmatpush.bf16.msrb.mxu3 %v3618_v10 }
 0x3f9   : > { %4044 = vrsqrt.f32 %v1968_v3  ;;  %vm1975_vm5 = vweird.f32 %v1968_v3 }
 0x3fc   : > { %2467 = vmatpush.bf16.msrb.mxu2 %v3562_v42 }
 0x3ff   : > { %v4045_v56 = vpop.eup %4044 }
 0x400   : > { %v1970_v60 = vmul.f32 %v4045_v56, %v1968_v3  ;;  %2468 = vmatpush.bf16.msrb.mxu2 %v3554_v62  ;;  %vm1976_vm4 = vweird.f32 %v4045_v56 }
 0x401   : > { %vm1977_vm6 = vmor %vm1975_vm5, %vm1976_vm4 }
 0x402   : > { %v1971_v27 = vmul.f32 %v4045_v56, %v1970_v60 }
 0x404   : > { %v1972_v11 = vmul.f32 0.5, %v1971_v27 }
 0x406   : > { %v1973_v12 = vsub.f32 1.5, %v1972_v11 }
 0x408   : > { %v1974_v17 = vmul.f32 %v4045_v56, %v1973_v12 }
 0x40a   : > { %v1978_v63 = vsel %vm1977_vm6, %v4045_v56, %v1974_v17 }
 0x40b   : > { %v1979_v0 = vmul.f32 %v1978_v63, %v4663_v19  ;;  %v1980_v1 = vmul.f32 %v1978_v63, %v4666_v21  ;;  %v1981_v2 = vmul.f32 %v1978_v63, %v4669_v22  ;;  %v1982_v5 = vmul.f32 %v1978_v63, %v4671_v24 }
 0x40d   : > { %v1983_v43 = vmul.f32 %v1979_v0, %v922_v44  ;;  %v1984_v6 = vmul.f32 %v1980_v1, %v923_v46  ;;  %v1985_v7 = vmul.f32 %v1981_v2, %v924_v47  ;;  %v1986_v3 = vmul.f32 %v1982_v5, %v925_v48 }
 0x40f   : > { %v1987_v19 = vadd.f32 %v1983_v43, %v935_v45  ;;  %v1988_v21 = vadd.f32 %v1984_v6, %v936_v50  ;;  %v1989_v22 = vadd.f32 %v1985_v7, %v937_v51  ;;  %v1990_v44 = vadd.f32 %v1986_v3, %v938_v52 }
 0x411   : > { %v1991_v24 = vmax.f32 %v1987_v19, 0.0  ;;  %v1992_v46 = vmax.f32 %v1988_v21, 0.0  ;;  %v1993_v8 = vmax.f32 %v1989_v22, 0.0  ;;  %v1994_v55 = vmax.f32 %v1990_v44, 0.0 }
 0x413   : > { %v1995_v47 = vpack.c.bf16 %v1991_v24, %v1991_v24  ;;  %v1996_v9 = vpack.c.bf16 %v1992_v46, %v1992_v46  ;;  %v1997_v39 = vpack.c.bf16 %v1993_v8, %v1993_v8  ;;  %v1998_v48 = vpack.c.bf16 %v1994_v55, %v1994_v55 }
 0x415   : > { %2391 = vmatmul.bf16.vlgmr.msra.gmra.mxu0 %v1995_v47  ;;  %2404 = vmatmul.bf16.vlgmr.msra.gmra.mxu1 %v1996_v9 }
 0x416   : > { %2417 = vmatmul.bf16.vlgmr.msra.gmra.mxu2 %v1997_v39  ;;  %2430 = vmatmul.bf16.vlgmr.msra.gmra.mxu3 %v1998_v48 }
 0x425   : > { %2443 = vmatmul.bf16.vlgmr.msrb.gmra.mxu0 %v1995_v47  ;;  %2456 = vmatmul.bf16.vlgmr.msrb.gmra.mxu1 %v1996_v9 }
 0x426   : > { %2469 = vmatmul.bf16.vlgmr.msrb.gmra.mxu2 %v1997_v39  ;;  %2482 = vmatmul.bf16.vlgmr.msrb.gmra.mxu3 %v1998_v48 }
 0x492   : > { %v2392_v41 = vpop.f32.mrf.mxu0  ;;  %v2405_v45 = vpop.f32.mrf.mxu1 }
 0x493   : > { %v2393_v50 = vadd.f32 %v2392_v41, %v1020_v26 }
 0x495   : > { %v2406_v51 = vadd.f32 %v2405_v45, %v2393_v50 }
 0x499   : > { %v2418_v52 = vpop.f32.mrf.mxu2  ;;  %v2431_v30 = vpop.f32.mrf.mxu3 }
 0x49a   : > { %v2419_v4 = vadd.f32 %v2418_v52, %v2406_v51  ;;  %v2394_v31 = vpop.f32.mrf.mxu0  ;;  %v2407_v23 = vpop.f32.mrf.mxu1 }
 0x49c   : > { %v2432_v32 = vadd.f32 %v2431_v30, %v2419_v4 }
 0x49e   : > { %2487 = vst [vmem:[%s4637_s2 + $0x10] sm:$0xff] %v2432_v32 }
 0x4a1   : > { %v2420_v33 = vpop.f32.mrf.mxu2  ;;  %v2433_v13 = vpop.f32.mrf.mxu3 }
 0x4a2   : > { %v2444_v14 = vpop.f32.mrf.mxu0  ;;  %v2457_v34 = vpop.f32.mrf.mxu1 }
 0x4a3   : > { %v2445_v28 = vadd.f32 %v2444_v14, %v1021_v57 }
 0x4a5   : > { %v2458_v26 = vadd.f32 %v2457_v34, %v2445_v28 }
 0x4a9   : > { %v2470_v35 = vpop.f32.mrf.mxu2  ;;  %v2483_v37 = vpop.f32.mrf.mxu3 }
 0x4aa   : > { %v2471_v36 = vadd.f32 %v2470_v35, %v2458_v26  ;;  %v2446_v38 = vpop.f32.mrf.mxu0  ;;  %v2459_v40 = vpop.f32.mrf.mxu1 }
 0x4ac   : > { %v2484_v16 = vadd.f32 %v2483_v37, %v2471_v36 }
 0x4ae   : > { %2488 = vst [vmem:[%s4637_s2 + $0x18] sm:$0xff] %v2484_v16 }
 0x4af   : > { %4223 = shalt.err (!%p4220_p11)
}
 0x4b0   : > { %s4284_s30 = smov 256   ;;  %s4285_s8 = smov 16  }
 0x4b1   : > { %3959 = dma.vmem_to_hbm [thread:$0]  (%p4407_p7), %s2504_s29, 512, %s2506_s7, %s2490_s25, %s4284_s30, %s4284_s30, %s4285_s8   ;;  %v2472_v25 = vpop.f32.mrf.mxu2  ;;  %v2485_v57 = vpop.f32.mrf.mxu3 }
 0x4b2 PF: > { %s2520_s12 = sand.u32 1, %s4262_s21   ;;  %p4769_p12 = scmp.ge.s32.totalorder %s4274_s24, 2 }
 0x4b3   : > { %s2521_s27 = scalar_lea.sflag [#allocation4], %s2520_s12 }
 0x4b4   : > { %p3979_p13 = pnand %p4769_p12, %p4356_p6 }
 0x4b6   : > { %p3980_p0 = pneg %p3979_p13 }
 0x4b8   : > { %4257 = dma.done.wait (%p3980_p0), %s2521_s27, 512  }
 0x4b9   : > { %4259 = vsyncadd (%p3980_p0), %s2521_s27, 4294966784  ;;  %p23_p7 = scmp.ge.s32.totalorder %s4393_s10, 4   ;;  %s4770_s21 = smov %s4266_s22 }
 0x4ba   : > { %s4771_s22 = smov %s4270_s23  ;;  %s4772_s23 = smov %s4403_s14 }
 0x4bb   : > { %s4773_s24 = smov %s4393_s10  ;;  %25 = sbr.rel (!%p23_p7) target bundleno = 13 (0xd), region = 116 }
 0x4c0   :  { %2527 = vsyncpa [#allocation3], 1 }
 0x4c1   :  { %2529 = vsyncpa [#allocation3 + $0x1], 1 }
 0x4c2   :  { %2530 = vsyncpa [#allocation6], 1 }
 0x4c3   :  { %2532 = vsyncpa [#allocation6 + $0x1], 1 }
 0x4c4   :  { %2533 = vsyncpa [#allocation9], 1 }
 0x4c5   :  { %2534 = vsyncpa [#allocation4], 1 }
 0x4c6   :  { %2536 = vsyncpa [#allocation4 + $0x1], 1 }

// kernel: tpu_custom_call.1
= control target key start
LH: loop header
LB: loop body
LE: loop exit
PB: predicated region body
PF: predicated region fallthrough
CT: control target
= control target key end

     0   :  { %s4742_s0 = inlined_call_operand.hbm [shape: f32[32,256], index: 0, kind: input, shape index: {}]   ;;  %s4743_s1 = inlined_call_operand.hbm [shape: f32[32,256], index: 1, kind: input, shape index: {}]   ;;  %s4744_s2 = inlined_call_operand.hbm [shape: bf16[256,512], index: 2, kind: input, shape index: {}]   ;;  %s4745_s3 = inlined_call_operand.hbm [shape: f32[8,512], index: 3, kind: input, shape index: {}]   ;;  %s4746_s4 = inlined_call_operand.hbm [shape: bf16[512,256], index: 4, kind: input, shape index: {}]   ;;  %s4747_s5 = inlined_call_operand.vmem [shape: f32[1,256], index: 5, kind: input, shape index: {}]   ;;  %s4748_s6 = inlined_call_operand.hbm [shape: f32[32,256], index: 6, kind: output, shape index: {}]  }
   0x1   :  { %4753 = sst [smem:[#allocation17_spill]] %s4742_s0 }
   0x2   :  { %4754 = sst [smem:[#allocation18_spill]] %s4744_s2 }
   0x3   :  { %4755 = sst [smem:[#allocation19_spill]] %s4745_s3 }
   0x4   :  { %4756 = sst [smem:[#allocation20_spill]] %s4746_s4 }
   0x5   :  { %11 = vsyncpa [#allocation3], 0 }
   0x6   :  { %13 = vsyncpa [#allocation3 + $0x1], 0 }
   0x7   :  { %14 = vsyncpa [#allocation6], 0 }
   0x8   :  { %16 = vsyncpa [#allocation6 + $0x1], 0 }
   0x9   :  { %17 = vsyncpa [#allocation9], 0 }
   0xa   :  { %18 = vsyncpa [#allocation4], 0 }
   0xb   :  { %20 = vsyncpa [#allocation4 + $0x1], 0  ;;  %s4321_s21 = smov 0   ;;  %s4323_s22 = smov 0  }
   0xc   :  { %s4325_s23 = smov 0   ;;  %s4327_s24 = smov 0  }
   0xd LB: > { %s4342_s25 = sadd.s32 4294967295, %s4274_s24   ;;  %s2630_s26 = sadd.s32 4294967294, %s4274_s24   ;;  %s4274_s24 = sphi %s4327_s24, %s4773_s24   ;;  %s4270_s23 = sphi %s4325_s23, %s4772_s23   ;;  %s4266_s22 = sphi %s4323_s22, %s4771_s22   ;;  %s4262_s21 = sphi %s4321_s21, %s4770_s21  }
   0xe   : > { %p46_p0 = scmp.ne.s32.totalorder %s4266_s22, %s4262_s21  ;;  %p47_p1 = scmp.eq.s32.totalorder %s4342_s25, 0 }
   0xf   : > { %p180_p2 = scmp.eq.s32.totalorder %s4342_s25, 1  ;;  %p186_p3 = scmp.eq.s32.totalorder %s2630_s26, 1 }
  0x10   : > { %p4351_p4 = por %p47_p1, %p46_p0  ;;  %p2631_p5 = scmp.ge.s32.totalorder %s4274_s24, 1 }
  0x11   : > { %p4356_p6 = por %p186_p3, %p46_p0  ;;  %p193_p7 = scmp.lt.s32.totalorder %s4274_s24, 3 }
  0x12   : > { %s4759_s2 = sld [smem:[#allocation18_spill]]  ;;  %s4276_s9 = smov [#allocation7]  }
  0x13   : > { %p4364_p8 = pnand %p2631_p5, %p193_p7  ;;  %s206_s10 = sshll.u32 %s4276_s9, 4  ;;  %s207_s10 = int_to_ptr.vmem [resolvable:$true] %s206_s10 }
  0x14   : > { %s4762_s3 = sld [smem:[#allocation19_spill]]  ;;  %s4749_s15 = smov 256  }
  0x15   : > { %p3961_p9 = pneg %p4364_p8  ;;  %s4751_s16 = smov 16  }
  0x16   : > { %s4279_s17 = smov [#allocation8]   ;;  %s4763_s4 = sld [smem:[#allocation20_spill]] }
  0x17   : > { %p4372_p10 = pnand %p3961_p9, %p47_p1  ;;  %s221_s18 = sshll.u32 %s4279_s17, 4  ;;  %s222_s18 = int_to_ptr.vmem [resolvable:$true] %s221_s18 }
  0x18   : > { %s204_s7 = sshll.u32 %s4759_s2, 4  ;;  %s4280_s29 = smov [#allocation10]   ;;  %s205_s7 = int_to_ptr.hbm [resolvable:$true] %s204_s7 }
  0x19   : > { %3964 = dma.hbm_to_vmem [thread:$0]  (!%p4372_p10), %s205_s7, 8192, %s207_s10, [#allocation6], %s4749_s15, %s4749_s15, %s4751_s16  }
  0x1a   : > { %s219_s14 = sshll.u32 %s4762_s3, 4  ;;  %s232_s30 = sshll.u32 %s4280_s29, 4  ;;  %s220_s14 = int_to_ptr.hbm [resolvable:$true] %s219_s14  ;;  %s233_s30 = int_to_ptr.vmem [resolvable:$true] %s232_s30 }
  0x1b   : > { %3967 = dma.hbm_to_vmem [thread:$0]  (!%p4372_p10), %s220_s14, 512, %s222_s18, [#allocation9]  }
  0x1c   : > { %s230_s26 = sshll.u32 %s4763_s4, 4  ;;  %s4281_s7 = smov 128   ;;  %s231_s26 = int_to_ptr.hbm [resolvable:$true] %s230_s26 }
  0x1d   : > { %s4282_s9 = smov 8   ;;  %s4393_s10 = sadd.s32 1, %s4274_s24  }
  0x1e   : > { %3970 = dma.hbm_to_vmem [thread:$0]  (!%p4372_p10), %s231_s26, 8192, %s233_s30, [#allocation9], %s4281_s7, %s4281_s7, %s4282_s9  }
  0x1f   : > { %s30_s12 = ssub.s32 %s4274_s24, %s4393_s10  ;;  %s33_s13 = sadd.s32 1, %s4270_s23 }
  0x20   : > { %p31_p12 = scmp.eq.s32.totalorder %s30_s12, 0  ;;  %p40_p13 = scmp.ne.s32.totalorder %s4270_s23, %s4266_s22 }
  0x21   : > { %p41_p0 = scmp.eq.s32.totalorder %s4274_s24, 0  ;;  %p3985_p3 = scmp.lt.s32.totalorder %s4274_s24, 2 }
  0x22   : > { %s4403_s14 = scalar_select %p31_p12, %s4270_s23, %s33_s13  }
  0x23   : > { %p42_p5 = por %p41_p0, %p40_p13  ;;  %p4407_p7 = por %p180_p2, %p40_p13 }
  0x24   : > { %s249_s11 = sand.u32 1, %s4270_s23   ;;  %s3682_s18 = sshll.u32 %s4274_s24, 5 }
  0x25   : > { %s2636_s19 = sshll.u32 %s249_s11, 5  ;;  %s4765_s0 = sld [smem:[#allocation17_spill]] }
  0x26   : > { %s253_s7 = scalar_lea.vmem [#allocation2], %s2636_s19  ;;  %p4418_p9 = pnand %p3985_p3, %p42_p5 }
  0x27   : > { %s262_s9 = sshll.u32 %s253_s7, 4  ;;  %s282_s16 = scalar_lea.hbm %s4743_s1, %s3682_s18  ;;  %s263_s9 = int_to_ptr.vmem [resolvable:$true] %s262_s9 }
  0x28   : > { %s276_s2 = scalar_lea.vmem [#allocation5], %s2636_s19  ;;  %s283_s20 = sshll.u32 %s282_s16, 4  ;;  %s284_s20 = int_to_ptr.hbm [resolvable:$true] %s283_s20 }
  0x29   : > { %s4425_s3 = sshll.u32 %s276_s2, 4  ;;  %s250_s26 = scalar_lea.sflag [#allocation3], %s249_s11  ;;  %s286_s3 = int_to_ptr.vmem [resolvable:$true] %s4425_s3 }
  0x2a   : > { %p4140_p10 = pneg %p4418_p9 }
  0x2b   : > { %s259_s29 = scalar_lea.hbm %s4765_s0, %s3682_s18  ;;  %s4143_s13 = scalar_lea.hbm %s4765_s0, 64 }
  0x2c   : > { %s260_s30 = sshll.u32 %s259_s29, 4  ;;  %s261_s30 = int_to_ptr.hbm [resolvable:$true] %s260_s30 }
  0x2d   : > { %s4136_s29 = sshra.s32 %s261_s30, 4  ;;  %s4137_s29 = int_to_ptr.hbm [resolvable:$true] %s4136_s29 }
  0x2e   : > { %s4138_s7 = scalar_lea.hbm %s4137_s29, 32  ;;  %p4144_p0 = scmp.lt.s32.totalorder %s4137_s29, %s4765_s0 }
  0x2f   : > { %p4139_p2 = scmp.ne.s32.totalorder %s4137_s29, %s4138_s7  ;;  %p4145_p3 = scmp.lt.s32.totalorder %s4143_s13, %s4138_s7 }
  0x31   : > { %p4141_p12 = pnand %p4140_p10, %p4139_p2  ;;  %p4146_p5 = por %p4145_p3, %p4144_p0 }
  0x33   : > { %p4142_p13 = pneg %p4141_p12 }
  0x35   : > { %p4147_p11 = pnand %p4146_p5, %p4142_p13 }
  0x37   : > { %4150 = shalt.err (!%p4147_p11)
}
  0x38   : > { %s4767_s2 = smov 16   ;;  %s4768_s16 = smov 256  }
  0x39   : > { %3974 = dma.hbm_to_vmem [thread:$0]  (!%p4418_p9), %s261_s30, 512, %s263_s9, %s250_s26, %s4768_s16, %s4768_s16, %s4767_s2  }
  0x3a   : > { %s272_s4 = sand.u32 1, %s4274_s24   ;;  %s4166_s15 = sshra.s32 %s284_s20, 4  ;;  %s4167_s15 = int_to_ptr.hbm [resolvable:$true] %s4166_s15 }
  0x3b   : > { %s273_s11 = scalar_lea.sflag [#allocation6], %s272_s4  ;;  %s4168_s29 = scalar_lea.hbm %s4167_s15, 32 }
  0x3c   : > { %p4169_p2 = scmp.ne.s32.totalorder %s4167_s15, %s4168_s29  ;;  %s4173_s18 = scalar_lea.hbm %s4743_s1, 64 }
  0x3d   : > { %p4174_p13 = scmp.lt.s32.totalorder %s4167_s15, %s4743_s1  ;;  %p4175_p0 = scmp.lt.s32.totalorder %s4173_s18, %s4168_s29 }
  0x3e   : > { %p4171_p11 = pnand %p4169_p2, %p4140_p10 }
  0x3f   : > { %p4176_p3 = por %p4175_p0, %p4174_p13 }
  0x40   : > { %p4172_p12 = pneg %p4171_p11 }
  0x42   : > { %p4177_p5 = pnand %p4176_p3, %p4172_p12 }
  0x44   : > { %4180 = shalt.err (!%p4177_p5)
}
  0x45   : > { %3977 = dma.hbm_to_vmem [thread:$0]  (!%p4418_p9), %s284_s20, 512, %s286_s3, %s273_s11, %s4768_s16, %s4768_s16, %s4767_s2  }
  0x46   : > { %297 = sbr.rel (%p4364_p8) target bundleno = 1202 (0x4b2), region = 44  ;;  %s4462_s30 = sand.u32 (!%p4364_p8), 1, %s4266_s22  }
  0x47   : > { %s4465_s0 = sshll.u32 (!%p4364_p8), %s4462_s30, 5  ;;  %s300_s9 = scalar_lea.sflag (!%p4364_p8), [#allocation3], %s4462_s30 }
  0x48   : > { %s4469_s26 = scalar_lea.vmem (!%p4364_p8), [#allocation2], %s4465_s0 }
  0x4b   : > { %4241 = dma.done.wait (%p4351_p4), %s300_s9, 512  }
  0x4c   : > { %4243 = vsyncadd (%p4351_p4), %s300_s9, 4294966784  ;;  %s309_s3 = sand.u32 1, %s4342_s25   ;;  %s4477_s12 = scalar_lea.vmem [#allocation5], %s4465_s0 }
  0x4d   : > { %s310_s8 = scalar_lea.sflag [#allocation6], %s309_s3 }
  0x4e   : > { %4245 = dma.done.wait (%p4351_p4), %s310_s8, 512  }
  0x4f   : > { %4247 = vsyncadd (%p4351_p4), %s310_s8, 4294966784 }
  0x50   : > { %4249 = dma.done.wait (%p47_p1), [#allocation6], 8192  }
  0x51   : > { %4251 = vsyncadd (%p47_p1), [#allocation6], 4294959104 }
  0x52   : > { %4253 = dma.done.wait (%p47_p1), [#allocation9], 8704  }
  0x53   : > { %4255 = vsyncadd (%p47_p1), [#allocation9], 4294958592  ;;  %v2765_v0 = vld [vmem:[#allocation7 + $0xe0] sm:$0xf]  ;;  %v3715_v1 = vld [vmem:[#allocation7 + $0xec] sm:$0xf0] }
  0x54   : > { %v2893_v2 = vld [vmem:[#allocation7 + $0x1e0] sm:$0xf]  ;;  %v2766_v3 = vor.u32 %v3715_v1, %v2765_v0  ;;  %v3747_v4 = vld [vmem:[#allocation7 + $0x1ec] sm:$0xf0]  ;;  %v3713_v5 = vld [vmem:[#allocation7 + $0xe4] sm:$0xf] }
  0x55   : > { %v2767_v6 = vld [vmem:[#allocation7 + $0xf0] sm:$0xf0]  ;;  %v2894_v7 = vor.u32 %v3747_v4, %v2893_v2  ;;  %v3745_v9 = vld [vmem:[#allocation7 + $0x1e4] sm:$0xf]  ;;  %v2749_v11 = vld [vmem:[#allocation7 + $0xc0] sm:$0xf] }
  0x56   : > { %v2770_v8 = vor.u32 %v3713_v5, %v2767_v6  ;;  %v2895_v10 = vld [vmem:[#allocation7 + $0x1f0] sm:$0xf0]  ;;  %775 = vmatpush.bf16.msra.mxu0 %v2766_v3  ;;  %v3711_v13 = vld [vmem:[#allocation7 + $0xcc] sm:$0xf0]  ;;  %v2877_v14 = vld [vmem:[#allocation7 + $0x1c0] sm:$0xf] }
  0x57   : > { %v2898_v12 = vor.u32 %v3745_v9, %v2895_v10  ;;  %v3743_v15 = vld [vmem:[#allocation7 + $0x1cc] sm:$0xf0]  ;;  %788 = vmatpush.bf16.msra.mxu1 %v2894_v7  ;;  %v2750_v16 = vor.u32 %v3711_v13, %v2749_v11  ;;  %v3709_v18 = vld [vmem:[#allocation7 + $0xc4] sm:$0xf]  ;;  %v2751_v19 = vld [vmem:[#allocation7 + $0xd0] sm:$0xf0] }
  0x58   : > { %801 = vmatpush.bf16.msra.mxu2 %v2770_v8  ;;  %v2878_v17 = vor.u32 %v3743_v15, %v2877_v14  ;;  %v3741_v20 = vld [vmem:[#allocation7 + $0x1c4] sm:$0xf]  ;;  %v2754_v21 = vor.u32 %v3709_v18, %v2751_v19  ;;  %v2879_v22 = vld [vmem:[#allocation7 + $0x1d0] sm:$0xf0]  ;;  %v2733_v23 = vld [vmem:[#allocation7 + $0xa0] sm:$0xf] }
  0x59   : > { %814 = vmatpush.bf16.msra.mxu3 %v2898_v12  ;;  %v3707_v24 = vld [vmem:[#allocation7 + $0xac] sm:$0xf0]  ;;  %v2882_v25 = vor.u32 %v3741_v20, %v2879_v22  ;;  %v2861_v26 = vld [vmem:[#allocation7 + $0x1a0] sm:$0xf]  ;;  %v3705_v28 = vld [vmem:[#allocation7 + $0xa4] sm:$0xf] }
  0x5a   : > { %v3739_v27 = vld [vmem:[#allocation7 + $0x1ac] sm:$0xf0]  ;;  %776 = vmatpush.bf16.msra.mxu0 %v2750_v16  ;;  %v2734_v29 = vor.u32 %v3707_v24, %v2733_v23  ;;  %v2735_v30 = vld [vmem:[#allocation7 + $0xb0] sm:$0xf0]  ;;  %v3737_v31 = vld [vmem:[#allocation7 + $0x1a4] sm:$0xf] }
  0x5b   : > { %v2863_v32 = vld [vmem:[#allocation7 + $0x1b0] sm:$0xf0]  ;;  %789 = vmatpush.bf16.msra.mxu1 %v2878_v17  ;;  %v2862_v33 = vor.u32 %v3739_v27, %v2861_v26  ;;  %v2738_v34 = vor.u32 %v3705_v28, %v2735_v30  ;;  %v2717_v35 = vld [vmem:[#allocation7 + $0x80] sm:$0xf]  ;;  %v3703_v36 = vld [vmem:[#allocation7 + $0x8c] sm:$0xf0] }
  0x5c   : > { %802 = vmatpush.bf16.msra.mxu2 %v2754_v21  ;;  %v2845_v37 = vld [vmem:[#allocation7 + $0x180] sm:$0xf]  ;;  %v2866_v38 = vor.u32 %v3737_v31, %v2863_v32  ;;  %v3735_v39 = vld [vmem:[#allocation7 + $0x18c] sm:$0xf0]  ;;  %v3701_v40 = vld [vmem:[#allocation7 + $0x84] sm:$0xf]  ;;  %v2718_v44 = vor.u32 %v3703_v36, %v2717_v35 }
  0x5d   : > { %815 = vmatpush.bf16.msra.mxu3 %v2882_v25  ;;  %v2719_v41 = vld [vmem:[#allocation7 + $0x90] sm:$0xf0]  ;;  %v3733_v42 = vld [vmem:[#allocation7 + $0x184] sm:$0xf]  ;;  %v2846_v45 = vor.u32 %v3735_v39, %v2845_v37  ;;  %v2701_v47 = vld [vmem:[#allocation7 + $0x60] sm:$0xf] }
  0x5e   : > { %v2847_v43 = vld [vmem:[#allocation7 + $0x190] sm:$0xf0]  ;;  %777 = vmatpush.bf16.msra.mxu0 %v2734_v29  ;;  %v2722_v46 = vor.u32 %v3701_v40, %v2719_v41  ;;  %v3699_v48 = vld [vmem:[#allocation7 + $0x6c] sm:$0xf0]  ;;  %v2829_v49 = vld [vmem:[#allocation7 + $0x160] sm:$0xf] }
  0x5f   : > { %790 = vmatpush.bf16.msra.mxu1 %v2862_v33  ;;  %v2850_v50 = vor.u32 %v3733_v42, %v2847_v43  ;;  %v3731_v51 = vld [vmem:[#allocation7 + $0x16c] sm:$0xf0]  ;;  %v3697_v52 = vld [vmem:[#allocation7 + $0x64] sm:$0xf]  ;;  %v2703_v53 = vld [vmem:[#allocation7 + $0x70] sm:$0xf0]  ;;  %v2702_v56 = vor.u32 %v3699_v48, %v2701_v47 }
  0x60   : > { %803 = vmatpush.bf16.msra.mxu2 %v2738_v34  ;;  %v3729_v54 = vld [vmem:[#allocation7 + $0x164] sm:$0xf]  ;;  %v2831_v55 = vld [vmem:[#allocation7 + $0x170] sm:$0xf0]  ;;  %v2830_v57 = vor.u32 %v3731_v51, %v2829_v49  ;;  %v2706_v58 = vor.u32 %v3697_v52, %v2703_v53  ;;  %v2685_v59 = vld [vmem:[#allocation7 + $0x40] sm:$0xf] }
  0x61   : > { %816 = vmatpush.bf16.msra.mxu3 %v2866_v38  ;;  %v3695_v60 = vld [vmem:[#allocation7 + $0x4c] sm:$0xf0]  ;;  %v2813_v61 = vld [vmem:[#allocation7 + $0x140] sm:$0xf]  ;;  %v2834_v62 = vor.u32 %v3729_v54, %v2831_v55  ;;  %v3693_v0 = vld [vmem:[#allocation7 + $0x44] sm:$0xf] }
  0x62   : > { %778 = vmatpush.bf16.msra.mxu0 %v2718_v44  ;;  %v3727_v63 = vld [vmem:[#allocation7 + $0x14c] sm:$0xf0]  ;;  %v2687_v1 = vld [vmem:[#allocation7 + $0x50] sm:$0xf0]  ;;  %v3725_v2 = vld [vmem:[#allocation7 + $0x144] sm:$0xf]  ;;  %v2686_v4 = vor.u32 %v3695_v60, %v2685_v59 }
  0x63   : > { %791 = vmatpush.bf16.msra.mxu1 %v2846_v45  ;;  %v2815_v3 = vld [vmem:[#allocation7 + $0x150] sm:$0xf0]  ;;  %v2814_v5 = vor.u32 %v3727_v63, %v2813_v61  ;;  %v2690_v6 = vor.u32 %v3693_v0, %v2687_v1  ;;  %v2669_v7 = vld [vmem:[#allocation7 + $0x20] sm:$0xf]  ;;  %v3691_v8 = vld [vmem:[#allocation7 + $0x2c] sm:$0xf0] }
  0x64   : > { %804 = vmatpush.bf16.msra.mxu2 %v2722_v46  ;;  %v2797_v9 = vld [vmem:[#allocation7 + $0x120] sm:$0xf]  ;;  %v2818_v10 = vor.u32 %v3725_v2, %v2815_v3  ;;  %v3723_v11 = vld [vmem:[#allocation7 + $0x12c] sm:$0xf0]  ;;  %v3689_v12 = vld [vmem:[#allocation7 + $0x24] sm:$0xf]  ;;  %v2670_v16 = vor.u32 %v3691_v8, %v2669_v7 }
  0x65   : > { %817 = vmatpush.bf16.msra.mxu3 %v2850_v50  ;;  %v2671_v13 = vld [vmem:[#allocation7 + $0x30] sm:$0xf0]  ;;  %v3721_v14 = vld [vmem:[#allocation7 + $0x124] sm:$0xf]  ;;  %v2653_v17 = vld [vmem:[#allocation7] sm:$0xf]  ;;  %v2798_v20 = vor.u32 %v3723_v11, %v2797_v9 }
  0x66   : > { %779 = vmatpush.bf16.msra.mxu0 %v2702_v56  ;;  %v2799_v15 = vld [vmem:[#allocation7 + $0x130] sm:$0xf0]  ;;  %v3687_v18 = vld [vmem:[#allocation7 + $0xc] sm:$0xf0]  ;;  %v2781_v19 = vld [vmem:[#allocation7 + $0x100] sm:$0xf]  ;;  %v2674_v21 = vor.u32 %v3689_v12, %v2671_v13 }
  0x67   : > { %792 = vmatpush.bf16.msra.mxu1 %v2830_v57  ;;  %v3719_v22 = vld [vmem:[#allocation7 + $0x10c] sm:$0xf0]  ;;  %v3685_v23 = vld [vmem:[#allocation7 + $0x4] sm:$0xf]  ;;  %v2655_v24 = vld [vmem:[#allocation7 + $0x10] sm:$0xf0]  ;;  %v2802_v25 = vor.u32 %v3721_v14, %v2799_v15  ;;  %v2654_v32 = vor.u32 %v3687_v18, %v2653_v17 }
  0x68   : > { %805 = vmatpush.bf16.msra.mxu2 %v2706_v58  ;;  %v3717_v26 = vld [vmem:[#allocation7 + $0x104] sm:$0xf]  ;;  %v2783_v27 = vld [vmem:[#allocation7 + $0x110] sm:$0xf0]  ;;  %v2773_v28 = vld [vmem:[#allocation7 + $0xe8] sm:$0xf]  ;;  %v2782_v36 = vor.u32 %v3719_v22, %v2781_v19  ;;  %v2658_v37 = vor.u32 %v3685_v23, %v2655_v24 }
  0x69   : > { %818 = vmatpush.bf16.msra.mxu3 %v2834_v62  ;;  %v3716_v29 = vld [vmem:[#allocation7 + $0xf4] sm:$0xf0]  ;;  %v2901_v30 = vld [vmem:[#allocation7 + $0x1e8] sm:$0xf]  ;;  %v372_v31 = vld [vmem:[%s4477_s12] sm:$0xff]  ;;  %v2786_v40 = vor.u32 %v3717_v26, %v2783_v27  ;;  %s4637_s2 = scalar_lea.vmem [#allocation11], %s4465_s0 }
  0x6a   : > { %780 = vmatpush.bf16.msra.mxu0 %v2686_v4  ;;  %v3748_v33 = vld [vmem:[#allocation7 + $0x1f4] sm:$0xf0]  ;;  %v3714_v34 = vld [vmem:[#allocation7 + $0xec] sm:$0xf]  ;;  %v2775_v35 = vld [vmem:[#allocation7 + $0xf8] sm:$0xf0]  ;;  %4032 = vtanh.f32 %v372_v31  ;;  %v2774_v41 = vor.u32 %v3716_v29, %v2773_v28 }
  0x6b   : > { %793 = vmatpush.bf16.msra.mxu1 %v2814_v5  ;;  %v3746_v38 = vld [vmem:[#allocation7 + $0x1ec] sm:$0xf]  ;;  %v2903_v39 = vld [vmem:[#allocation7 + $0x1f8] sm:$0xf0]  ;;  %v2757_v42 = vld [vmem:[#allocation7 + $0xc8] sm:$0xf]  ;;  %v2902_v44 = vor.u32 %v3748_v33, %v2901_v30  ;;  %v2778_v45 = vor.u32 %v3714_v34, %v2775_v35 }
  0x6c   : > { %806 = vmatpush.bf16.msra.mxu2 %v2690_v6  ;;  %v3712_v43 = vld [vmem:[#allocation7 + $0xd4] sm:$0xf0]  ;;  %v2885_v46 = vld [vmem:[#allocation7 + $0x1c8] sm:$0xf]  ;;  %v2906_v49 = vor.u32 %v3746_v38, %v2903_v39  ;;  %v3710_v50 = vld [vmem:[#allocation7 + $0xcc] sm:$0xf] }
  0x6d   : > { %819 = vmatpush.bf16.msra.mxu3 %v2818_v10  ;;  %v3744_v47 = vld [vmem:[#allocation7 + $0x1d4] sm:$0xf0]  ;;  %v373_v48 = vld [vmem:[%s4477_s12 + $0x8] sm:$0xff]  ;;  %v2759_v51 = vld [vmem:[#allocation7 + $0xd8] sm:$0xf0]  ;;  %v2758_v56 = vor.u32 %v3712_v43, %v2757_v42  ;;  %s3942_s16 = sshll.u32 %s4342_s25, 5 }
  0x6e   : > { %781 = vmatpush.bf16.msra.mxu0 %v2670_v16  ;;  %v376_v52 = vld [vmem:[%s4469_s26] sm:$0xff]  ;;  %4034 = vtanh.f32 %v373_v48  ;;  %v3742_v53 = vld [vmem:[#allocation7 + $0x1cc] sm:$0xf]  ;;  %v2887_v54 = vld [vmem:[#allocation7 + $0x1d8] sm:$0xf0]  ;;  %v2886_v58 = vor.u32 %v3744_v47, %v2885_v46  ;;  %v2762_v59 = vor.u32 %v3710_v50, %v2759_v51  ;;  %s2502_s15 = scalar_lea.hbm %s4748_s6, %s3942_s16  ;;  %s2503_s29 = sshll.u32 %s4637_s2, 4  ;;  %s2504_s29 = int_to_ptr.vmem [resolvable:$true] %s2503_s29 }
  0x6f   : > { %794 = vmatpush.bf16.msra.mxu1 %v2798_v20  ;;  %v2741_v57 = vld [vmem:[#allocation7 + $0xa8] sm:$0xf]  ;;  %v3708_v61 = vld [vmem:[#allocation7 + $0xb4] sm:$0xf0]  ;;  %v2890_v0 = vor.u32 %v3742_v53, %v2887_v54  ;;  %v3706_v1 = vld [vmem:[#allocation7 + $0xac] sm:$0xf] }
  0x70   : > { %807 = vmatpush.bf16.msra.mxu2 %v2674_v21  ;;  %v4033_v55 = vpop.eup %4032  ;;  %v2869_v62 = vld [vmem:[#allocation7 + $0x1a8] sm:$0xf]  ;;  %v3740_v63 = vld [vmem:[#allocation7 + $0x1b4] sm:$0xf0]  ;;  %v2743_v2 = vld [vmem:[#allocation7 + $0xb8] sm:$0xf0]  ;;  %v2742_v8 = vor.u32 %v3708_v61, %v2741_v57 }
  0x71   : > { %820 = vmatpush.bf16.msra.mxu3 %v2802_v25  ;;  %v378_v60 = vmul.f32 %v4033_v55, %v376_v52  ;;  %v377_v3 = vld [vmem:[%s4469_s26 + $0x8] sm:$0xff]  ;;  %v2871_v6 = vld [vmem:[#allocation7 + $0x1b8] sm:$0xf0]  ;;  %v2870_v9 = vor.u32 %v3740_v63, %v2869_v62  ;;  %v2746_v10 = vor.u32 %v3706_v1, %v2743_v2  ;;  %v3704_v13 = vld [vmem:[#allocation7 + $0x94] sm:$0xf0]  ;;  %s2505_s7 = sshll.u32 %s2502_s15, 4  ;;  %s2506_s7 = int_to_ptr.hbm [resolvable:$true] %s2505_s7 }
  0x72   : > { %782 = vmatpush.bf16.msra.mxu0 %v2654_v32  ;;  %v3738_v5 = vld [vmem:[#allocation7 + $0x1ac] sm:$0xf]  ;;  %v2725_v12 = vld [vmem:[#allocation7 + $0x88] sm:$0xf]  ;;  %v3736_v16 = vld [vmem:[#allocation7 + $0x194] sm:$0xf0] }
  0x73   : > { %795 = vmatpush.bf16.msra.mxu1 %v2782_v36  ;;  %v4495_v4 = vpack.c.bf16 %v378_v60, %v378_v60  ;;  %v2853_v14 = vld [vmem:[#allocation7 + $0x188] sm:$0xf]  ;;  %v2874_v15 = vor.u32 %v3738_v5, %v2871_v6  ;;  %v3702_v17 = vld [vmem:[#allocation7 + $0x8c] sm:$0xf]  ;;  %v2727_v18 = vld [vmem:[#allocation7 + $0x98] sm:$0xf0]  ;;  %v2726_v22 = vor.u32 %v3704_v13, %v2725_v12 }
  0x74   : > { %808 = vmatpush.bf16.msra.mxu2 %v2658_v37  ;;  %v4035_v7 = vpop.eup %4034  ;;  %v3734_v20 = vld [vmem:[#allocation7 + $0x18c] sm:$0xf]  ;;  %v2855_v21 = vld [vmem:[#allocation7 + $0x198] sm:$0xf0]  ;;  %v2854_v23 = vor.u32 %v3736_v16, %v2853_v14  ;;  %v2730_v24 = vor.u32 %v3702_v17, %v2727_v18  ;;  %v2709_v25 = vld [vmem:[#allocation7 + $0x68] sm:$0xf] }
  0x75   : > { %821 = vmatpush.bf16.msra.mxu3 %v2786_v40  ;;  %v379_v11 = vmul.f32 %v4035_v7, %v377_v3  ;;  %783 = vmatmul.bf16.vlgmr.msra.gmra.mxu0 %v4495_v4  ;;  %v3700_v26 = vld [vmem:[#allocation7 + $0x74] sm:$0xf0]  ;;  %v2837_v27 = vld [vmem:[#allocation7 + $0x168] sm:$0xf]  ;;  %v2858_v28 = vor.u32 %v3734_v20, %v2855_v21  ;;  %v3698_v30 = vld [vmem:[#allocation7 + $0x6c] sm:$0xf] }
  0x76   : > { %827 = vmatpush.bf16.msrb.mxu0 %v2774_v41  ;;  %v3732_v29 = vld [vmem:[#allocation7 + $0x174] sm:$0xf0]  ;;  %v2711_v31 = vld [vmem:[#allocation7 + $0x78] sm:$0xf0]  ;;  %v3730_v32 = vld [vmem:[#allocation7 + $0x16c] sm:$0xf]  ;;  %v2710_v34 = vor.u32 %v3700_v26, %v2709_v25 }
  0x77   : > { %840 = vmatpush.bf16.msrb.mxu1 %v2902_v44  ;;  %809 = vmatmul.bf16.vlgmr.msra.gmra.mxu2 %v4495_v4  ;;  %v4498_v19 = vpack.c.bf16 %v379_v11, %v379_v11  ;;  %v2839_v33 = vld [vmem:[#allocation7 + $0x178] sm:$0xf0]  ;;  %v2838_v35 = vor.u32 %v3732_v29, %v2837_v27  ;;  %v2714_v36 = vor.u32 %v3698_v30, %v2711_v31  ;;  %v2693_v37 = vld [vmem:[#allocation7 + $0x48] sm:$0xf]  ;;  %v3696_v38 = vld [vmem:[#allocation7 + $0x54] sm:$0xf0] }
  0x78   : > { %853 = vmatpush.bf16.msrb.mxu2 %v2778_v45  ;;  %v2821_v39 = vld [vmem:[#allocation7 + $0x148] sm:$0xf]  ;;  %v2842_v40 = vor.u32 %v3730_v32, %v2839_v33  ;;  %v3728_v41 = vld [vmem:[#allocation7 + $0x154] sm:$0xf0]  ;;  %v3694_v42 = vld [vmem:[#allocation7 + $0x4c] sm:$0xf]  ;;  %v2694_v46 = vor.u32 %v3696_v38, %v2693_v37 }
  0x79   : > { %866 = vmatpush.bf16.msrb.mxu3 %v2906_v49  ;;  %796 = vmatmul.bf16.vlgmr.msra.gmra.mxu1 %v4498_v19  ;;  %v2695_v43 = vld [vmem:[#allocation7 + $0x58] sm:$0xf0]  ;;  %v3726_v44 = vld [vmem:[#allocation7 + $0x14c] sm:$0xf]  ;;  %v2822_v47 = vor.u32 %v3728_v41, %v2821_v39  ;;  %v2677_v49 = vld [vmem:[#allocation7 + $0x28] sm:$0xf] }
  0x7a   : > { %828 = vmatpush.bf16.msrb.mxu0 %v2758_v56  ;;  %822 = vmatmul.bf16.vlgmr.msra.gmra.mxu3 %v4498_v19  ;;  %v2823_v45 = vld [vmem:[#allocation7 + $0x158] sm:$0xf0]  ;;  %v2698_v48 = vor.u32 %v3694_v42, %v2695_v43  ;;  %v3692_v50 = vld [vmem:[#allocation7 + $0x34] sm:$0xf0]  ;;  %v2805_v51 = vld [vmem:[#allocation7 + $0x128] sm:$0xf] }
  0x7b   : > { %841 = vmatpush.bf16.msrb.mxu1 %v2886_v58  ;;  %v2826_v52 = vor.u32 %v3726_v44, %v2823_v45  ;;  %v3724_v53 = vld [vmem:[#allocation7 + $0x134] sm:$0xf0]  ;;  %v3690_v54 = vld [vmem:[#allocation7 + $0x2c] sm:$0xf]  ;;  %v2679_v55 = vld [vmem:[#allocation7 + $0x38] sm:$0xf0]  ;;  %v2678_v58 = vor.u32 %v3692_v50, %v2677_v49 }
  0x7c   : > { %854 = vmatpush.bf16.msrb.mxu2 %v2762_v59  ;;  %v3722_v56 = vld [vmem:[#allocation7 + $0x12c] sm:$0xf]  ;;  %v2807_v57 = vld [vmem:[#allocation7 + $0x138] sm:$0xf0]  ;;  %v2806_v59 = vor.u32 %v3724_v53, %v2805_v51  ;;  %v2682_v60 = vor.u32 %v3690_v54, %v2679_v55  ;;  %v2661_v61 = vld [vmem:[#allocation7 + $0x8] sm:$0xf] }
  0x7d   : > { %867 = vmatpush.bf16.msrb.mxu3 %v2890_v0  ;;  %v3688_v62 = vld [vmem:[#allocation7 + $0x14] sm:$0xf0]  ;;  %v2789_v63 = vld [vmem:[#allocation7 + $0x108] sm:$0xf]  ;;  %v2810_v0 = vor.u32 %v3722_v56, %v2807_v57  ;;  %v3686_v2 = vld [vmem:[#allocation7 + $0xc] sm:$0xf] }
  0x7e   : > { %829 = vmatpush.bf16.msrb.mxu0 %v2742_v8  ;;  %v3720_v1 = vld [vmem:[#allocation7 + $0x114] sm:$0xf0]  ;;  %v2663_v3 = vld [vmem:[#allocation7 + $0x18] sm:$0xf0]  ;;  %v3718_v5 = vld [vmem:[#allocation7 + $0x10c] sm:$0xf]  ;;  %v2662_v7 = vor.u32 %v3688_v62, %v2661_v61 }
  0x7f   : > { %842 = vmatpush.bf16.msrb.mxu1 %v2870_v9  ;;  %v2791_v6 = vld [vmem:[#allocation7 + $0x118] sm:$0xf0]  ;;  %v2790_v8 = vor.u32 %v3720_v1, %v2789_v63  ;;  %v2666_v9 = vor.u32 %v3686_v2, %v2663_v3  ;;  %v4507_v18 = vld [vmem:[#allocation8] ss:$8 sm:$0xf]  ;;  %v4283_v42 = vmov 512.0  }
  0x80   : > { %855 = vmatpush.bf16.msrb.mxu2 %v2746_v10  ;;  %v2794_v10 = vor.u32 %v3718_v5, %v2791_v6  ;;  %v447_v21 = vperm.slane %v4507_v18, 0  ;;  %v450_v29 = vperm.slane %v4507_v18, 3  ;;  %4036 = vrcp.f32 %v4283_v42  ;;  %v3780_v50 = vld [vmem:[#allocation10 + $0xf4] sm:$0xf0]  ;;  %v3093_v51 = vld [vmem:[#allocation10 + $0x170] sm:$0xf] }
  0x81   : > { %868 = vmatpush.bf16.msrb.mxu3 %v2874_v15  ;;  %v3157_v55 = vld [vmem:[#allocation10 + $0x1f0] sm:$0xf]  ;;  %v3812_v56 = vld [vmem:[#allocation10 + $0x1f4] sm:$0xf0]  ;;  %v2957_v57 = vld [vmem:[#allocation10 + $0x60] sm:$0xf] }
  0x82   : > { %830 = vmatpush.bf16.msrb.mxu0 %v2726_v22  ;;  %v448_v22 = vperm.slane %v4507_v18, 1  ;;  %v3778_v61 = vld [vmem:[#allocation10 + $0xe4] sm:$0xf0]  ;;  %v3149_v2 = vld [vmem:[#allocation10 + $0x1e0] sm:$0xf]  ;;  %s2490_s25 = scalar_lea.sflag [#allocation4], %s4462_s30 }
  0x83   : > { %843 = vmatpush.bf16.msrb.mxu1 %v2854_v23  ;;  %v449_v23 = vperm.slane %v4507_v18, 2  ;;  %v3794_v1 = vld [vmem:[#allocation10 + $0x164] sm:$0xf0]  ;;  %v2949_v6 = vld [vmem:[#allocation10 + $0x50] sm:$0xf]  ;;  %s4210_s13 = sshra.s32 %s2506_s7, 4  ;;  %s4211_s13 = int_to_ptr.hbm [resolvable:$true] %s4210_s13 }
  0x84   : > { %856 = vmatpush.bf16.msrb.mxu2 %v2730_v24  ;;  %v3810_v5 = vld [vmem:[#allocation10 + $0x1e4] sm:$0xf0]  ;;  %v3669_v18 = vld [vmem:[#allocation10 + $0x1f0] sm:$0xf]  ;;  %s4212_s18 = scalar_lea.hbm %s4211_s13, 32  ;;  %s4216_s9 = scalar_lea.hbm %s4748_s6, 64 }
  0x85   : > { %869 = vmatpush.bf16.msrb.mxu3 %v2858_v28  ;;  %p4213_p1 = scmp.ne.s32.totalorder %s4211_s13, %s4212_s18  ;;  %p4217_p9 = scmp.lt.s32.totalorder %s4211_s13, %s4748_s6 }
  0x86   : > { %831 = vmatpush.bf16.msrb.mxu0 %v2710_v34  ;;  %v4533_v43 = vpop.eup %4036  ;;  %p4218_p10 = scmp.lt.s32.totalorder %s4216_s9, %s4212_s18 }
  0x87   : > { %844 = vmatpush.bf16.msrb.mxu1 %v2838_v35  ;;  %v885_v44 = vmul.f32 512.0, %v4533_v43  ;;  %vm889_vm0 = vweird.f32 %v4533_v43  ;;  %p4214_p4 = pnand %p4213_p1, %p4407_p7 }
  0x88   : > { %857 = vmatpush.bf16.msrb.mxu2 %v2714_v36  ;;  %p4219_p2 = por %p4218_p10, %p4217_p9 }
  0x89   : > { %870 = vmatpush.bf16.msrb.mxu3 %v2842_v40  ;;  %v886_v45 = vsub.f32 1.0, %v885_v44  ;;  %p4215_p8 = pneg %p4214_p4 }
  0x8a   : > { %832 = vmatpush.bf16.msrb.mxu0 %v2694_v46  ;;  %v2965_v46 = vld [vmem:[#allocation10 + $0x70] sm:$0xf] }
  0x8b   : > { %845 = vmatpush.bf16.msrb.mxu1 %v2822_v47  ;;  %v3764_v47 = vld [vmem:[#allocation10 + $0x74] sm:$0xf0]  ;;  %p4220_p11 = pnand %p4219_p2, %p4215_p8 }
  0x8c   : > { %858 = vmatpush.bf16.msrb.mxu2 %v2698_v48  ;;  %v3029_v48 = vld [vmem:[#allocation10 + $0xf0] sm:$0xf]  ;;  %v2966_v49 = vor.u32 %v3764_v47, %v2965_v46  ;;  %v3788_v47 = vld [vmem:[#allocation10 + $0x134] sm:$0xf0] }
  0x8d   : > { %871 = vmatpush.bf16.msrb.mxu3 %v2826_v52  ;;  %v3796_v52 = vld [vmem:[#allocation10 + $0x174] sm:$0xf0]  ;;  %v3030_v53 = vor.u32 %v3780_v50, %v3029_v48  ;;  %v3061_v46 = vld [vmem:[#allocation10 + $0x130] sm:$0xf] }
  0x8e   : > { %833 = vmatpush.bf16.msrb.mxu0 %v2678_v58  ;;  %v3094_v54 = vor.u32 %v3796_v52, %v3093_v51  ;;  %v3158_v58 = vor.u32 %v3812_v56, %v3157_v55  ;;  %v3125_v48 = vld [vmem:[#allocation10 + $0x1b0] sm:$0xf]  ;;  %v3062_v52 = vor.u32 %v3788_v47, %v3061_v46  ;;  %v2967_v46 = vld [vmem:[#allocation10 + $0x78] sm:$0xf0]  ;;  %v3779_v47 = vld [vmem:[#allocation10 + $0xf4] sm:$0xf] }
  0x8f   : > { %846 = vmatpush.bf16.msrb.mxu1 %v2806_v59  ;;  %v3762_v59 = vld [vmem:[#allocation10 + $0x64] sm:$0xf0] }
  0x90   : > { %859 = vmatpush.bf16.msrb.mxu2 %v2682_v60  ;;  %v3021_v60 = vld [vmem:[#allocation10 + $0xe0] sm:$0xf]  ;;  %v2958_v62 = vor.u32 %v3762_v59, %v2957_v57 }
  0x91   : > { %872 = vmatpush.bf16.msrb.mxu3 %v2810_v0  ;;  %v3022_v63 = vor.u32 %v3778_v61, %v3021_v60  ;;  %v3085_v0 = vld [vmem:[#allocation10 + $0x160] sm:$0xf]  ;;  %v3786_v60 = vld [vmem:[#allocation10 + $0x124] sm:$0xf0] }
  0x92   : > { %834 = vmatpush.bf16.msrb.mxu0 %v2662_v7  ;;  %v3086_v3 = vor.u32 %v3794_v1, %v3085_v0  ;;  %v3760_v7 = vld [vmem:[#allocation10 + $0x54] sm:$0xf0]  ;;  %v2989_v57 = vld [vmem:[#allocation10 + $0xa0] sm:$0xf] }
  0x93   : > { %847 = vmatpush.bf16.msrb.mxu1 %v2790_v8  ;;  %v3150_v8 = vor.u32 %v3810_v5, %v3149_v2  ;;  %v3053_v59 = vld [vmem:[#allocation10 + $0x120] sm:$0xf]  ;;  %v3752_v5 = vld [vmem:[#allocation10 + $0x14] sm:$0xf0] }
  0x94   : > { %860 = vmatpush.bf16.msrb.mxu2 %v2666_v9  ;;  %v3013_v9 = vld [vmem:[#allocation10 + $0xd0] sm:$0xf]  ;;  %v3117_v61 = vld [vmem:[#allocation10 + $0x1a0] sm:$0xf] }
  0x95   : > { %873 = vmatpush.bf16.msrb.mxu3 %v2794_v10  ;;  %835 = vmatmul.bf16.vlgmr.msrb.gmra.mxu0 %v4495_v4  ;;  %v3776_v10 = vld [vmem:[#allocation10 + $0xd4] sm:$0xf0] }
  0x96   : > { %848 = vmatmul.bf16.vlgmr.msrb.gmra.mxu1 %v4498_v19  ;;  %1344 = vmatpush.bf16.msra.mxu0 %v2966_v49  ;;  %v3804_v49 = vld [vmem:[#allocation10 + $0x1b4] sm:$0xf0] }
  0x97   : > { %861 = vmatmul.bf16.vlgmr.msrb.gmra.mxu2 %v4495_v4  ;;  %1357 = vmatpush.bf16.msra.mxu1 %v3030_v53  ;;  %v2925_v53 = vld [vmem:[#allocation10 + $0x20] sm:$0xf]  ;;  %v3126_v56 = vor.u32 %v3804_v49, %v3125_v48  ;;  %v3031_v48 = vld [vmem:[#allocation10 + $0xf8] sm:$0xf0] }
  0x98   : > { %874 = vmatmul.bf16.vlgmr.msrb.gmra.mxu3 %v4498_v19  ;;  %1370 = vmatpush.bf16.msra.mxu2 %v3094_v54  ;;  %v3754_v54 = vld [vmem:[#allocation10 + $0x24] sm:$0xf0] }
  0x99   : > { %1383 = vmatpush.bf16.msra.mxu3 %v3158_v58  ;;  %v3770_v58 = vld [vmem:[#allocation10 + $0xa4] sm:$0xf0]  ;;  %v2926_v0 = vor.u32 %v3754_v54, %v2925_v53  ;;  %v3811_v53 = vld [vmem:[#allocation10 + $0x1f4] sm:$0xf] }
  0x9a   : > { %1345 = vmatpush.bf16.msra.mxu0 %v2958_v62  ;;  %v3802_v62 = vld [vmem:[#allocation10 + $0x1a4] sm:$0xf0]  ;;  %v2990_v2 = vor.u32 %v3770_v58, %v2989_v57  ;;  %v3761_v57 = vld [vmem:[#allocation10 + $0x64] sm:$0xf]  ;;  %v2959_v58 = vld [vmem:[#allocation10 + $0x68] sm:$0xf0] }
  0x9b   : > { %1358 = vmatpush.bf16.msra.mxu1 %v3022_v63 }
  0x9c   : > { %1371 = vmatpush.bf16.msra.mxu2 %v3086_v3  ;;  %v2917_v3 = vld [vmem:[#allocation10 + $0x10] sm:$0xf] }
  0x9d   : > { %1384 = vmatpush.bf16.msra.mxu3 %v3150_v8  ;;  %v3768_v8 = vld [vmem:[#allocation10 + $0x94] sm:$0xf0] }
  0xf2   : > { %v784_v11 = vpop.f32.mrf.mxu0 }
  0xf3   : > { %v785_v4 = vadd.f32 %v784_v11, %v447_v21  ;;  %v3077_v11 = vld [vmem:[#allocation10 + $0x150] sm:$0xf] }
  0xf6   : > { %v797_v12 = vpop.f32.mrf.mxu1 }
  0xf7   : > { %v4518_v27 = vadd.f32 %v797_v12, %v785_v4  ;;  %v2950_v12 = vor.u32 %v3760_v7, %v2949_v6  ;;  %v3758_v4 = vld [vmem:[#allocation10 + $0x44] sm:$0xf0]  ;;  %v3118_v6 = vor.u32 %v3802_v62, %v3117_v61  ;;  %v2981_v7 = vld [vmem:[#allocation10 + $0x90] sm:$0xf]  ;;  %v3777_v61 = vld [vmem:[#allocation10 + $0xe4] sm:$0xf] }
  0xf8   : > { %v3023_v62 = vld [vmem:[#allocation10 + $0xe8] sm:$0xf0] }
  0xf9   : > { %1346 = vmatpush.bf16.msra.mxu0 %v2950_v12 }
  0xfa   : > { %v810_v13 = vpop.f32.mrf.mxu2  ;;  %v786_v14 = vpop.f32.mrf.mxu0 }
  0xfb   : > { %v811_v19 = vadd.f32 %v810_v13, %v448_v22  ;;  %v3792_v13 = vld [vmem:[#allocation10 + $0x154] sm:$0xf0]  ;;  %v3141_v14 = vld [vmem:[#allocation10 + $0x1d0] sm:$0xf] }
  0xfd   : > { %v823_v15 = vpop.f32.mrf.mxu3 }
  0xfe   : > { %v799_v16 = vpop.f32.mrf.mxu1  ;;  %v4520_v28 = vadd.f32 %v823_v15, %v811_v19  ;;  %v3808_v15 = vld [vmem:[#allocation10 + $0x1d4] sm:$0xf0]  ;;  %v3005_v19 = vld [vmem:[#allocation10 + $0xc0] sm:$0xf] }
  0xff   : > { %v3014_v16 = vor.u32 %v3776_v10, %v3013_v9  ;;  %v3045_v9 = vld [vmem:[#allocation10 + $0x110] sm:$0xf] }
 0x100   : > { %v879_v32 = vadd.f32 %v4520_v28, %v4518_v27 }
 0x101   : > { %1359 = vmatpush.bf16.msra.mxu1 %v3014_v16  ;;  %v2918_v16 = vor.u32 %v3752_v5, %v2917_v3  ;;  %v3151_v3 = vld [vmem:[#allocation10 + $0x1e8] sm:$0xf0] }
 0x102   : > { %v812_v17 = vpop.f32.mrf.mxu2 }
 0x103   : > { %v3078_v17 = vor.u32 %v3792_v13, %v3077_v11  ;;  %v3784_v13 = vld [vmem:[#allocation10 + $0x114] sm:$0xf0] }
 0x105   : > { %v825_v20 = vpop.f32.mrf.mxu3  ;;  %1372 = vmatpush.bf16.msra.mxu2 %v3078_v17 }
 0x106   : > { %v2941_v20 = vld [vmem:[#allocation10 + $0x40] sm:$0xf] }
 0x112   : > { %v836_v24 = vpop.f32.mrf.mxu0 }
 0x113   : > { %v849_v25 = vpop.f32.mrf.mxu1  ;;  %v837_v26 = vadd.f32 %v836_v24, %v449_v23  ;;  %v887_v24 = vmul.f32 %v4533_v43, %v886_v45  ;;  %v3772_v45 = vld [vmem:[#allocation10 + $0xb4] sm:$0xf0] }
 0x115   : > { %v4523_v30 = vadd.f32 %v849_v25, %v837_v26  ;;  %v3142_v25 = vor.u32 %v3808_v15, %v3141_v14  ;;  %v3774_v26 = vld [vmem:[#allocation10 + $0xc4] sm:$0xf0]  ;;  %v888_v42 = vadd.f32 %v4533_v43, %v887_v24  ;;  %v3109_v14 = vld [vmem:[#allocation10 + $0x190] sm:$0xf]  ;;  %v3800_v15 = vld [vmem:[#allocation10 + $0x194] sm:$0xf0] }
 0x117   : > { %v880_v38 = vadd.f32 %v879_v32, %v4523_v30  ;;  %v3790_v32 = vld [vmem:[#allocation10 + $0x144] sm:$0xf0]  ;;  %1385 = vmatpush.bf16.msra.mxu3 %v3142_v25  ;;  %v4540_v55 = vsel %vm889_vm0, %v4533_v43, %v888_v42  ;;  %v3054_v43 = vor.u32 %v3786_v60, %v3053_v59  ;;  %v2962_v60 = vor.u32 %v3761_v57, %v2959_v58  ;;  %v3785_v57 = vld [vmem:[#allocation10 + $0x124] sm:$0xf]  ;;  %v3055_v58 = vld [vmem:[#allocation10 + $0x128] sm:$0xf0] }
 0x118   : > { %v3798_v42 = vld [vmem:[#allocation10 + $0x184] sm:$0xf0] }
 0x11a   : > { %v862_v31 = vpop.f32.mrf.mxu2  ;;  %v838_v35 = vpop.f32.mrf.mxu0 }
 0x11b   : > { %v863_v33 = vadd.f32 %v862_v31, %v450_v29  ;;  %v875_v34 = vpop.f32.mrf.mxu3  ;;  %v851_v36 = vpop.f32.mrf.mxu1  ;;  %v3069_v31 = vld [vmem:[#allocation10 + $0x140] sm:$0xf]  ;;  %v2942_v35 = vor.u32 %v3758_v4, %v2941_v20  ;;  %v3110_v4 = vor.u32 %v3800_v15, %v3109_v14  ;;  %v3791_v14 = vld [vmem:[#allocation10 + $0x154] sm:$0xf]  ;;  %v3079_v15 = vld [vmem:[#allocation10 + $0x158] sm:$0xf0] }
 0x11c   : > { %v3006_v36 = vor.u32 %v3774_v26, %v3005_v19 }
 0x11d   : > { %v4529_v37 = vadd.f32 %v875_v34, %v863_v33  ;;  %v3133_v33 = vld [vmem:[#allocation10 + $0x1c0] sm:$0xf]  ;;  %v3806_v34 = vld [vmem:[#allocation10 + $0x1c4] sm:$0xf0]  ;;  %1347 = vmatpush.bf16.msra.mxu0 %v2942_v35 }
 0x11e   : > { %v3134_v44 = vor.u32 %v3806_v34, %v3133_v33  ;;  %1360 = vmatpush.bf16.msra.mxu1 %v3006_v36  ;;  %v2973_v33 = vld [vmem:[#allocation10 + $0x80] sm:$0xf]  ;;  %v3766_v35 = vld [vmem:[#allocation10 + $0x84] sm:$0xf0] }
 0x11f   : > { %v881_v39 = vadd.f32 %v880_v38, %v4529_v37  ;;  %v3070_v38 = vor.u32 %v3790_v32, %v3069_v31  ;;  %v2909_v31 = vld [vmem:[#allocation10] sm:$0xf]  ;;  %v3750_v32 = vld [vmem:[#allocation10 + $0x4] sm:$0xf0] }
 0x120   : > { %1386 = vmatpush.bf16.msra.mxu3 %v3134_v44  ;;  %v2910_v34 = vor.u32 %v3750_v32, %v2909_v31  ;;  %v3037_v36 = vld [vmem:[#allocation10 + $0x100] sm:$0xf]  ;;  %v3763_v44 = vld [vmem:[#allocation10 + $0x74] sm:$0xf]  ;;  %v3071_v31 = vld [vmem:[#allocation10 + $0x148] sm:$0xf0] }
 0x121   : > { %882 = vadd.xlane.f32.xlu0 %v881_v39  ;;  %v2933_v39 = vld [vmem:[#allocation10 + $0x30] sm:$0xf]  ;;  %1373 = vmatpush.bf16.msra.mxu2 %v3070_v38  ;;  %v3782_v38 = vld [vmem:[#allocation10 + $0x104] sm:$0xf0]  ;;  %v2970_v49 = vor.u32 %v3763_v44, %v2967_v46  ;;  %v3787_v44 = vld [vmem:[#allocation10 + $0x134] sm:$0xf] }
 0x122   : > { %v864_v40 = vpop.f32.mrf.mxu2 }
 0x123   : > { %v877_v41 = vpop.f32.mrf.mxu3  ;;  %v3756_v40 = vld [vmem:[#allocation10 + $0x34] sm:$0xf0] }
 0x124   : > { %v2997_v41 = vld [vmem:[#allocation10 + $0xb0] sm:$0xf]  ;;  %v2934_v50 = vor.u32 %v3756_v40, %v2933_v39  ;;  %1387 = vmatpush.bf16.msra.mxu3 %v3126_v56  ;;  %v2974_v39 = vor.u32 %v3766_v35, %v2973_v33  ;;  %v3038_v40 = vor.u32 %v3782_v38, %v3037_v36  ;;  %v3159_v56 = vld [vmem:[#allocation10 + $0x1f8] sm:$0xf0]  ;;  %v3135_v35 = vld [vmem:[#allocation10 + $0x1c8] sm:$0xf0] }
 0x125   : > { %v2998_v51 = vor.u32 %v3772_v45, %v2997_v41  ;;  %1374 = vmatpush.bf16.msra.mxu2 %v3062_v52  ;;  %v3101_v41 = vld [vmem:[#allocation10 + $0x180] sm:$0xf]  ;;  %v3095_v52 = vld [vmem:[#allocation10 + $0x178] sm:$0xf0]  ;;  %v3162_v59 = vor.u32 %v3811_v53, %v3159_v56  ;;  %v3755_v38 = vld [vmem:[#allocation10 + $0x34] sm:$0xf] }
 0x126   : > { %1348 = vmatpush.bf16.msra.mxu0 %v2934_v50  ;;  %v3102_v45 = vor.u32 %v3798_v42, %v3101_v41  ;;  %v3034_v50 = vor.u32 %v3779_v47, %v3031_v48  ;;  %v2999_v42 = vld [vmem:[#allocation10 + $0xb8] sm:$0xf0]  ;;  %v3803_v48 = vld [vmem:[#allocation10 + $0x1b4] sm:$0xf]  ;;  %v3769_v53 = vld [vmem:[#allocation10 + $0xa4] sm:$0xf] }
 0x127   : > { %1361 = vmatpush.bf16.msra.mxu1 %v2998_v51  ;;  %v3795_v51 = vld [vmem:[#allocation10 + $0x174] sm:$0xf]  ;;  %v2991_v56 = vld [vmem:[#allocation10 + $0xa8] sm:$0xf0] }
 0x128   : > { %1388 = vmatpush.bf16.msra.mxu3 %v3118_v6  ;;  %v3098_v54 = vor.u32 %v3795_v51, %v3095_v52  ;;  %v3759_v6 = vld [vmem:[#allocation10 + $0x54] sm:$0xf]  ;;  %v3753_v51 = vld [vmem:[#allocation10 + $0x24] sm:$0xf]  ;;  %v2927_v52 = vld [vmem:[#allocation10 + $0x28] sm:$0xf0] }
 0x129   : > { %1375 = vmatpush.bf16.msra.mxu2 %v3054_v43 }
 0x12a   : > { %1349 = vmatpush.bf16.msra.mxu0 %v2926_v0  ;;  %v3026_v0 = vor.u32 %v3777_v61, %v3023_v62  ;;  %v3801_v61 = vld [vmem:[#allocation10 + $0x1a4] sm:$0xf]  ;;  %v3119_v62 = vld [vmem:[#allocation10 + $0x1a8] sm:$0xf0] }
 0x12b   : > { %1362 = vmatpush.bf16.msra.mxu1 %v2990_v2  ;;  %v3809_v2 = vld [vmem:[#allocation10 + $0x1e4] sm:$0xf] }
 0x12c   : > { %1389 = vmatpush.bf16.msra.mxu3 %v3110_v4  ;;  %v3154_v43 = vor.u32 %v3809_v2, %v3151_v3  ;;  %v3757_v4 = vld [vmem:[#allocation10 + $0x44] sm:$0xf]  ;;  %v3767_v2 = vld [vmem:[#allocation10 + $0x94] sm:$0xf]  ;;  %v2983_v3 = vld [vmem:[#allocation10 + $0x98] sm:$0xf0] }
 0x12e   : > { %1350 = vmatpush.bf16.msra.mxu0 %v2918_v16 }
 0x130   : > { %1390 = vmatpush.bf16.msra.mxu3 %v3102_v45  ;;  %v3063_v45 = vld [vmem:[#allocation10 + $0x138] sm:$0xf0] }
 0x131   : > { %v3066_v47 = vor.u32 %v3787_v44, %v3063_v45 }
 0x132   : > { %1351 = vmatpush.bf16.msra.mxu0 %v2910_v34  ;;  %v3805_v34 = vld [vmem:[#allocation10 + $0x1c4] sm:$0xf] }
 0x133   : > { %v3138_v36 = vor.u32 %v3805_v34, %v3135_v35 }
 0x134   : > { %1435 = vmatpush.bf16.msrb.mxu3 %v3162_v59  ;;  %v2994_v59 = vor.u32 %v3769_v53, %v2991_v56 }
 0x136   : > { %1396 = vmatpush.bf16.msrb.mxu0 %v2970_v49  ;;  %v3127_v49 = vld [vmem:[#allocation10 + $0x1b8] sm:$0xf0] }
 0x138   : > { %1436 = vmatpush.bf16.msrb.mxu3 %v3154_v43  ;;  %v3047_v43 = vld [vmem:[#allocation10 + $0x118] sm:$0xf0] }
 0x13a   : > { %1397 = vmatpush.bf16.msrb.mxu0 %v2962_v60  ;;  %v3058_v60 = vor.u32 %v3785_v57, %v3055_v58 }
 0x194   : > { %v883_v63 = vpop.xlane.xlu0 %882 }
 0x195   : > { %v891_v1 = vmul.f32 %v4540_v55, %v883_v63  ;;  %v3793_v63 = vld [vmem:[#allocation10 + $0x164] sm:$0xf] }
 0x197   : > { %v4544_v10 = vsub.f32 %v4518_v27, %v891_v1  ;;  %v4547_v11 = vsub.f32 %v4520_v28, %v891_v1  ;;  %v4550_v12 = vsub.f32 %v4523_v30, %v891_v1  ;;  %v4553_v17 = vsub.f32 %v4529_v37, %v891_v1  ;;  %v3087_v1 = vld [vmem:[#allocation10 + $0x168] sm:$0xf0] }
 0x198   : > { %v2982_v28 = vor.u32 %v3768_v8, %v2981_v7  ;;  %v3046_v30 = vor.u32 %v3784_v13, %v3045_v9  ;;  %v3090_v5 = vor.u32 %v3793_v63, %v3087_v1  ;;  %v2951_v7 = vld [vmem:[#allocation10 + $0x58] sm:$0xf0]  ;;  %v3775_v8 = vld [vmem:[#allocation10 + $0xd4] sm:$0xf] }
 0x199   : > { %v896_v20 = vmul.f32 %v4544_v10, %v4544_v10  ;;  %v897_v27 = vmul.f32 %v4547_v11, %v4547_v11  ;;  %v898_v19 = vmul.f32 %v4550_v12, %v4550_v12  ;;  %v899_v37 = vmul.f32 %v4553_v17, %v4553_v17  ;;  %v3015_v13 = vld [vmem:[#allocation10 + $0xd8] sm:$0xf0]  ;;  %v3751_v63 = vld [vmem:[#allocation10 + $0x14] sm:$0xf] }
 0x19a   : > { %1363 = vmatpush.bf16.msra.mxu1 %v2982_v28  ;;  %1376 = vmatpush.bf16.msra.mxu2 %v3046_v30  ;;  %v2954_v9 = vor.u32 %v3759_v6, %v2951_v7  ;;  %v3018_v16 = vor.u32 %v3775_v8, %v3015_v13  ;;  %v3143_v28 = vld [vmem:[#allocation10 + $0x1d8] sm:$0xf0]  ;;  %v3799_v6 = vld [vmem:[#allocation10 + $0x194] sm:$0xf]  ;;  %v2986_v8 = vor.u32 %v3767_v2, %v2983_v3  ;;  %v3749_v13 = vld [vmem:[#allocation10 + $0x4] sm:$0xf] }
 0x19b   : > { %v900_v24 = vadd.f32 %v897_v27, %v896_v20  ;;  %v3082_v20 = vor.u32 %v3791_v14, %v3079_v15  ;;  %v3807_v27 = vld [vmem:[#allocation10 + $0x1d4] sm:$0xf]  ;;  %v2919_v1 = vld [vmem:[#allocation10 + $0x18] sm:$0xf0]  ;;  %v2911_v15 = vld [vmem:[#allocation10 + $0x8] sm:$0xf0] }
 0x19c   : > { %v3146_v30 = vor.u32 %v3807_v27, %v3143_v28  ;;  %1398 = vmatpush.bf16.msrb.mxu0 %v2954_v9  ;;  %v2922_v7 = vor.u32 %v3751_v63, %v2919_v1  ;;  %v3111_v9 = vld [vmem:[#allocation10 + $0x198] sm:$0xf0]  ;;  %v3781_v28 = vld [vmem:[#allocation10 + $0x104] sm:$0xf]  ;;  %v3843_v63 = vld [vmem:[#allocation7 + $0xec] sm:$0xf0] }
 0x19d   : > { %v901_v25 = vadd.f32 %v900_v24, %v898_v19  ;;  %v2943_v19 = vld [vmem:[#allocation10 + $0x48] sm:$0xf0]  ;;  %v3773_v24 = vld [vmem:[#allocation10 + $0xc4] sm:$0xf]  ;;  %v3114_v27 = vor.u32 %v3799_v6, %v3111_v9  ;;  %v3875_v1 = vld [vmem:[#allocation7 + $0x1ec] sm:$0xf0] }
 0x19e   : > { %1364 = vmatpush.bf16.msra.mxu1 %v2974_v39  ;;  %1377 = vmatpush.bf16.msra.mxu2 %v3038_v40  ;;  %v2935_v39 = vld [vmem:[#allocation10 + $0x38] sm:$0xf0]  ;;  %v3771_v40 = vld [vmem:[#allocation10 + $0xb4] sm:$0xf]  ;;  %v3841_v2 = vld [vmem:[#allocation7 + $0xe4] sm:$0xf] }
 0x19f   : > { %v902_v26 = vadd.f32 %v901_v25, %v899_v37  ;;  %v2946_v37 = vor.u32 %v3757_v4, %v2943_v19  ;;  %v3007_v25 = vld [vmem:[#allocation10 + $0xc8] sm:$0xf0]  ;;  %1437 = vmatpush.bf16.msrb.mxu3 %v3146_v30  ;;  %v2938_v41 = vor.u32 %v3755_v38, %v2935_v39  ;;  %v3002_v46 = vor.u32 %v3771_v40, %v2999_v42  ;;  %v3797_v4 = vld [vmem:[#allocation10 + $0x184] sm:$0xf]  ;;  %v3279_v3 = vld [vmem:[#allocation7 + $0xf0] sm:$0xf0] }
 0x1a0   : > { %v3010_v32 = vor.u32 %v3773_v24, %v3007_v25  ;;  %v3039_v30 = vld [vmem:[#allocation10 + $0x108] sm:$0xf0]  ;;  %v2914_v24 = vor.u32 %v3749_v13, %v2911_v15  ;;  %v4564_v39 = vld [vmem:[#allocation8 + $0x1] ss:$8 sm:$0xf] }
 0x1a1   : > { %903 = vadd.xlane.f32.xlu0 %v902_v26  ;;  %v3789_v26 = vld [vmem:[#allocation10 + $0x144] sm:$0xf]  ;;  %1399 = vmatpush.bf16.msrb.mxu0 %v2946_v37  ;;  %v3103_v19 = vld [vmem:[#allocation10 + $0x188] sm:$0xf0]  ;;  %v922_v44 = vperm.slane %v4564_v39, 0 }
 0x1a2   : > { %1409 = vmatpush.bf16.msrb.mxu1 %v3034_v50  ;;  %1422 = vmatpush.bf16.msrb.mxu2 %v3098_v54  ;;  %v3074_v33 = vor.u32 %v3789_v26, %v3071_v31  ;;  %v3130_v50 = vor.u32 %v3803_v48, %v3127_v49  ;;  %v2930_v54 = vor.u32 %v3753_v51, %v2927_v52  ;;  %v925_v48 = vperm.slane %v4564_v39, 3  ;;  %v3407_v9 = vld [vmem:[#allocation7 + $0x1f0] sm:$0xf0] }
 0x1a3   : > { %1438 = vmatpush.bf16.msrb.mxu3 %v3138_v36  ;;  %v3042_v26 = vor.u32 %v3781_v28, %v3039_v30  ;;  %v3261_v28 = vld [vmem:[#allocation7 + $0xc0] sm:$0xf]  ;;  %v3839_v30 = vld [vmem:[#allocation7 + $0xcc] sm:$0xf0] }
 0x1a5   : > { %1400 = vmatpush.bf16.msrb.mxu0 %v2938_v41  ;;  %v4566_v41 = vld [vmem:[#allocation8 + $0x2] ss:$8 sm:$0xf] }
 0x1a6   : > { %1410 = vmatpush.bf16.msrb.mxu1 %v3026_v0  ;;  %1423 = vmatpush.bf16.msrb.mxu2 %v3090_v5  ;;  %v3122_v0 = vor.u32 %v3801_v61, %v3119_v62  ;;  %v3783_v5 = vld [vmem:[#allocation10 + $0x114] sm:$0xf]  ;;  %v935_v45 = vperm.slane %v4566_v41, 0  ;;  %v937_v51 = vperm.slane %v4566_v41, 2  ;;  %v938_v52 = vperm.slane %v4566_v41, 3 }
 0x1a7   : > { %1439 = vmatpush.bf16.msrb.mxu3 %v3130_v50  ;;  %v3050_v14 = vor.u32 %v3783_v5, %v3047_v43  ;;  %v936_v50 = vperm.slane %v4566_v41, 1  ;;  %v3277_v62 = vld [vmem:[#allocation7 + $0xe0] sm:$0xf]  ;;  %v3873_v5 = vld [vmem:[#allocation7 + $0x1e4] sm:$0xf] }
 0x1a8   : > { %v3278_v13 = vor.u32 %v3843_v63, %v3277_v62  ;;  %v3231_v63 = vld [vmem:[#allocation7 + $0x90] sm:$0xf0] }
 0x1a9   : > { %1401 = vmatpush.bf16.msrb.mxu0 %v2930_v54 }
 0x1aa   : > { %1411 = vmatpush.bf16.msrb.mxu1 %v3018_v16  ;;  %1424 = vmatpush.bf16.msrb.mxu2 %v3082_v20  ;;  %v3765_v16 = vld [vmem:[#allocation10 + $0x84] sm:$0xf]  ;;  %v2975_v20 = vld [vmem:[#allocation10 + $0x88] sm:$0xf0] }
 0x1ab   : > { %1440 = vmatpush.bf16.msrb.mxu3 %v3122_v0  ;;  %v2978_v37 = vor.u32 %v3765_v16, %v2975_v20  ;;  %v3405_v0 = vld [vmem:[#allocation7 + $0x1e0] sm:$0xf] }
 0x1ad   : > { %1402 = vmatpush.bf16.msrb.mxu0 %v2922_v7 }
 0x1ae   : > { %1412 = vmatpush.bf16.msrb.mxu1 %v3010_v32  ;;  %1425 = vmatpush.bf16.msrb.mxu2 %v3074_v33  ;;  %v3106_v32 = vor.u32 %v3797_v4, %v3103_v19  ;;  %v3282_v4 = vor.u32 %v3841_v2, %v3279_v3  ;;  %v3410_v19 = vor.u32 %v3873_v5, %v3407_v9  ;;  %v3213_v5 = vld [vmem:[#allocation7 + $0x60] sm:$0xf]  ;;  %v3859_v9 = vld [vmem:[#allocation7 + $0x16c] sm:$0xf0] }
 0x1af   : > { %1441 = vmatpush.bf16.msrb.mxu3 %v3114_v27 }
 0x1b1   : > { %1403 = vmatpush.bf16.msrb.mxu0 %v2914_v24  ;;  %v3389_v24 = vld [vmem:[#allocation7 + $0x1c0] sm:$0xf] }
 0x1b2   : > { %1413 = vmatpush.bf16.msrb.mxu1 %v3002_v46  ;;  %1426 = vmatpush.bf16.msrb.mxu2 %v3066_v47  ;;  %v923_v46 = vperm.slane %v4564_v39, 1  ;;  %v924_v47 = vperm.slane %v4564_v39, 2 }
 0x1b3   : > { %1442 = vmatpush.bf16.msrb.mxu3 %v3106_v32  ;;  %v3391_v32 = vld [vmem:[#allocation7 + $0x1d0] sm:$0xf0] }
 0x1b6   : > { %1414 = vmatpush.bf16.msrb.mxu1 %v2994_v59  ;;  %1427 = vmatpush.bf16.msrb.mxu2 %v3058_v60 }
 0x1ba   : > { %1415 = vmatpush.bf16.msrb.mxu1 %v2986_v8  ;;  %1428 = vmatpush.bf16.msrb.mxu2 %v3050_v14  ;;  %v3406_v14 = vor.u32 %v3875_v1, %v3405_v0  ;;  %v3861_v0 = vld [vmem:[#allocation7 + $0x184] sm:$0xf]  ;;  %v3359_v1 = vld [vmem:[#allocation7 + $0x190] sm:$0xf0] }
 0x1be   : > { %1416 = vmatpush.bf16.msrb.mxu1 %v2978_v37  ;;  %1429 = vmatpush.bf16.msrb.mxu2 %v3042_v26  ;;  %v3871_v37 = vld [vmem:[#allocation7 + $0x1cc] sm:$0xf0]  ;;  %v3263_v26 = vld [vmem:[#allocation7 + $0xd0] sm:$0xf0] }
 0x214   : > { %v904_v25 = vpop.xlane.xlu0 %903 }
 0x215   : > { %v905_v31 = vmul.f32 %v904_v25, %v4540_v55  ;;  %v3837_v25 = vld [vmem:[#allocation7 + $0xc4] sm:$0xf] }
 0x217   : > { %v906_v33 = vadd.f32 1e-05, %v905_v31  ;;  %v3869_v31 = vld [vmem:[#allocation7 + $0x1c4] sm:$0xf] }
 0x219   : > { %4038 = vrsqrt.f32 %v906_v33  ;;  %vm913_vm2 = vweird.f32 %v906_v33 }
 0x21f   : > { %v4039_v34 = vpop.eup %4038 }
 0x220   : > { %v908_v35 = vmul.f32 %v4039_v34, %v906_v33  ;;  %vm914_vm1 = vweird.f32 %v4039_v34  ;;  %v3262_v33 = vor.u32 %v3839_v30, %v3261_v28  ;;  %v3857_v28 = vld [vmem:[#allocation7 + $0x164] sm:$0xf]  ;;  %v3343_v30 = vld [vmem:[#allocation7 + $0x170] sm:$0xf0] }
 0x221   : > { %vm915_vm3 = vmor %vm913_vm2, %vm914_vm1 }
 0x222   : > { %v909_v36 = vmul.f32 %v4039_v34, %v908_v35  ;;  %v3245_v35 = vld [vmem:[#allocation7 + $0xa0] sm:$0xf] }
 0x224   : > { %v910_v38 = vmul.f32 0.5, %v909_v36  ;;  %v3835_v36 = vld [vmem:[#allocation7 + $0xac] sm:$0xf0] }
 0x226   : > { %v911_v40 = vsub.f32 1.5, %v910_v38  ;;  %v3266_v38 = vor.u32 %v3837_v25, %v3263_v26  ;;  %v3823_v25 = vld [vmem:[#allocation7 + $0x4c] sm:$0xf0]  ;;  %v1451_v26 = vld [vmem:[%s4477_s12 + $0x18] sm:$0xff] }
 0x228   : > { %v912_v42 = vmul.f32 %v4039_v34, %v911_v40  ;;  %v3394_v40 = vor.u32 %v3869_v31, %v3391_v32  ;;  %v3346_v32 = vor.u32 %v3857_v28, %v3343_v30  ;;  %v3876_v28 = vld [vmem:[#allocation7 + $0x1f4] sm:$0xf0]  ;;  %v3842_v30 = vld [vmem:[#allocation7 + $0xec] sm:$0xf] }
 0x22a   : > { %v916_v49 = vsel %vm915_vm3, %v4039_v34, %v912_v42  ;;  %v3390_v34 = vor.u32 %v3871_v37, %v3389_v24  ;;  %v3373_v42 = vld [vmem:[#allocation7 + $0x1a0] sm:$0xf] }
 0x22b   : > { %v917_v53 = vmul.f32 %v916_v49, %v4544_v10  ;;  %v918_v54 = vmul.f32 %v916_v49, %v4547_v11  ;;  %v919_v56 = vmul.f32 %v916_v49, %v4550_v12  ;;  %v920_v57 = vmul.f32 %v916_v49, %v4553_v17  ;;  %v3867_v49 = vld [vmem:[#allocation7 + $0x1ac] sm:$0xf0]  ;;  %v3197_v37 = vld [vmem:[#allocation7 + $0x40] sm:$0xf] }
 0x22d   : > { %v930_v58 = vmul.f32 %v922_v44, %v917_v53  ;;  %v931_v59 = vmul.f32 %v923_v46, %v918_v54  ;;  %v932_v60 = vmul.f32 %v924_v47, %v919_v56  ;;  %v933_v61 = vmul.f32 %v925_v48, %v920_v57  ;;  %v3833_v53 = vld [vmem:[#allocation7 + $0xa4] sm:$0xf]  ;;  %v3247_v54 = vld [vmem:[#allocation7 + $0xb0] sm:$0xf0] }
 0x22e   : > { %v3865_v56 = vld [vmem:[#allocation7 + $0x1a4] sm:$0xf]  ;;  %v3375_v57 = vld [vmem:[#allocation7 + $0x1b0] sm:$0xf0]  ;;  %v3250_v62 = vor.u32 %v3833_v53, %v3247_v54  ;;  %v3181_v53 = vld [vmem:[#allocation7 + $0x20] sm:$0xf] }
 0x22f   : > { %v943_v10 = vadd.f32 %v935_v45, %v930_v58  ;;  %v944_v11 = vadd.f32 %v936_v50, %v931_v59  ;;  %v945_v12 = vadd.f32 %v937_v51, %v932_v60  ;;  %v946_v17 = vadd.f32 %v938_v52, %v933_v61  ;;  %v3229_v60 = vld [vmem:[#allocation7 + $0x80] sm:$0xf]  ;;  %v3831_v61 = vld [vmem:[#allocation7 + $0x8c] sm:$0xf0] }
 0x230   : > { %v3246_v58 = vor.u32 %v3835_v36, %v3245_v35  ;;  %v3374_v59 = vor.u32 %v3867_v49, %v3373_v42  ;;  %v3230_v2 = vor.u32 %v3831_v61, %v3229_v60  ;;  %v3821_v35 = vld [vmem:[#allocation7 + $0x44] sm:$0xf]  ;;  %v3199_v36 = vld [vmem:[#allocation7 + $0x50] sm:$0xf0]  ;;  %v3198_v42 = vor.u32 %v3823_v25, %v3197_v37  ;;  %v3819_v54 = vld [vmem:[#allocation7 + $0x2c] sm:$0xf0] }
 0x231   : > { %v947_v43 = vmax.f32 %v943_v10, 0.0  ;;  %v948_v6 = vmax.f32 %v944_v11, 0.0  ;;  %v949_v7 = vmax.f32 %v945_v12, 0.0  ;;  %v950_v8 = vmax.f32 %v946_v17, 0.0  ;;  %v3357_v11 = vld [vmem:[#allocation7 + $0x180] sm:$0xf] }
 0x232   : > { %v3378_v10 = vor.u32 %v3865_v56, %v3375_v57  ;;  %v3863_v12 = vld [vmem:[#allocation7 + $0x18c] sm:$0xf0]  ;;  %v3829_v17 = vld [vmem:[#allocation7 + $0x84] sm:$0xf]  ;;  %v3311_v61 = vld [vmem:[#allocation7 + $0x130] sm:$0xf0] }
 0x233   : > { %v4596_v15 = vpack.c.bf16 %v947_v43, %v947_v43  ;;  %v4598_v16 = vpack.c.bf16 %v948_v6, %v948_v6  ;;  %v4600_v20 = vpack.c.bf16 %v949_v7, %v949_v7  ;;  %v4602_v27 = vpack.c.bf16 %v950_v8, %v950_v8  ;;  %v3827_v43 = vld [vmem:[#allocation7 + $0x6c] sm:$0xf0]  ;;  %v3341_v8 = vld [vmem:[#allocation7 + $0x160] sm:$0xf]  ;;  %v3849_v60 = vld [vmem:[#allocation7 + $0x124] sm:$0xf] }
 0x234   : > { %v3358_v3 = vor.u32 %v3863_v12, %v3357_v11  ;;  %v3234_v6 = vor.u32 %v3829_v17, %v3231_v63  ;;  %v3362_v7 = vor.u32 %v3861_v0, %v3359_v1  ;;  %v3342_v24 = vor.u32 %v3859_v9, %v3341_v8  ;;  %v3851_v57 = vld [vmem:[#allocation7 + $0x12c] sm:$0xf0]  ;;  %v3813_v63 = vld [vmem:[#allocation7 + $0x4] sm:$0xf]  ;;  %v3167_v0 = vld [vmem:[#allocation7 + $0x10] sm:$0xf0] }
 0x235   : > { %1352 = vmatmul.bf16.vlgmr.msra.gmra.mxu0 %v4596_v15  ;;  %1365 = vmatmul.bf16.vlgmr.msra.gmra.mxu1 %v4598_v16  ;;  %v3182_v11 = vor.u32 %v3819_v54, %v3181_v53  ;;  %v3847_v17 = vld [vmem:[#allocation7 + $0x10c] sm:$0xf0]  ;;  %v3285_v8 = vld [vmem:[#allocation7 + $0xe8] sm:$0xf]  ;;  %v3844_v9 = vld [vmem:[#allocation7 + $0xf4] sm:$0xf0] }
 0x236   : > { %1378 = vmatmul.bf16.vlgmr.msra.gmra.mxu2 %v4600_v20  ;;  %1391 = vmatmul.bf16.vlgmr.msra.gmra.mxu3 %v4602_v27  ;;  %v3415_v37 = vld [vmem:[#allocation7 + $0x1f8] sm:$0xf0]  ;;  %v3838_v53 = vld [vmem:[#allocation7 + $0xcc] sm:$0xf] }
 0x237   : > { %1844 = vmatpush.bf16.msra.mxu0 %v3278_v13  ;;  %1857 = vmatpush.bf16.msra.mxu1 %v3406_v14  ;;  %v3825_v13 = vld [vmem:[#allocation7 + $0x64] sm:$0xf]  ;;  %v3215_v14 = vld [vmem:[#allocation7 + $0x70] sm:$0xf0]  ;;  %v3271_v54 = vld [vmem:[#allocation7 + $0xd8] sm:$0xf0] }
 0x238   : > { %1870 = vmatpush.bf16.msra.mxu2 %v3282_v4  ;;  %1883 = vmatpush.bf16.msra.mxu3 %v3410_v19  ;;  %v1450_v4 = vld [vmem:[%s4477_s12 + $0x10] sm:$0xff]  ;;  %v3214_v19 = vor.u32 %v3827_v43, %v3213_v5  ;;  %v3218_v31 = vor.u32 %v3825_v13, %v3215_v14  ;;  %v3845_v5 = vld [vmem:[#allocation7 + $0x104] sm:$0xf]  ;;  %v3413_v14 = vld [vmem:[#allocation7 + $0x1e8] sm:$0xf] }
 0x239   : > { %4040 = vtanh.f32 %v1450_v4  ;;  %v1454_v43 = vld [vmem:[%s4469_s26 + $0x10] sm:$0xff] }
 0x23a   : > { %4042 = vtanh.f32 %v1451_v26 }
 0x23b   : > { %1845 = vmatpush.bf16.msra.mxu0 %v3262_v33  ;;  %1858 = vmatpush.bf16.msra.mxu1 %v3390_v34  ;;  %v3325_v33 = vld [vmem:[#allocation7 + $0x140] sm:$0xf]  ;;  %v3855_v34 = vld [vmem:[#allocation7 + $0x14c] sm:$0xf0] }
 0x23c   : > { %1871 = vmatpush.bf16.msra.mxu2 %v3266_v38  ;;  %1884 = vmatpush.bf16.msra.mxu3 %v3394_v40  ;;  %v3853_v38 = vld [vmem:[#allocation7 + $0x144] sm:$0xf]  ;;  %v3327_v40 = vld [vmem:[#allocation7 + $0x150] sm:$0xf0]  ;;  %v3326_v49 = vor.u32 %v3855_v34, %v3325_v33  ;;  %v3286_v33 = vor.u32 %v3844_v9, %v3285_v8  ;;  %v3414_v34 = vor.u32 %v3876_v28, %v3413_v14  ;;  %v3830_v8 = vld [vmem:[#allocation7 + $0x8c] sm:$0xf] }
 0x23d   : > { %v3330_v56 = vor.u32 %v3853_v38, %v3327_v40  ;;  %v3239_v9 = vld [vmem:[#allocation7 + $0x98] sm:$0xf0] }
 0x23e   : > { %v3367_v14 = vld [vmem:[#allocation7 + $0x198] sm:$0xf0] }
 0x23f   : > { %1846 = vmatpush.bf16.msra.mxu0 %v3246_v58  ;;  %1859 = vmatpush.bf16.msra.mxu1 %v3374_v59  ;;  %v3817_v58 = vld [vmem:[#allocation7 + $0x24] sm:$0xf]  ;;  %v3183_v59 = vld [vmem:[#allocation7 + $0x30] sm:$0xf0] }
 0x240   : > { %1872 = vmatpush.bf16.msra.mxu2 %v3250_v62  ;;  %1885 = vmatpush.bf16.msra.mxu3 %v3378_v10  ;;  %v3815_v62 = vld [vmem:[#allocation7 + $0xc] sm:$0xf0]  ;;  %v4041_v10 = vpop.eup %4040 }
 0x241   : > { %v4043_v1 = vpop.eup %4042  ;;  %v1456_v25 = vmul.f32 %v4041_v10, %v1454_v43  ;;  %v3868_v10 = vld [vmem:[#allocation7 + $0x1b4] sm:$0xf0] }
 0x243   : > { %1847 = vmatpush.bf16.msra.mxu0 %v3230_v2  ;;  %1860 = vmatpush.bf16.msra.mxu1 %v3358_v3  ;;  %v3186_v2 = vor.u32 %v3817_v58, %v3183_v59  ;;  %v3314_v3 = vor.u32 %v3849_v60, %v3311_v61  ;;  %v3253_v60 = vld [vmem:[#allocation7 + $0xa8] sm:$0xf]  ;;  %v3836_v61 = vld [vmem:[#allocation7 + $0xb4] sm:$0xf0] }
 0x244   : > { %1873 = vmatpush.bf16.msra.mxu2 %v3234_v6  ;;  %1886 = vmatpush.bf16.msra.mxu3 %v3362_v7  ;;  %v1455_v6 = vld [vmem:[%s4469_s26 + $0x18] sm:$0xff]  ;;  %v3295_v7 = vld [vmem:[#allocation7 + $0x110] sm:$0xf0] }
 0x245   : > { %1404 = vmatmul.bf16.vlgmr.msrb.gmra.mxu0 %v4596_v15  ;;  %1417 = vmatmul.bf16.vlgmr.msrb.gmra.mxu1 %v4598_v16  ;;  %v3202_v15 = vor.u32 %v3821_v35, %v3199_v36  ;;  %v3309_v16 = vld [vmem:[#allocation7 + $0x120] sm:$0xf]  ;;  %v1457_v26 = vmul.f32 %v4043_v1, %v1455_v6  ;;  %v3269_v35 = vld [vmem:[#allocation7 + $0xc8] sm:$0xf]  ;;  %v3840_v36 = vld [vmem:[#allocation7 + $0xd4] sm:$0xf0] }
 0x246   : > { %1430 = vmatmul.bf16.vlgmr.msrb.gmra.mxu2 %v4600_v20  ;;  %1443 = vmatmul.bf16.vlgmr.msrb.gmra.mxu3 %v4602_v27  ;;  %v3165_v20 = vld [vmem:[#allocation7] sm:$0xf]  ;;  %v3310_v12 = vor.u32 %v3851_v57, %v3309_v16  ;;  %v4616_v16 = vpack.c.bf16 %v1456_v25, %v1456_v25  ;;  %v3270_v58 = vor.u32 %v3840_v36, %v3269_v35  ;;  %v3365_v6 = vld [vmem:[#allocation7 + $0x188] sm:$0xf] }
 0x247   : > { %1848 = vmatpush.bf16.msra.mxu0 %v3214_v19  ;;  %1861 = vmatpush.bf16.msra.mxu1 %v3342_v24  ;;  %v3293_v27 = vld [vmem:[#allocation7 + $0x100] sm:$0xf]  ;;  %v3166_v13 = vor.u32 %v3815_v62, %v3165_v20  ;;  %v3287_v19 = vld [vmem:[#allocation7 + $0xf8] sm:$0xf0]  ;;  %v3874_v24 = vld [vmem:[#allocation7 + $0x1ec] sm:$0xf]  ;;  %v4618_v57 = vpack.c.bf16 %v1457_v26, %v1457_v26  ;;  %v3274_v20 = vor.u32 %v3838_v53, %v3271_v54 }
 0x248   : > { %1874 = vmatpush.bf16.msra.mxu2 %v3218_v31  ;;  %1887 = vmatpush.bf16.msra.mxu3 %v3346_v32  ;;  %v3294_v4 = vor.u32 %v3847_v17, %v3293_v27  ;;  %v3170_v31 = vor.u32 %v3813_v63, %v3167_v0  ;;  %v3298_v32 = vor.u32 %v3845_v5, %v3295_v7  ;;  %v3381_v27 = vld [vmem:[#allocation7 + $0x1a8] sm:$0xf]  ;;  %v3866_v17 = vld [vmem:[#allocation7 + $0x1ac] sm:$0xf]  ;;  %v3383_v63 = vld [vmem:[#allocation7 + $0x1b8] sm:$0xf0] }
 0x249   : > { %v3290_v38 = vor.u32 %v3842_v30, %v3287_v19  ;;  %v3418_v40 = vor.u32 %v3874_v24, %v3415_v37  ;;  %v3254_v0 = vor.u32 %v3836_v61, %v3253_v60  ;;  %v3382_v1 = vor.u32 %v3868_v10, %v3381_v27  ;;  %v3864_v7 = vld [vmem:[#allocation7 + $0x194] sm:$0xf0]  ;;  %v3349_v25 = vld [vmem:[#allocation7 + $0x168] sm:$0xf] }
 0x24a   : > { %v3386_v43 = vor.u32 %v3866_v17, %v3383_v63  ;;  %v3366_v30 = vor.u32 %v3864_v7, %v3365_v6  ;;  %v3828_v19 = vld [vmem:[#allocation7 + $0x74] sm:$0xf0]  ;;  %v3242_v24 = vor.u32 %v3830_v8, %v3239_v9  ;;  %v3333_v53 = vld [vmem:[#allocation7 + $0x148] sm:$0xf]  ;;  %v3818_v17 = vld [vmem:[#allocation7 + $0x2c] sm:$0xf] }
 0x24b   : > { %1849 = vmatpush.bf16.msra.mxu0 %v3198_v42  ;;  %1862 = vmatpush.bf16.msra.mxu1 %v3326_v49  ;;  %v3397_v42 = vld [vmem:[#allocation7 + $0x1c8] sm:$0xf]  ;;  %v3872_v49 = vld [vmem:[#allocation7 + $0x1d4] sm:$0xf0]  ;;  %v3191_v63 = vld [vmem:[#allocation7 + $0x38] sm:$0xf0] }
 0x24c   : > { %1875 = vmatpush.bf16.msra.mxu2 %v3202_v15  ;;  %1888 = vmatpush.bf16.msra.mxu3 %v3330_v56  ;;  %v3870_v15 = vld [vmem:[#allocation7 + $0x1cc] sm:$0xf]  ;;  %v3399_v56 = vld [vmem:[#allocation7 + $0x1d8] sm:$0xf0]  ;;  %v3398_v59 = vor.u32 %v3872_v49, %v3397_v42  ;;  %v3860_v26 = vld [vmem:[#allocation7 + $0x174] sm:$0xf0]  ;;  %v3194_v6 = vor.u32 %v3818_v17, %v3191_v63 }
 0x24d   : > { %v3402_v62 = vor.u32 %v3870_v15, %v3399_v56  ;;  %v3350_v36 = vor.u32 %v3860_v26, %v3349_v25  ;;  %v3856_v54 = vld [vmem:[#allocation7 + $0x154] sm:$0xf0]  ;;  %v3822_v15 = vld [vmem:[#allocation7 + $0x4c] sm:$0xf]  ;;  %v3207_v56 = vld [vmem:[#allocation7 + $0x58] sm:$0xf0] }
 0x24e   : > { %v3334_v61 = vor.u32 %v3856_v54, %v3333_v53  ;;  %v3210_v27 = vor.u32 %v3822_v15, %v3207_v56  ;;  %v3301_v8 = vld [vmem:[#allocation7 + $0x108] sm:$0xf]  ;;  %v3848_v9 = vld [vmem:[#allocation7 + $0x114] sm:$0xf0]  ;;  %v4631_v25 = vld [vmem:[%s4747_s5] sm:$0x3] }
 0x24f   : > { %1850 = vmatpush.bf16.msra.mxu0 %v3182_v11  ;;  %1863 = vmatpush.bf16.msra.mxu1 %v3310_v12  ;;  %v3834_v11 = vld [vmem:[#allocation7 + $0xac] sm:$0xf]  ;;  %v3255_v12 = vld [vmem:[#allocation7 + $0xb8] sm:$0xf0]  ;;  %v1020_v26 = vperm.slane %v4631_v25, 0 }
 0x250   : > { %1876 = vmatpush.bf16.msra.mxu2 %v3186_v2  ;;  %1889 = vmatpush.bf16.msra.mxu3 %v3314_v3  ;;  %v3237_v2 = vld [vmem:[#allocation7 + $0x88] sm:$0xf]  ;;  %v3832_v3 = vld [vmem:[#allocation7 + $0x94] sm:$0xf0]  ;;  %v3258_v5 = vor.u32 %v3834_v11, %v3255_v12 }
 0x251   : > { %v3238_v28 = vor.u32 %v3832_v3, %v3237_v2  ;;  %v3317_v11 = vld [vmem:[#allocation7 + $0x128] sm:$0xf]  ;;  %v3852_v12 = vld [vmem:[#allocation7 + $0x134] sm:$0xf0] }
 0x252   : > { %v3318_v3 = vor.u32 %v3852_v12, %v3317_v11 }
 0x253   : > { %1851 = vmatpush.bf16.msra.mxu0 %v3166_v13  ;;  %1864 = vmatpush.bf16.msra.mxu1 %v3294_v4  ;;  %v3862_v13 = vld [vmem:[#allocation7 + $0x18c] sm:$0xf]  ;;  %v3221_v4 = vld [vmem:[#allocation7 + $0x68] sm:$0xf] }
 0x254   : > { %1877 = vmatpush.bf16.msra.mxu2 %v3170_v31  ;;  %1890 = vmatpush.bf16.msra.mxu3 %v3298_v32  ;;  %v3370_v37 = vor.u32 %v3862_v13, %v3367_v14  ;;  %v3826_v31 = vld [vmem:[#allocation7 + $0x6c] sm:$0xf]  ;;  %v3223_v32 = vld [vmem:[#allocation7 + $0x78] sm:$0xf0]  ;;  %v3222_v35 = vor.u32 %v3828_v19, %v3221_v4  ;;  %v3302_v19 = vor.u32 %v3848_v9, %v3301_v8 }
 0x255   : > { %v3226_v42 = vor.u32 %v3826_v31, %v3223_v32  ;;  %v3814_v13 = vld [vmem:[#allocation7 + $0xc] sm:$0xf]  ;;  %v3175_v14 = vld [vmem:[#allocation7 + $0x18] sm:$0xf0] }
 0x256   : > { %1852 = vmatmul.bf16.vlgmr.msra.gmra.mxu0 %v4616_v16  ;;  %1865 = vmatmul.bf16.vlgmr.msra.gmra.mxu1 %v4618_v57 }
 0x257   : > { %1896 = vmatpush.bf16.msrb.mxu0 %v3286_v33  ;;  %1909 = vmatpush.bf16.msrb.mxu1 %v3414_v34  ;;  %v3858_v33 = vld [vmem:[#allocation7 + $0x16c] sm:$0xf]  ;;  %v3351_v34 = vld [vmem:[#allocation7 + $0x178] sm:$0xf0] }
 0x258   : > { %1922 = vmatpush.bf16.msrb.mxu2 %v3290_v38  ;;  %1935 = vmatpush.bf16.msrb.mxu3 %v3418_v40  ;;  %v3205_v38 = vld [vmem:[#allocation7 + $0x48] sm:$0xf]  ;;  %v3824_v40 = vld [vmem:[#allocation7 + $0x54] sm:$0xf0]  ;;  %v3354_v49 = vor.u32 %v3858_v33, %v3351_v34 }
 0x259   : > { %1878 = vmatmul.bf16.vlgmr.msra.gmra.mxu2 %v4616_v16  ;;  %1891 = vmatmul.bf16.vlgmr.msra.gmra.mxu3 %v4618_v57  ;;  %v3206_v60 = vor.u32 %v3824_v40, %v3205_v38 }
 0x25b   : > { %1897 = vmatpush.bf16.msrb.mxu0 %v3270_v58  ;;  %1910 = vmatpush.bf16.msrb.mxu1 %v3398_v59  ;;  %v3854_v58 = vld [vmem:[#allocation7 + $0x14c] sm:$0xf]  ;;  %v3335_v59 = vld [vmem:[#allocation7 + $0x158] sm:$0xf0] }
 0x25c   : > { %1923 = vmatpush.bf16.msrb.mxu2 %v3274_v20  ;;  %1936 = vmatpush.bf16.msrb.mxu3 %v3402_v62  ;;  %v3189_v20 = vld [vmem:[#allocation7 + $0x28] sm:$0xf]  ;;  %v3820_v62 = vld [vmem:[#allocation7 + $0x34] sm:$0xf0]  ;;  %v3338_v10 = vor.u32 %v3854_v58, %v3335_v59 }
 0x25d   : > { %v3190_v2 = vor.u32 %v3820_v62, %v3189_v20 }
 0x25f   : > { %1898 = vmatpush.bf16.msrb.mxu0 %v3254_v0  ;;  %1911 = vmatpush.bf16.msrb.mxu1 %v3382_v1  ;;  %v3850_v0 = vld [vmem:[#allocation7 + $0x12c] sm:$0xf]  ;;  %v3319_v1 = vld [vmem:[#allocation7 + $0x138] sm:$0xf0] }
 0x260   : > { %1924 = vmatpush.bf16.msrb.mxu2 %v3258_v5  ;;  %1937 = vmatpush.bf16.msrb.mxu3 %v3386_v43  ;;  %v3173_v5 = vld [vmem:[#allocation7 + $0x8] sm:$0xf]  ;;  %v3816_v43 = vld [vmem:[#allocation7 + $0x14] sm:$0xf0]  ;;  %v3322_v7 = vor.u32 %v3850_v0, %v3319_v1 }
 0x261   : > { %v3174_v4 = vor.u32 %v3816_v43, %v3173_v5 }
 0x263   : > { %1899 = vmatpush.bf16.msrb.mxu0 %v3238_v28  ;;  %1912 = vmatpush.bf16.msrb.mxu1 %v3366_v30  ;;  %v3846_v28 = vld [vmem:[#allocation7 + $0x10c] sm:$0xf]  ;;  %v3303_v30 = vld [vmem:[#allocation7 + $0x118] sm:$0xf0] }
 0x264   : > { %1925 = vmatpush.bf16.msrb.mxu2 %v3242_v24  ;;  %1938 = vmatpush.bf16.msrb.mxu3 %v3370_v37  ;;  %v3178_v24 = vor.u32 %v3814_v13, %v3175_v14  ;;  %v3306_v37 = vor.u32 %v3846_v28, %v3303_v30 }
 0x267   : > { %1900 = vmatpush.bf16.msrb.mxu0 %v3222_v35  ;;  %1913 = vmatpush.bf16.msrb.mxu1 %v3350_v36 }
 0x268   : > { %1926 = vmatpush.bf16.msrb.mxu2 %v3226_v42  ;;  %1939 = vmatpush.bf16.msrb.mxu3 %v3354_v49 }
 0x26b   : > { %1901 = vmatpush.bf16.msrb.mxu0 %v3206_v60  ;;  %1914 = vmatpush.bf16.msrb.mxu1 %v3334_v61 }
 0x26c   : > { %1927 = vmatpush.bf16.msrb.mxu2 %v3210_v27  ;;  %1940 = vmatpush.bf16.msrb.mxu3 %v3338_v10 }
 0x26f   : > { %1902 = vmatpush.bf16.msrb.mxu0 %v3190_v2  ;;  %1915 = vmatpush.bf16.msrb.mxu1 %v3318_v3 }
 0x270   : > { %1928 = vmatpush.bf16.msrb.mxu2 %v3194_v6  ;;  %1941 = vmatpush.bf16.msrb.mxu3 %v3322_v7 }
 0x273   : > { %1903 = vmatpush.bf16.msrb.mxu0 %v3174_v4  ;;  %1916 = vmatpush.bf16.msrb.mxu1 %v3302_v19 }
 0x274   : > { %1929 = vmatpush.bf16.msrb.mxu2 %v3178_v24  ;;  %1942 = vmatpush.bf16.msrb.mxu3 %v3306_v37 }
 0x276   : > { %1904 = vmatmul.bf16.vlgmr.msrb.gmra.mxu0 %v4616_v16  ;;  %1917 = vmatmul.bf16.vlgmr.msrb.gmra.mxu1 %v4618_v57 }
 0x277   : > { %1930 = vmatmul.bf16.vlgmr.msrb.gmra.mxu2 %v4616_v16  ;;  %1943 = vmatmul.bf16.vlgmr.msrb.gmra.mxu3 %v4618_v57  ;;  %v1021_v57 = vperm.slane %v4631_v25, 1 }
 0x2b2   : > { %v1353_v31 = vpop.f32.mrf.mxu0  ;;  %v1366_v32 = vpop.f32.mrf.mxu1 }
 0x2b3   : > { %v1354_v33 = vadd.f32 %v1353_v31, %v1020_v26 }
 0x2b5   : > { %v1367_v34 = vadd.f32 %v1366_v32, %v1354_v33 }
 0x2b9   : > { %v1379_v35 = vpop.f32.mrf.mxu2  ;;  %v1392_v36 = vpop.f32.mrf.mxu3 }
 0x2ba   : > { %v1380_v38 = vadd.f32 %v1379_v35, %v1367_v34  ;;  %v1355_v40 = vpop.f32.mrf.mxu0  ;;  %v1368_v16 = vpop.f32.mrf.mxu1  ;;  %v3477_v34 = vld [vmem:[#allocation10 + $0x70] sm:$0xf]  ;;  %v3892_v35 = vld [vmem:[#allocation10 + $0x74] sm:$0xf0] }
 0x2bb   : > { %v3908_v40 = vld [vmem:[#allocation10 + $0xf4] sm:$0xf0]  ;;  %v3605_v16 = vld [vmem:[#allocation10 + $0x170] sm:$0xf] }
 0x2bc   : > { %v1393_v42 = vadd.f32 %v1392_v36, %v1380_v38  ;;  %v3541_v36 = vld [vmem:[#allocation10 + $0xf0] sm:$0xf]  ;;  %v3478_v38 = vor.u32 %v3892_v35, %v3477_v34  ;;  %v3886_v35 = vld [vmem:[#allocation10 + $0x44] sm:$0xf0] }
 0x2be   : > { %1448 = vst [vmem:[%s4637_s2] sm:$0xff] %v1393_v42  ;;  %v3924_v42 = vld [vmem:[#allocation10 + $0x174] sm:$0xf0]  ;;  %2383 = vmatpush.bf16.msra.mxu0 %v3478_v38  ;;  %v3902_v38 = vld [vmem:[#allocation10 + $0xc4] sm:$0xf0] }
 0x2c1   : > { %v1381_v49 = vpop.f32.mrf.mxu2  ;;  %v1394_v53 = vpop.f32.mrf.mxu3 }
 0x2c2   : > { %v1405_v54 = vpop.f32.mrf.mxu0  ;;  %v1418_v15 = vpop.f32.mrf.mxu1  ;;  %v3542_v49 = vor.u32 %v3908_v40, %v3541_v36  ;;  %v3606_v53 = vor.u32 %v3924_v42, %v3605_v16  ;;  %v3581_v40 = vld [vmem:[#allocation10 + $0x140] sm:$0xf]  ;;  %v3918_v16 = vld [vmem:[#allocation10 + $0x144] sm:$0xf0] }
 0x2c3   : > { %v1406_v56 = vadd.f32 %v1405_v54, %v1021_v57  ;;  %v3469_v54 = vld [vmem:[#allocation10 + $0x60] sm:$0xf] }
 0x2c4   : > { %2396 = vmatpush.bf16.msra.mxu1 %v3542_v49  ;;  %2409 = vmatpush.bf16.msra.mxu2 %v3606_v53  ;;  %v3582_v49 = vor.u32 %v3918_v16, %v3581_v40  ;;  %v3645_v53 = vld [vmem:[#allocation10 + $0x1c0] sm:$0xf]  ;;  %v3894_v16 = vld [vmem:[#allocation10 + $0x84] sm:$0xf0] }
 0x2c5   : > { %v1419_v58 = vadd.f32 %v1418_v15, %v1406_v56  ;;  %v3890_v56 = vld [vmem:[#allocation10 + $0x64] sm:$0xf0] }
 0x2c9   : > { %v1431_v59 = vpop.f32.mrf.mxu2  ;;  %v1444_v60 = vpop.f32.mrf.mxu3 }
 0x2ca   : > { %v1432_v61 = vadd.f32 %v1431_v59, %v1419_v58  ;;  %v1407_v20 = vpop.f32.mrf.mxu0  ;;  %v1420_v62 = vpop.f32.mrf.mxu1  ;;  %v3533_v58 = vld [vmem:[#allocation10 + $0xe0] sm:$0xf]  ;;  %v3906_v59 = vld [vmem:[#allocation10 + $0xe4] sm:$0xf0] }
 0x2cb   : > { %v3597_v20 = vld [vmem:[#allocation10 + $0x160] sm:$0xf]  ;;  %v3922_v62 = vld [vmem:[#allocation10 + $0x164] sm:$0xf0] }
 0x2cc   : > { %v1445_v27 = vadd.f32 %v1444_v60, %v1432_v61  ;;  %v3470_v60 = vor.u32 %v3890_v56, %v3469_v54  ;;  %v3534_v61 = vor.u32 %v3906_v59, %v3533_v58  ;;  %v3445_v54 = vld [vmem:[#allocation10 + $0x30] sm:$0xf]  ;;  %v3900_v59 = vld [vmem:[#allocation10 + $0xb4] sm:$0xf0] }
 0x2cd   : > { %v3509_v56 = vld [vmem:[#allocation10 + $0xb0] sm:$0xf] }
 0x2ce   : > { %1449 = vst [vmem:[%s4637_s2 + $0x8] sm:$0xff] %v1445_v27  ;;  %v3661_v27 = vld [vmem:[#allocation10 + $0x1e0] sm:$0xf]  ;;  %2384 = vmatpush.bf16.msra.mxu0 %v3470_v60  ;;  %2397 = vmatpush.bf16.msra.mxu1 %v3534_v61  ;;  %v3573_v60 = vld [vmem:[#allocation10 + $0x130] sm:$0xf] }
 0x2cf   : > { %v3916_v61 = vld [vmem:[#allocation10 + $0x134] sm:$0xf0] }
 0x2d1   : > { %v1433_v10 = vpop.f32.mrf.mxu2  ;;  %v1446_v11 = vpop.f32.mrf.mxu3 }
 0x2d2   : > { %v3598_v10 = vor.u32 %v3922_v62, %v3597_v20  ;;  %v3938_v11 = vld [vmem:[#allocation10 + $0x1e4] sm:$0xf0]  ;;  %v3510_v20 = vor.u32 %v3900_v59, %v3509_v56  ;;  %v3574_v62 = vor.u32 %v3916_v61, %v3573_v60  ;;  %v3907_v59 = vld [vmem:[#allocation10 + $0xf4] sm:$0xf]  ;;  %v3543_v60 = vld [vmem:[#allocation10 + $0xf8] sm:$0xf0] }
 0x2d3   : > { %v1853_v12 = vpop.f32.mrf.mxu0  ;;  %v1866_v17 = vpop.f32.mrf.mxu1 }
 0x2d4   : > { %v1854_v43 = vadd.f32 %v1853_v12, %v447_v21  ;;  %v3461_v12 = vld [vmem:[#allocation10 + $0x50] sm:$0xf]  ;;  %2410 = vmatpush.bf16.msra.mxu2 %v3598_v10  ;;  %v3932_v10 = vld [vmem:[#allocation10 + $0x1b4] sm:$0xf0] }
 0x2d6   : > { %v4650_v13 = vadd.f32 %v1866_v17, %v1854_v43  ;;  %v3888_v17 = vld [vmem:[#allocation10 + $0x54] sm:$0xf0]  ;;  %v3653_v43 = vld [vmem:[#allocation10 + $0x1d0] sm:$0xf] }
 0x2db   : > { %v1855_v1 = vpop.f32.mrf.mxu0  ;;  %v1868_v2 = vpop.f32.mrf.mxu1 }
 0x2dc   : > { %v1879_v63 = vpop.f32.mrf.mxu2  ;;  %v1892_v0 = vpop.f32.mrf.mxu3  ;;  %v3904_v1 = vld [vmem:[#allocation10 + $0xd4] sm:$0xf0]  ;;  %v3589_v2 = vld [vmem:[#allocation10 + $0x150] sm:$0xf] }
 0x2dd   : > { %v1880_v6 = vadd.f32 %v1879_v63, %v448_v22  ;;  %v3662_v63 = vor.u32 %v3938_v11, %v3661_v27  ;;  %v3637_v27 = vld [vmem:[#allocation10 + $0x1b0] sm:$0xf] }
 0x2de   : > { %v3638_v11 = vor.u32 %v3932_v10, %v3637_v27  ;;  %v3607_v27 = vld [vmem:[#allocation10 + $0x178] sm:$0xf0]  ;;  %v3939_v10 = vld [vmem:[#allocation10 + $0x1f4] sm:$0xf] }
 0x2df   : > { %v4652_v14 = vadd.f32 %v1892_v0, %v1880_v6  ;;  %v3525_v0 = vld [vmem:[#allocation10 + $0xd0] sm:$0xf]  ;;  %v3936_v6 = vld [vmem:[#allocation10 + $0x1d4] sm:$0xf0] }
 0x2e1   : > { %v1948_v19 = vadd.f32 %v4652_v14, %v4650_v13 }
 0x2e4   : > { %v1881_v3 = vpop.f32.mrf.mxu2  ;;  %v1894_v5 = vpop.f32.mrf.mxu3 }
 0x2e5   : > { %v3462_v3 = vor.u32 %v3888_v17, %v3461_v12  ;;  %v3920_v5 = vld [vmem:[#allocation10 + $0x154] sm:$0xf0]  ;;  %v3437_v12 = vld [vmem:[#allocation10 + $0x20] sm:$0xf]  ;;  %v3882_v17 = vld [vmem:[#allocation10 + $0x24] sm:$0xf0] }
 0x2e7   : > { %2385 = vmatpush.bf16.msra.mxu0 %v3462_v3  ;;  %v3914_v3 = vld [vmem:[#allocation10 + $0x124] sm:$0xf0] }
 0x2f3   : > { %v1905_v7 = vpop.f32.mrf.mxu0  ;;  %v1918_v8 = vpop.f32.mrf.mxu1 }
 0x2f4   : > { %v1906_v9 = vadd.f32 %v1905_v7, %v449_v23  ;;  %v3526_v7 = vor.u32 %v3904_v1, %v3525_v0  ;;  %v3438_v0 = vor.u32 %v3882_v17, %v3437_v12  ;;  %v3898_v1 = vld [vmem:[#allocation10 + $0xa4] sm:$0xf0]  ;;  %v3671_v12 = vld [vmem:[#allocation10 + $0x1f8] sm:$0xf0]  ;;  %v3889_v17 = vld [vmem:[#allocation10 + $0x64] sm:$0xf] }
 0x2f6   : > { %v4654_v28 = vadd.f32 %v1918_v8, %v1906_v9  ;;  %v3590_v8 = vor.u32 %v3920_v5, %v3589_v2  ;;  %v3654_v9 = vor.u32 %v3936_v6, %v3653_v43  ;;  %2398 = vmatpush.bf16.msra.mxu1 %v3526_v7  ;;  %v3565_v2 = vld [vmem:[#allocation10 + $0x120] sm:$0xf]  ;;  %v3930_v7 = vld [vmem:[#allocation10 + $0x1a4] sm:$0xf0] }
 0x2f7   : > { %v3566_v43 = vor.u32 %v3914_v3, %v3565_v2  ;;  %v3629_v6 = vld [vmem:[#allocation10 + $0x1a0] sm:$0xf]  ;;  %v3905_v2 = vld [vmem:[#allocation10 + $0xe4] sm:$0xf]  ;;  %v3535_v3 = vld [vmem:[#allocation10 + $0xe8] sm:$0xf0] }
 0x2f8   : > { %v1949_v31 = vadd.f32 %v1948_v19, %v4654_v28  ;;  %2411 = vmatpush.bf16.msra.mxu2 %v3590_v8  ;;  %v3630_v8 = vor.u32 %v3930_v7, %v3629_v6  ;;  %v3599_v6 = vld [vmem:[#allocation10 + $0x168] sm:$0xf0]  ;;  %v3937_v7 = vld [vmem:[#allocation10 + $0x1e4] sm:$0xf] }
 0x2fa   : > { %v1931_v30 = vpop.f32.mrf.mxu2  ;;  %v1944_v4 = vpop.f32.mrf.mxu3 }
 0x2fb   : > { %v1932_v21 = vadd.f32 %v1931_v30, %v450_v29  ;;  %v1907_v22 = vpop.f32.mrf.mxu0  ;;  %v1920_v24 = vpop.f32.mrf.mxu1  ;;  %v3940_v29 = vld [vmem:[#allocation10 + $0x1f4] sm:$0xf0] }
 0x2fc   : > { %v3670_v15 = vor.u32 %v3940_v29, %v3669_v18  ;;  %v3934_v18 = vld [vmem:[#allocation10 + $0x1c4] sm:$0xf0]  ;;  %2412 = vmatpush.bf16.msra.mxu2 %v3582_v49 }
 0x2fd   : > { %v1945_v37 = vadd.f32 %v1944_v4, %v1932_v21  ;;  %v3646_v29 = vor.u32 %v3934_v18, %v3645_v53  ;;  %v3910_v49 = vld [vmem:[#allocation10 + $0x104] sm:$0xf0] }
 0x2fe   : > { %2422 = vmatpush.bf16.msra.mxu3 %v3670_v15  ;;  %v3884_v15 = vld [vmem:[#allocation10 + $0x34] sm:$0xf0] }
 0x2ff   : > { %v1950_v23 = vadd.f32 %v1949_v31, %v1945_v37  ;;  %v3446_v58 = vor.u32 %v3884_v15, %v3445_v54  ;;  %v3926_v54 = vld [vmem:[#allocation10 + $0x184] sm:$0xf0]  ;;  %v3891_v15 = vld [vmem:[#allocation10 + $0x74] sm:$0xf] }
 0x300   : > { %2413 = vmatpush.bf16.msra.mxu2 %v3574_v62  ;;  %v3923_v62 = vld [vmem:[#allocation10 + $0x174] sm:$0xf] }
 0x301   : > { %1951 = vadd.xlane.f32.xlu1 %v1950_v23 }
 0x302   : > { %v1933_v32 = vpop.f32.mrf.mxu2  ;;  %v1946_v33 = vpop.f32.mrf.mxu3  ;;  %2423 = vmatpush.bf16.msra.mxu3 %v3662_v63  ;;  %v3501_v63 = vld [vmem:[#allocation10 + $0xa0] sm:$0xf] }
 0x303   : > { %v3502_v5 = vor.u32 %v3898_v1, %v3501_v63  ;;  %v3471_v63 = vld [vmem:[#allocation10 + $0x68] sm:$0xf0] }
 0x304   : > { %2414 = vmatpush.bf16.msra.mxu2 %v3566_v43  ;;  %v3474_v1 = vor.u32 %v3889_v17, %v3471_v63  ;;  %v3538_v43 = vor.u32 %v3905_v2, %v3535_v3  ;;  %v3881_v2 = vld [vmem:[#allocation10 + $0x24] sm:$0xf] }
 0x306   : > { %2424 = vmatpush.bf16.msra.mxu3 %v3654_v9  ;;  %v3429_v9 = vld [vmem:[#allocation10 + $0x10] sm:$0xf] }
 0x30a   : > { %2425 = vmatpush.bf16.msra.mxu3 %v3646_v29  ;;  %v3613_v29 = vld [vmem:[#allocation10 + $0x180] sm:$0xf] }
 0x30b   : > { %v3614_v56 = vor.u32 %v3926_v54, %v3613_v29  ;;  %v3647_v29 = vld [vmem:[#allocation10 + $0x1c8] sm:$0xf0] }
 0x30e   : > { %2426 = vmatpush.bf16.msra.mxu3 %v3638_v11  ;;  %v3610_v11 = vor.u32 %v3923_v62, %v3607_v27 }
 0x312   : > { %2427 = vmatpush.bf16.msra.mxu3 %v3630_v8  ;;  %v3663_v8 = vld [vmem:[#allocation10 + $0x1e8] sm:$0xf0] }
 0x374   : > { %v1952_v30 = vpop.xlane.xlu1 %1951 }
 0x375   : > { %v1953_v4 = vmul.f32 %v1952_v30, %v4540_v55  ;;  %v3880_v30 = vld [vmem:[#allocation10 + $0x14] sm:$0xf0] }
 0x377   : > { %v4663_v19 = vsub.f32 %v4650_v13, %v1953_v4  ;;  %v4666_v21 = vsub.f32 %v4652_v14, %v1953_v4  ;;  %v4669_v22 = vsub.f32 %v4654_v28, %v1953_v4  ;;  %v4671_v24 = vsub.f32 %v1945_v37, %v1953_v4  ;;  %v3453_v28 = vld [vmem:[#allocation10 + $0x40] sm:$0xf]  ;;  %v3493_v4 = vld [vmem:[#allocation10 + $0x90] sm:$0xf] }
 0x378   : > { %v3517_v37 = vld [vmem:[#allocation10 + $0xc0] sm:$0xf]  ;;  %v3454_v36 = vor.u32 %v3886_v35, %v3453_v28  ;;  %v3928_v28 = vld [vmem:[#allocation10 + $0x194] sm:$0xf0] }
 0x379   : > { %v1958_v31 = vmul.f32 %v4663_v19, %v4663_v19  ;;  %v1959_v23 = vmul.f32 %v4666_v21, %v4666_v21  ;;  %v1960_v32 = vmul.f32 %v4669_v22, %v4669_v22  ;;  %v1961_v13 = vmul.f32 %v4671_v24, %v4671_v24 }
 0x37a   : > { %v3518_v42 = vor.u32 %v3902_v38, %v3517_v37  ;;  %2386 = vmatpush.bf16.msra.mxu0 %v3454_v36  ;;  %v3421_v37 = vld [vmem:[#allocation10] sm:$0xf]  ;;  %v3878_v36 = vld [vmem:[#allocation10 + $0x4] sm:$0xf0] }
 0x37b   : > { %v1962_v33 = vadd.f32 %v1959_v23, %v1958_v31  ;;  %v3430_v31 = vor.u32 %v3880_v30, %v3429_v9  ;;  %v3896_v23 = vld [vmem:[#allocation10 + $0x94] sm:$0xf0]  ;;  %v3485_v38 = vld [vmem:[#allocation10 + $0x80] sm:$0xf]  ;;  %v3422_v40 = vor.u32 %v3878_v36, %v3421_v37  ;;  %v3666_v30 = vor.u32 %v3937_v7, %v3663_v8  ;;  %v3885_v37 = vld [vmem:[#allocation10 + $0x44] sm:$0xf] }
 0x37c   : > { %2399 = vmatpush.bf16.msra.mxu1 %v3518_v42  ;;  %v3549_v42 = vld [vmem:[#allocation10 + $0x100] sm:$0xf]  ;;  %v3486_v53 = vor.u32 %v3894_v16, %v3485_v38  ;;  %v3455_v38 = vld [vmem:[#allocation10 + $0x48] sm:$0xf0] }
 0x37d   : > { %v1963_v14 = vadd.f32 %v1962_v33, %v1960_v32  ;;  %v3557_v32 = vld [vmem:[#allocation10 + $0x110] sm:$0xf]  ;;  %v3912_v33 = vld [vmem:[#allocation10 + $0x114] sm:$0xf0]  ;;  %v3550_v18 = vor.u32 %v3910_v49, %v3549_v42  ;;  %v3519_v16 = vld [vmem:[#allocation10 + $0xc8] sm:$0xf0]  ;;  %v3458_v54 = vor.u32 %v3885_v37, %v3455_v38 }
 0x37e   : > { %2387 = vmatpush.bf16.msra.mxu0 %v3446_v58  ;;  %v3479_v58 = vld [vmem:[#allocation10 + $0x78] sm:$0xf0]  ;;  %v3917_v49 = vld [vmem:[#allocation10 + $0x144] sm:$0xf]  ;;  %v3503_v8 = vld [vmem:[#allocation10 + $0xa8] sm:$0xf0] }
 0x37f   : > { %v1964_v34 = vadd.f32 %v1963_v14, %v1961_v13  ;;  %v3494_v13 = vor.u32 %v3896_v23, %v3493_v4  ;;  %v3558_v14 = vor.u32 %v3912_v33, %v3557_v32  ;;  %v3482_v61 = vor.u32 %v3891_v15, %v3479_v58  ;;  %v3887_v4 = vld [vmem:[#allocation10 + $0x54] sm:$0xf]  ;;  %v3527_v32 = vld [vmem:[#allocation10 + $0xd8] sm:$0xf0] }
 0x380   : > { %2400 = vmatpush.bf16.msra.mxu1 %v3510_v20  ;;  %v3546_v20 = vor.u32 %v3907_v59, %v3543_v60  ;;  %v3903_v23 = vld [vmem:[#allocation10 + $0xd4] sm:$0xf] }
 0x381   : > { %1965 = vadd.xlane.f32.xlu1 %v1964_v34  ;;  %v3621_v34 = vld [vmem:[#allocation10 + $0x190] sm:$0xf]  ;;  %2415 = vmatpush.bf16.msra.mxu2 %v3558_v14  ;;  %v3919_v33 = vld [vmem:[#allocation10 + $0x154] sm:$0xf] }
 0x382   : > { %2388 = vmatpush.bf16.msra.mxu0 %v3438_v0  ;;  %v3622_v35 = vor.u32 %v3928_v28, %v3621_v34  ;;  %v3674_v0 = vor.u32 %v3939_v10, %v3671_v12  ;;  %v3530_v34 = vor.u32 %v3903_v23, %v3527_v32  ;;  %v3935_v28 = vld [vmem:[#allocation10 + $0x1d4] sm:$0xf]  ;;  %v3511_v10 = vld [vmem:[#allocation10 + $0xb8] sm:$0xf0]  ;;  %v3631_v23 = vld [vmem:[#allocation10 + $0x1a8] sm:$0xf0] }
 0x383   : > { %v3883_v60 = vld [vmem:[#allocation10 + $0x34] sm:$0xf]  ;;  %v3575_v12 = vld [vmem:[#allocation10 + $0x138] sm:$0xf0] }
 0x384   : > { %2401 = vmatpush.bf16.msra.mxu1 %v3502_v5  ;;  %2428 = vmatpush.bf16.msra.mxu3 %v3622_v35  ;;  %v3921_v5 = vld [vmem:[#allocation10 + $0x164] sm:$0xf]  ;;  %v3655_v35 = vld [vmem:[#allocation10 + $0x1d8] sm:$0xf0]  ;;  %v3879_v32 = vld [vmem:[#allocation10 + $0x14] sm:$0xf] }
 0x385   : > { %2416 = vmatpush.bf16.msra.mxu2 %v3550_v18  ;;  %v3602_v9 = vor.u32 %v3921_v5, %v3599_v6  ;;  %v3658_v42 = vor.u32 %v3935_v28, %v3655_v35  ;;  %v3933_v18 = vld [vmem:[#allocation10 + $0x1c4] sm:$0xf]  ;;  %v3911_v28 = vld [vmem:[#allocation10 + $0x114] sm:$0xf]  ;;  %v3559_v35 = vld [vmem:[#allocation10 + $0x118] sm:$0xf0] }
 0x386   : > { %2389 = vmatpush.bf16.msra.mxu0 %v3430_v31  ;;  %v3463_v31 = vld [vmem:[#allocation10 + $0x58] sm:$0xf0]  ;;  %v3650_v58 = vor.u32 %v3933_v18, %v3647_v29  ;;  %v3897_v6 = vld [vmem:[#allocation10 + $0xa4] sm:$0xf]  ;;  %v3927_v37 = vld [vmem:[#allocation10 + $0x194] sm:$0xf] }
 0x387   : > { %v3466_v14 = vor.u32 %v3887_v4, %v3463_v31  ;;  %v3929_v31 = vld [vmem:[#allocation10 + $0x1a4] sm:$0xf]  ;;  %v3487_v18 = vld [vmem:[#allocation10 + $0x88] sm:$0xf0] }
 0x388   : > { %2402 = vmatpush.bf16.msra.mxu1 %v3494_v13  ;;  %2429 = vmatpush.bf16.msra.mxu3 %v3614_v56  ;;  %v3591_v13 = vld [vmem:[#allocation10 + $0x158] sm:$0xf0] }
 0x389   : > { %2461 = vmatpush.bf16.msrb.mxu2 %v3610_v11  ;;  %v3594_v36 = vor.u32 %v3919_v33, %v3591_v13  ;;  %v3915_v11 = vld [vmem:[#allocation10 + $0x134] sm:$0xf]  ;;  %v3634_v33 = vor.u32 %v3929_v31, %v3631_v23  ;;  %v3431_v13 = vld [vmem:[#allocation10 + $0x18] sm:$0xf0] }
 0x38a   : > { %2390 = vmatpush.bf16.msra.mxu0 %v3422_v40  ;;  %v3901_v40 = vld [vmem:[#allocation10 + $0xc4] sm:$0xf]  ;;  %v3578_v63 = vor.u32 %v3915_v11, %v3575_v12 }
 0x38b   : > { %v3522_v15 = vor.u32 %v3901_v40, %v3519_v16  ;;  %v3623_v40 = vld [vmem:[#allocation10 + $0x198] sm:$0xf0]  ;;  %v3877_v16 = vld [vmem:[#allocation10 + $0x4] sm:$0xf] }
 0x38c   : > { %2403 = vmatpush.bf16.msra.mxu1 %v3486_v53  ;;  %2474 = vmatpush.bf16.msrb.mxu3 %v3674_v0  ;;  %v3583_v53 = vld [vmem:[#allocation10 + $0x148] sm:$0xf0]  ;;  %v3931_v0 = vld [vmem:[#allocation10 + $0x1b4] sm:$0xf]  ;;  %v3626_v29 = vor.u32 %v3927_v37, %v3623_v40 }
 0x38d   : > { %2462 = vmatpush.bf16.msrb.mxu2 %v3602_v9  ;;  %v3586_v56 = vor.u32 %v3917_v49, %v3583_v53  ;;  %v3567_v9 = vld [vmem:[#allocation10 + $0x128] sm:$0xf0]  ;;  %v3893_v53 = vld [vmem:[#allocation10 + $0x84] sm:$0xf] }
 0x38e   : > { %2435 = vmatpush.bf16.msrb.mxu0 %v3482_v61  ;;  %v3447_v61 = vld [vmem:[#allocation10 + $0x38] sm:$0xf0]  ;;  %v3423_v49 = vld [vmem:[#allocation10 + $0x8] sm:$0xf0] }
 0x38f   : > { %v3450_v27 = vor.u32 %v3883_v60, %v3447_v61  ;;  %v3426_v61 = vor.u32 %v3877_v16, %v3423_v49 }
 0x390   : > { %2448 = vmatpush.bf16.msrb.mxu1 %v3546_v20  ;;  %2475 = vmatpush.bf16.msrb.mxu3 %v3666_v30  ;;  %v3899_v20 = vld [vmem:[#allocation10 + $0xb4] sm:$0xf]  ;;  %v3506_v30 = vor.u32 %v3897_v6, %v3503_v8 }
 0x391   : > { %2463 = vmatpush.bf16.msrb.mxu2 %v3594_v36  ;;  %v3514_v17 = vor.u32 %v3899_v20, %v3511_v10  ;;  %v3434_v36 = vor.u32 %v3879_v32, %v3431_v13  ;;  %v3490_v20 = vor.u32 %v3893_v53, %v3487_v18 }
 0x392   : > { %2436 = vmatpush.bf16.msrb.mxu0 %v3474_v1  ;;  %v3639_v1 = vld [vmem:[#allocation10 + $0x1b8] sm:$0xf0] }
 0x393   : > { %v3642_v5 = vor.u32 %v3931_v0, %v3639_v1 }
 0x394   : > { %2449 = vmatpush.bf16.msrb.mxu1 %v3538_v43  ;;  %2476 = vmatpush.bf16.msrb.mxu3 %v3658_v42  ;;  %v3439_v43 = vld [vmem:[#allocation10 + $0x28] sm:$0xf0]  ;;  %v3562_v42 = vor.u32 %v3911_v28, %v3559_v35 }
 0x395   : > { %2464 = vmatpush.bf16.msrb.mxu2 %v3586_v56  ;;  %v3442_v7 = vor.u32 %v3881_v2, %v3439_v43 }
 0x396   : > { %2437 = vmatpush.bf16.msrb.mxu0 %v3466_v14  ;;  %v3895_v14 = vld [vmem:[#allocation10 + $0x94] sm:$0xf] }
 0x398   : > { %2450 = vmatpush.bf16.msrb.mxu1 %v3530_v34  ;;  %2477 = vmatpush.bf16.msrb.mxu3 %v3650_v58  ;;  %v3495_v34 = vld [vmem:[#allocation10 + $0x98] sm:$0xf0]  ;;  %v3925_v58 = vld [vmem:[#allocation10 + $0x184] sm:$0xf] }
 0x399   : > { %2465 = vmatpush.bf16.msrb.mxu2 %v3578_v63  ;;  %v3498_v38 = vor.u32 %v3895_v14, %v3495_v34 }
 0x39a   : > { %2438 = vmatpush.bf16.msrb.mxu0 %v3458_v54  ;;  %v3909_v54 = vld [vmem:[#allocation10 + $0x104] sm:$0xf] }
 0x39c   : > { %2451 = vmatpush.bf16.msrb.mxu1 %v3522_v15  ;;  %2478 = vmatpush.bf16.msrb.mxu3 %v3642_v5  ;;  %v3551_v15 = vld [vmem:[#allocation10 + $0x108] sm:$0xf0] }
 0x39e   : > { %2439 = vmatpush.bf16.msrb.mxu0 %v3450_v27 }
 0x3a0   : > { %2452 = vmatpush.bf16.msrb.mxu1 %v3514_v17  ;;  %2479 = vmatpush.bf16.msrb.mxu3 %v3634_v33 }
 0x3a2   : > { %2440 = vmatpush.bf16.msrb.mxu0 %v3442_v7 }
 0x3a4   : > { %2453 = vmatpush.bf16.msrb.mxu1 %v3506_v30  ;;  %2480 = vmatpush.bf16.msrb.mxu3 %v3626_v29 }
 0x3a6   : > { %2441 = vmatpush.bf16.msrb.mxu0 %v3434_v36 }
 0x3a8   : > { %2454 = vmatpush.bf16.msrb.mxu1 %v3498_v38 }
 0x3aa   : > { %2442 = vmatpush.bf16.msrb.mxu0 %v3426_v61 }
 0x3ac   : > { %2455 = vmatpush.bf16.msrb.mxu1 %v3490_v20 }
 0x3f4   : > { %v1966_v59 = vpop.xlane.xlu1 %1965 }
 0x3f5   : > { %v1967_v62 = vmul.f32 %v1966_v59, %v4540_v55  ;;  %v3913_v55 = vld [vmem:[#allocation10 + $0x124] sm:$0xf]  ;;  %v3615_v59 = vld [vmem:[#allocation10 + $0x188] sm:$0xf0] }
 0x3f6   : > { %v3570_v4 = vor.u32 %v3913_v55, %v3567_v9  ;;  %v3618_v10 = vor.u32 %v3925_v58, %v3615_v59 }
 0x3f7   : > { %v1968_v3 = vadd.f32 1e-05, %v1967_v62  ;;  %v3554_v62 = vor.u32 %v3909_v54, %v3551_v15 }
 0x3f8   : > { %2466 = vmatpush.bf16.msrb.mxu2 %v3570_v4  ;;  %2481 = vmatpush.bf16.msrb.mxu3 %v3618_v10 }
 0x3f9   : > { %4044 = vrsqrt.f32 %v1968_v3  ;;  %vm1975_vm5 = vweird.f32 %v1968_v3 }
 0x3fc   : > { %2467 = vmatpush.bf16.msrb.mxu2 %v3562_v42 }
 0x3ff   : > { %v4045_v56 = vpop.eup %4044 }
 0x400   : > { %v1970_v60 = vmul.f32 %v4045_v56, %v1968_v3  ;;  %2468 = vmatpush.bf16.msrb.mxu2 %v3554_v62  ;;  %vm1976_vm4 = vweird.f32 %v4045_v56 }
 0x401   : > { %vm1977_vm6 = vmor %vm1975_vm5, %vm1976_vm4 }
 0x402   : > { %v1971_v27 = vmul.f32 %v4045_v56, %v1970_v60 }
 0x404   : > { %v1972_v11 = vmul.f32 0.5, %v1971_v27 }
 0x406   : > { %v1973_v12 = vsub.f32 1.5, %v1972_v11 }
 0x408   : > { %v1974_v17 = vmul.f32 %v4045_v56, %v1973_v12 }
 0x40a   : > { %v1978_v63 = vsel %vm1977_vm6, %v4045_v56, %v1974_v17 }
 0x40b   : > { %v1979_v0 = vmul.f32 %v1978_v63, %v4663_v19  ;;  %v1980_v1 = vmul.f32 %v1978_v63, %v4666_v21  ;;  %v1981_v2 = vmul.f32 %v1978_v63, %v4669_v22  ;;  %v1982_v5 = vmul.f32 %v1978_v63, %v4671_v24 }
 0x40d   : > { %v1983_v43 = vmul.f32 %v1979_v0, %v922_v44  ;;  %v1984_v6 = vmul.f32 %v1980_v1, %v923_v46  ;;  %v1985_v7 = vmul.f32 %v1981_v2, %v924_v47  ;;  %v1986_v3 = vmul.f32 %v1982_v5, %v925_v48 }
 0x40f   : > { %v1987_v19 = vadd.f32 %v1983_v43, %v935_v45  ;;  %v1988_v21 = vadd.f32 %v1984_v6, %v936_v50  ;;  %v1989_v22 = vadd.f32 %v1985_v7, %v937_v51  ;;  %v1990_v44 = vadd.f32 %v1986_v3, %v938_v52 }
 0x411   : > { %v1991_v24 = vmax.f32 %v1987_v19, 0.0  ;;  %v1992_v46 = vmax.f32 %v1988_v21, 0.0  ;;  %v1993_v8 = vmax.f32 %v1989_v22, 0.0  ;;  %v1994_v55 = vmax.f32 %v1990_v44, 0.0 }
 0x413   : > { %v1995_v47 = vpack.c.bf16 %v1991_v24, %v1991_v24  ;;  %v1996_v9 = vpack.c.bf16 %v1992_v46, %v1992_v46  ;;  %v1997_v39 = vpack.c.bf16 %v1993_v8, %v1993_v8  ;;  %v1998_v48 = vpack.c.bf16 %v1994_v55, %v1994_v55 }
 0x415   : > { %2391 = vmatmul.bf16.vlgmr.msra.gmra.mxu0 %v1995_v47  ;;  %2404 = vmatmul.bf16.vlgmr.msra.gmra.mxu1 %v1996_v9 }
 0x416   : > { %2417 = vmatmul.bf16.vlgmr.msra.gmra.mxu2 %v1997_v39  ;;  %2430 = vmatmul.bf16.vlgmr.msra.gmra.mxu3 %v1998_v48 }
 0x425   : > { %2443 = vmatmul.bf16.vlgmr.msrb.gmra.mxu0 %v1995_v47  ;;  %2456 = vmatmul.bf16.vlgmr.msrb.gmra.mxu1 %v1996_v9 }
 0x426   : > { %2469 = vmatmul.bf16.vlgmr.msrb.gmra.mxu2 %v1997_v39  ;;  %2482 = vmatmul.bf16.vlgmr.msrb.gmra.mxu3 %v1998_v48 }
 0x492   : > { %v2392_v41 = vpop.f32.mrf.mxu0  ;;  %v2405_v45 = vpop.f32.mrf.mxu1 }
 0x493   : > { %v2393_v50 = vadd.f32 %v2392_v41, %v1020_v26 }
 0x495   : > { %v2406_v51 = vadd.f32 %v2405_v45, %v2393_v50 }
 0x499   : > { %v2418_v52 = vpop.f32.mrf.mxu2  ;;  %v2431_v30 = vpop.f32.mrf.mxu3 }
 0x49a   : > { %v2419_v4 = vadd.f32 %v2418_v52, %v2406_v51  ;;  %v2394_v31 = vpop.f32.mrf.mxu0  ;;  %v2407_v23 = vpop.f32.mrf.mxu1 }
 0x49c   : > { %v2432_v32 = vadd.f32 %v2431_v30, %v2419_v4 }
 0x49e   : > { %2487 = vst [vmem:[%s4637_s2 + $0x10] sm:$0xff] %v2432_v32 }
 0x4a1   : > { %v2420_v33 = vpop.f32.mrf.mxu2  ;;  %v2433_v13 = vpop.f32.mrf.mxu3 }
 0x4a2   : > { %v2444_v14 = vpop.f32.mrf.mxu0  ;;  %v2457_v34 = vpop.f32.mrf.mxu1 }
 0x4a3   : > { %v2445_v28 = vadd.f32 %v2444_v14, %v1021_v57 }
 0x4a5   : > { %v2458_v26 = vadd.f32 %v2457_v34, %v2445_v28 }
 0x4a9   : > { %v2470_v35 = vpop.f32.mrf.mxu2  ;;  %v2483_v37 = vpop.f32.mrf.mxu3 }
 0x4aa   : > { %v2471_v36 = vadd.f32 %v2470_v35, %v2458_v26  ;;  %v2446_v38 = vpop.f32.mrf.mxu0  ;;  %v2459_v40 = vpop.f32.mrf.mxu1 }
 0x4ac   : > { %v2484_v16 = vadd.f32 %v2483_v37, %v2471_v36 }
 0x4ae   : > { %2488 = vst [vmem:[%s4637_s2 + $0x18] sm:$0xff] %v2484_v16 }
 0x4af   : > { %4223 = shalt.err (!%p4220_p11)
}
 0x4b0   : > { %s4284_s30 = smov 256   ;;  %s4285_s8 = smov 16  }
 0x4b1   : > { %3959 = dma.vmem_to_hbm [thread:$0]  (%p4407_p7), %s2504_s29, 512, %s2506_s7, %s2490_s25, %s4284_s30, %s4284_s30, %s4285_s8   ;;  %v2472_v25 = vpop.f32.mrf.mxu2  ;;  %v2485_v57 = vpop.f32.mrf.mxu3 }
 0x4b2 PF: > { %s2520_s12 = sand.u32 1, %s4262_s21   ;;  %p4769_p12 = scmp.ge.s32.totalorder %s4274_s24, 2 }
 0x4b3   : > { %s2521_s27 = scalar_lea.sflag [#allocation4], %s2520_s12 }
 0x4b4   : > { %p3979_p13 = pnand %p4769_p12, %p4356_p6 }
 0x4b6   : > { %p3980_p0 = pneg %p3979_p13 }
 0x4b8   : > { %4257 = dma.done.wait (%p3980_p0), %s2521_s27, 512  }
 0x4b9   : > { %4259 = vsyncadd (%p3980_p0), %s2521_s27, 4294966784  ;;  %p23_p7 = scmp.ge.s32.totalorder %s4393_s10, 4   ;;  %s4770_s21 = smov %s4266_s22 }
 0x4ba   : > { %s4771_s22 = smov %s4270_s23  ;;  %s4772_s23 = smov %s4403_s14 }
 0x4bb   : > { %s4773_s24 = smov %s4393_s10  ;;  %25 = sbr.rel (!%p23_p7) target bundleno = 13 (0xd), region = 116 }
 0x4c0   :  { %2527 = vsyncpa [#allocation3], 1 }
 0x4c1   :  { %2529 = vsyncpa [#allocation3 + $0x1], 1 }
 0x4c2   :  { %2530 = vsyncpa [#allocation6], 1 }
 0x4c3   :  { %2532 = vsyncpa [#allocation6 + $0x1], 1 }
 0x4c4   :  { %2533 = vsyncpa [#allocation9], 1 }
 0x4c5   :  { %2534 = vsyncpa [#allocation4], 1 }
 0x4c6   :  { %2536 = vsyncpa [#allocation4 + $0x1], 1 }

</bundles_post_ra>
